<compile_context>
chip_gen: v7x
topology: tpu7x:2x2x1
jax: 0.10.0
libtpu: 0.0.40
codegen_flags: <defaults>
</compile_context>

<pallas_src>
import math

import jax
import jax.numpy as jnp
from jax.experimental import pallas as pl
from jax.experimental.pallas import tpu as pltpu

_SQRT2_INV = 0.7071067811865476
_GELU_C = 0.7978845608028654  # sqrt(2/pi)


def _gelu_exact(x):
    # torch.nn.GELU() default (erf) — used only in the pure-JAX reference.
    return 0.5 * x * (1.0 + jax.lax.erf(x * _SQRT2_INV))


def _gelu_tanh(x):
    # tanh-approx GELU: moves the transcendental to the EUP slot.
    return 0.5 * x * (1.0 + jnp.tanh(_GELU_C * (x + 0.044715 * x * x * x)))


def _sigmoid_tanh(x):
    # exact sigmoid via a single EUP tanh.
    return 0.5 * jnp.tanh(0.5 * x) + 0.5


def _relu(x):
    return jnp.maximum(x, 0.0)


def _round_up(x, m):
    return ((x + m - 1) // m) * m


# ---------------------------------------------------------------------------
# Shared recurrence (layout-agnostic elementwise math; conv2/conv1 return the
# (Wfx*, Wix*, Wd*) projections of their input). Matches the torch forward.
# ---------------------------------------------------------------------------
def _recurrence(ywe1, ywe2, ywfy1, ywiy1, ywfy2, ywiy2, conv2, conv1, sigmoid):
    I = sigmoid(ywiy1)
    c12 = I * (-ywe1)
    x12 = _relu(c12)
    xt1 = jnp.zeros_like(c12)  # torch uses scalar 0; identical after broadcast

    for _ in range(3):
        fx2, ix2, d2 = conv2(x12)
        ctlide1 = ywe2 + (xt1 - d2)
        ft1 = sigmoid(fx2 + ywfy2)
        it1 = sigmoid(ix2 + ywiy2)
        ct1 = c12 * ft1 + ctlide1 * it1
        xt1 = _relu(ct1)

        fx1, ix1, d1 = conv1(xt1)
        c1tlide = ywe1 + xt1 - d1
        ft21 = sigmoid(fx1 + ywfy1)
        it21 = sigmoid(ix1 + ywiy1)
        ct2 = ct1 * ft21 + c1tlide * it21
        x12 = _relu(ct2)
        c12 = ct2

    fx2, ix2, d2 = conv2(x12)
    ctlide1 = ywe2 + (xt1 - d2)
    ft1 = sigmoid(fx2 + ywfy2)
    it1 = sigmoid(ix2 + ywiy2)
    ct1 = c12 * ft1 + ctlide1 * it1
    return _relu(ct1)


# ---------------------------------------------------------------------------
# Kernel 1: channel-major core (all 1x1 convs + recurrent elementwise loop).
# Tiles: y (C, tile), out (Dp, tile) with the flattened pixel axis on lanes.
# ---------------------------------------------------------------------------
def _make_core_kernel(hw_valid):
    def kernel(y_ref, wy_ref, by_ref, wxa_ref, bxa_ref, wxb_ref, bxb_ref, out_ref):
        dp, tile = out_ref.shape
        y = y_ref[...]

        # all six y-side 1x1 convs in ONE wide matmul, then 8-aligned row slices
        yproj = _gelu_tanh(
            jnp.dot(wy_ref[...], y, preferred_element_type=jnp.float32) + by_ref[...])
        ys = tuple(yproj[i * dp:(i + 1) * dp] for i in range(6))

        # hoist weight/bias loads out of the unrolled recurrence
        wxa = wxa_ref[...]
        bxa = bxa_ref[...]
        wxb = wxb_ref[...]
        bxb = bxb_ref[...]

        def conv2(x):  # {Wfx2, Wix2, Wd2}(x) fused into one matmul
            z = _gelu_tanh(jnp.dot(wxa, x, preferred_element_type=jnp.float32) + bxa)
            return z[:dp], z[dp:2 * dp], z[2 * dp:]

        def conv1(x):  # {Wfx1, Wix1, Wd1}(x) fused into one matmul
            z = _gelu_tanh(jnp.dot(wxb, x, preferred_element_type=jnp.float32) + bxb)
            return z[:dp], z[dp:2 * dp], z[2 * dp:]

        xt1 = _recurrence(*ys, conv2, conv1, _sigmoid_tanh)

        # keep padded pixel lanes (col >= H*W) exactly zero in the Line1 slab
        col = (jax.lax.broadcasted_iota(jnp.int32, (dp, tile), 1)
               + pl.program_id(1) * tile)
        out_ref[...] = jnp.where(col < hw_valid, xt1, 0.0)

    return kernel


# ---------------------------------------------------------------------------
# Kernel 2: Line1 head, grid (image, output-row-block).
# 3x3 valid conv = single [H2p, 9*Dp] @ [9*Dp, L] matmul on the 9 shifted taps
# (stacked into a VMEM scratch); then a 1x1 conv matmul; the final 1-channel
# projection is a sublane reduction so the store path stays lane-dense.
# The "halo" input block (same slab, next row block) gives the 2 extra rows the
# valid 3x3 windows need; all shifts are static (offsets come from BlockSpecs).
# ---------------------------------------------------------------------------
def _make_line1_kernel(img_w):
    def kernel(xm_ref, xh_ref, w1_ref, b1_ref, w2_ref, b2_ref, w3_ref, b3_ref,
               o_ref, full_ref, xs_ref):
        dp, L = xm_ref.shape

        # contiguous slab window [r*L, r*L + L + Lh)
        full_ref[:, :L] = xm_ref[...]
        full_ref[:, L:] = xh_ref[...]

        # stack the 9 shifted taps -> one K = 9*Dp MXU contraction
        k = 0
        for dy in range(3):
            for dx in range(3):
                s = dy * img_w + dx
                xs_ref[k * dp:(k + 1) * dp, :] = full_ref[:, s:s + L]
                k += 1

        h = _gelu_tanh(jnp.dot(w1_ref[...], xs_ref[...],
                               preferred_element_type=jnp.float32) + b1_ref[...])
        h = _gelu_tanh(jnp.dot(w2_ref[...], h,
                               preferred_element_type=jnp.float32) + b2_ref[...])
        # final (H2 -> 1) projection as a reduction: lane-dense output store
        o_ref[...] = jnp.sum(h * w3_ref[...], axis=0, keepdims=True) + b3_ref[...]

    return kernel


def _line1_tiles(Ho, W, lane_cap=1024):
    """Pick (rows per block, #blocks, lane width L, halo lanes Lh) for Line1."""
    g = 128 // math.gcd(W, 128)  # smallest row count making th*W lane-aligned
    if g <= Ho and g * W <= lane_cap:
        th = max(g, (min(Ho, lane_cap // W) // g) * g)
    else:
        th = Ho  # single row block (small / odd widths)
    if 2 * W + 2 > 128 and th < 3:  # wide rows need th*W >= 2W+2 for the halo
        th = min(Ho, 3)
    if th >= Ho or (th * W) % 128 != 0:
        th = Ho  # collapse to a single block
    Rb = -(-Ho // th)
    L = th * W if Rb > 1 else _round_up(Ho * W, 128)
    Lh = 128 if 2 * W + 2 <= 128 else L  # halo block width (always divides L)
    # TODO(synk): degenerate images (Ho <= 2 with W > 63) are not supported.
    return th, Rb, L, Lh


# ---------------------------------------------------------------------------
# Full forward.
# ---------------------------------------------------------------------------
def qencoder_forward(y_nchw, p, *, core_tile=512, row_lane_cap=1024):
    N, C, H, W = y_nchw.shape
    HW = H * W
    Ho, Wo = H - 2, W - 2
    Dp = p["wxa"].shape[1]
    H2p = p["w2"].shape[0]

    # ---- Line1 row tiling ----------------------------------------------------
    th, Rb, L, Lh = _line1_tiles(Ho, W, row_lane_cap)

    # ---- padded flattened pixel axis shared by both kernels -------------------
    need = _round_up(max(HW, Rb * L + Lh), 128)
    tile_hw = min(_round_up(core_tile, 128), need)
    T = -(-need // tile_hw)
    if (N * T) % 2 == 1 and tile_hw > 128:
        # v7x megacore: prefer an even (>=2) number of parallel core steps
        tile_hw = max(128, (tile_hw // 2) // 128 * 128)
        T = -(-need // tile_hw)
    HW_pad = T * tile_hw

    # NCHW -> (N, C, H*W) is a free reshape; only the small C-channel input is
    # zero-padded so every block is fully in-bounds.  No HBM permutes of the big
    # D-channel activations: the core kernel writes the Line1 slab directly.
    y3 = jnp.pad(y_nchw.reshape(N, C, HW), ((0, 0), (0, 0), (0, HW_pad - HW)))

    xt1 = pl.pallas_call(
        _make_core_kernel(HW),
        out_shape=jax.ShapeDtypeStruct((N, Dp, HW_pad), jnp.float32),
        grid=(N, T),
        in_specs=[
            pl.BlockSpec((None, C, tile_hw), lambda n, i: (n, 0, i)),
            pl.BlockSpec(p["wy"].shape, lambda n, i: (0, 0)),
            pl.BlockSpec(p["by"].shape, lambda n, i: (0, 0)),
            pl.BlockSpec(p["wxa"].shape, lambda n, i: (0, 0)),
            pl.BlockSpec(p["bxa"].shape, lambda n, i: (0, 0)),
            pl.BlockSpec(p["wxb"].shape, lambda n, i: (0, 0)),
            pl.BlockSpec(p["bxb"].shape, lambda n, i: (0, 0)),
        ],
        out_specs=pl.BlockSpec((None, Dp, tile_hw), lambda n, i: (n, 0, i)),
        compiler_params=pltpu.CompilerParams(
            dimension_semantics=("parallel", "parallel")),
    )(y3, p["wy"], p["by"], p["wxa"], p["bxa"], p["wxb"], p["bxb"])

    # ---- Line1 head: row-block tiled, halo'd, fused K=9*Dp conv ---------------
    vmem_need = 4 * (3 * Dp * (L + Lh) + 9 * Dp * L + 2 * L + 6 * H2p * L
                     + 2 * (9 * Dp * H2p + H2p * H2p + 3 * H2p + 1))
    out = pl.pallas_call(
        _make_line1_kernel(W),
        out_shape=jax.ShapeDtypeStruct((N, 1, Rb * L), jnp.float32),
        grid=(N, Rb),
        in_specs=[
            pl.BlockSpec((None, Dp, L), lambda n, r: (n, 0, r)),
            pl.BlockSpec((None, Dp, Lh), lambda n, r: (n, 0, (r + 1) * (L // Lh))),
            pl.BlockSpec(p["w1"].shape, lambda n, r: (0, 0)),
            pl.BlockSpec(p["b1"].shape, lambda n, r: (0, 0)),
            pl.BlockSpec(p["w2"].shape, lambda n, r: (0, 0)),
            pl.BlockSpec(p["b2"].shape, lambda n, r: (0, 0)),
            pl.BlockSpec(p["w3"].shape, lambda n, r: (0, 0)),
            pl.BlockSpec(p["b3"].shape, lambda n, r: (0, 0)),
        ],
        out_specs=pl.BlockSpec((None, 1, L), lambda n, r: (n, 0, r)),
        scratch_shapes=[
            pltpu.VMEM((Dp, L + Lh), jnp.float32),   # contiguous halo'd window
            pltpu.VMEM((9 * Dp, L), jnp.float32),    # stacked 9-tap operand
        ],
        compiler_params=pltpu.CompilerParams(
            dimension_semantics=("parallel", "parallel"),
            vmem_limit_bytes=int(min(64 * 2 ** 20,
                                     max(16 * 2 ** 20, 4 * vmem_need)))),
    )(xt1, xt1, p["w1"], p["b1"], p["w2"], p["b2"], p["w3"], p["b3"])

    out = out[:, 0, :Ho * W].reshape(N, Ho, W)[:, :, :Wo]  # drop garbage columns
    return out[:, None, :, :]                               # NCHW (N, 1, Ho, Wo)


# ---------------------------------------------------------------------------
# Parameters: "torch-like" raw weights + packed/padded layout for the kernels.
# Dp = round_up(D, 8) and H2p = round_up(H2, 8) so every slice is tile-aligned;
# padded rows/cols are zero, which provably keeps the padded channels at 0.
# ---------------------------------------------------------------------------
def init_raw_params(key, Dict_size, hidden_size, cell_size):
    D, C, H2 = Dict_size, cell_size, 2 * hidden_size
    names_y = ["We1", "We2", "Wfy1", "Wiy1", "Wfy2", "Wiy2"]
    names_x = ["Wfx1", "Wix1", "Wd1", "Wfx2", "Wix2", "Wd2"]
    keys = jax.random.split(key, 2 * (len(names_y) + len(names_x)) + 6)
    s = 0.1
    p, k = {}, 0
    for nm in names_y:
        p[nm + "_w"] = s * jax.random.normal(keys[k], (D, C), jnp.float32); k += 1
        p[nm + "_b"] = s * jax.random.normal(keys[k], (D,), jnp.float32); k += 1
    for nm in names_x:
        p[nm + "_w"] = s * jax.random.normal(keys[k], (D, D), jnp.float32); k += 1
        p[nm + "_b"] = s * jax.random.normal(keys[k], (D,), jnp.float32); k += 1
    p["w1"] = s * jax.random.normal(keys[k], (H2, D, 3, 3), jnp.float32); k += 1
    p["b1"] = s * jax.random.normal(keys[k], (H2,), jnp.float32); k += 1
    p["w2"] = s * jax.random.normal(keys[k], (H2, H2), jnp.float32); k += 1
    p["b2"] = s * jax.random.normal(keys[k], (H2,), jnp.float32); k += 1
    p["w3"] = s * jax.random.normal(keys[k], (1, H2), jnp.float32); k += 1
    p["b3"] = s * jax.random.normal(keys[k], (1,), jnp.float32); k += 1
    return p


def pack_params(raw):
    D, C = raw["We1_w"].shape
    H2 = raw["w1"].shape[0]
    Dp, H2p = _round_up(D, 8), _round_up(H2, 8)

    wy = jnp.zeros((6 * Dp, C), jnp.float32)
    by = jnp.zeros((6 * Dp, 1), jnp.float32)
    for i, nm in enumerate(["We1", "We2", "Wfy1", "Wiy1", "Wfy2", "Wiy2"]):
        wy = wy.at[i * Dp:i * Dp + D, :].set(raw[nm + "_w"])
        by = by.at[i * Dp:i * Dp + D, 0].set(raw[nm + "_b"])

    def pack_trio(names):
        w = jnp.zeros((3 * Dp, Dp), jnp.float32)
        b = jnp.zeros((3 * Dp, 1), jnp.float32)
        for i, nm in enumerate(names):
            w = w.at[i * Dp:i * Dp + D, :D].set(raw[nm + "_w"])
            b = b.at[i * Dp:i * Dp + D, 0].set(raw[nm + "_b"])
        return w, b

    wxa, bxa = pack_trio(["Wfx2", "Wix2", "Wd2"])   # trio applied to x12
    wxb, bxb = pack_trio(["Wfx1", "Wix1", "Wd1"])   # trio applied to xt1

    w1 = jnp.zeros((H2p, 9 * Dp), jnp.float32)
    for dy in range(3):
        for dx in range(3):
            k = dy * 3 + dx
            w1 = w1.at[:H2, k * Dp:k * Dp + D].set(raw["w1"][:, :, dy, dx])
    b1 = jnp.zeros((H2p, 1), jnp.float32).at[:H2, 0].set(raw["b1"])
    w2 = jnp.zeros((H2p, H2p), jnp.float32).at[:H2, :H2].set(raw["w2"])
    b2 = jnp.zeros((H2p, 1), jnp.float32).at[:H2, 0].set(raw["b2"])
    w3 = jnp.zeros((H2p, 1), jnp.float32).at[:H2, 0].set(raw["w3"][0])
    b3 = raw["b3"].reshape(1, 1).astype(jnp.float32)

    return dict(wy=wy, by=by, wxa=wxa, bxa=bxa, wxb=wxb, bxb=bxb,
                w1=w1, b1=b1, w2=w2, b2=b2, w3=w3, b3=b3)


# ---------------------------------------------------------------------------
# Pure-JAX reference (exact erf GELU / exact sigmoid, raw weights, no Pallas).
# ---------------------------------------------------------------------------
def reference_forward(y_nchw, raw):
    N, C, H, W = y_nchw.shape
    D = raw["We1_w"].shape[0]
    Ho, Wo = H - 2, W - 2

    yf = jnp.transpose(y_nchw, (0, 2, 3, 1)).reshape(-1, C)  # (P, C)

    def proj(x, nm):
        return _gelu_exact(x @ raw[nm + "_w"].T + raw[nm + "_b"][None, :])

    ys = tuple(proj(yf, nm) for nm in ["We1", "We2", "Wfy1", "Wiy1", "Wfy2", "Wiy2"])
    conv2 = lambda x: (proj(x, "Wfx2"), proj(x, "Wix2"), proj(x, "Wd2"))
    conv1 = lambda x: (proj(x, "Wfx1"), proj(x, "Wix1"), proj(x, "Wd1"))
    xt1 = _recurrence(*ys, conv2, conv1, jax.nn.sigmoid)      # (P, D)

    x = xt1.reshape(N, H, W, D)
    h = jnp.zeros((N, Ho, Wo, raw["w1"].shape[0]), jnp.float32)
    for dy in range(3):
        for dx in range(3):
            h = h + jnp.einsum("nhwd,od->nhwo",
                               x[:, dy:dy + Ho, dx:dx + Wo, :],
                               raw["w1"][:, :, dy, dx])
    h = _gelu_exact(h + raw["b1"])
    h = _gelu_exact(jnp.einsum("nhwi,oi->nhwo", h, raw["w2"]) + raw["b2"])
    o = jnp.einsum("nhwi,oi->nhwo", h, raw["w3"]) + raw["b3"]
    return jnp.transpose(o, (0, 3, 1, 2))                     # NCHW


if __name__ == "__main__":
    Dict_size, hidden_size, cell_size = 8, 16, 4
    N, H, W = 2, 16, 16

    key = jax.random.PRNGKey(0)
    kx, kp = jax.random.split(key)
    y = jax.random.normal(kx, (N, cell_size, H, W), jnp.float32)

    raw = init_raw_params(kp, Dict_size, hidden_size, cell_size)
    packed = pack_params(raw)

    out = jax.block_until_ready(jax.jit(qencoder_forward)(y, packed))
    assert out.shape == (N, 1, H - 2, W - 2), out.shape

    ref = jax.block_until_ready(reference_forward(y, raw))
    err = float(jnp.max(jnp.abs(out - ref)))
    # tolerance covers the tanh-approx GELU used inside the kernels
    # (torch.nn.GELU() default is erf-exact); sigmoid is exact.
    assert err < 5e-3, err

    print("KERNEL_OK")
</pallas_src>

<mosaic_0001>
module attributes {stable_mosaic.version = 11 : i64} {
  func.func @kernel(%arg0: i32, %arg1: i32, %arg2: memref<1x4x384xf32, #tpu.memory_space<vmem>>, %arg3: memref<48x4xf32, #tpu.memory_space<vmem>>, %arg4: memref<48x1xf32, #tpu.memory_space<vmem>>, %arg5: memref<24x8xf32, #tpu.memory_space<vmem>>, %arg6: memref<24x1xf32, #tpu.memory_space<vmem>>, %arg7: memref<24x8xf32, #tpu.memory_space<vmem>>, %arg8: memref<24x1xf32, #tpu.memory_space<vmem>>, %arg9: memref<1x8x384xf32, #tpu.memory_space<vmem>>) attributes {dimension_semantics = [#tpu.dimension_semantics<parallel>, #tpu.dimension_semantics<parallel>], iteration_bounds = array<i64: 2, 1>, scalar_prefetch = 0 : i64, scratch_operands = 0 : i64, tpu.core_type = #tpu.core_type<tc>, window_params = [{transform_indices = @transform_0, window_bounds = array<i64: 1, 4, 384>}, {pipeline_mode = #tpu.pipeline_mode<synchronous>, transform_indices = @transform_1, window_bounds = array<i64: 48, 4>}, {pipeline_mode = #tpu.pipeline_mode<synchronous>, transform_indices = @transform_2, window_bounds = array<i64: 48, 1>}, {pipeline_mode = #tpu.pipeline_mode<synchronous>, transform_indices = @transform_3, window_bounds = array<i64: 24, 8>}, {pipeline_mode = #tpu.pipeline_mode<synchronous>, transform_indices = @transform_4, window_bounds = array<i64: 24, 1>}, {pipeline_mode = #tpu.pipeline_mode<synchronous>, transform_indices = @transform_5, window_bounds = array<i64: 24, 8>}, {pipeline_mode = #tpu.pipeline_mode<synchronous>, transform_indices = @transform_6, window_bounds = array<i64: 24, 1>}, {transform_indices = @transform_7, window_bounds = array<i64: 1, 8, 384>}]} {
    %c0 = arith.constant 0 : index
    %c0_0 = arith.constant 0 : index
    %c0_1 = arith.constant 0 : index
    %0 = vector.load %arg2[%c0, %c0_0, %c0_1] : memref<1x4x384xf32, #tpu.memory_space<vmem>>, vector<1x4x384xf32>
    %1 = vector.shape_cast %0 : vector<1x4x384xf32> to vector<4x384xf32>
    %c0_2 = arith.constant 0 : index
    %c0_3 = arith.constant 0 : index
    %2 = vector.load %arg3[%c0_2, %c0_3] : memref<48x4xf32, #tpu.memory_space<vmem>>, vector<48x4xf32>
    %cst = arith.constant dense<0.000000e+00> : vector<48x384xf32>
    %3 = tpu.matmul %2, %1, %cst {dimension_numbers = #tpu.dot_dimension_numbers<[1], [0], [0], [1], [0, 0, 1, 1], [], []>} : vector<48x4xf32>, vector<4x384xf32>, vector<48x384xf32> -> vector<48x384xf32>
    %c0_4 = arith.constant 0 : index
    %c0_5 = arith.constant 0 : index
    %4 = vector.load %arg4[%c0_4, %c0_5] : memref<48x1xf32, #tpu.memory_space<vmem>>, vector<48x1xf32>
    %5 = vector.broadcast %4 : vector<48x1xf32> to vector<48x384xf32>
    %6 = arith.addf %3, %5 : vector<48x384xf32>
    %cst_6 = arith.constant 5.000000e-01 : f32
    %7 = vector.broadcast %cst_6 : f32 to vector<48x384xf32>
    %8 = arith.mulf %7, %6 : vector<48x384xf32>
    %cst_7 = arith.constant 4.471500e-02 : f32
    %9 = vector.broadcast %cst_7 : f32 to vector<48x384xf32>
    %10 = arith.mulf %9, %6 : vector<48x384xf32>
    %11 = arith.mulf %10, %6 : vector<48x384xf32>
    %12 = arith.mulf %11, %6 : vector<48x384xf32>
    %13 = arith.addf %6, %12 : vector<48x384xf32>
    %cst_8 = arith.constant 0.797884583 : f32
    %14 = vector.broadcast %cst_8 : f32 to vector<48x384xf32>
    %15 = arith.mulf %14, %13 : vector<48x384xf32>
    %16 = math.tanh %15 : vector<48x384xf32>
    %cst_9 = arith.constant 1.000000e+00 : f32
    %17 = vector.broadcast %cst_9 : f32 to vector<48x384xf32>
    %18 = arith.addf %17, %16 : vector<48x384xf32>
    %19 = arith.mulf %8, %18 : vector<48x384xf32>
    %20 = vector.extract_strided_slice %19 {offsets = [0, 0], sizes = [8, 384], strides = [1, 1]} : vector<48x384xf32> to vector<8x384xf32>
    %21 = vector.extract_strided_slice %19 {offsets = [8, 0], sizes = [8, 384], strides = [1, 1]} : vector<48x384xf32> to vector<8x384xf32>
    %22 = vector.extract_strided_slice %19 {offsets = [16, 0], sizes = [8, 384], strides = [1, 1]} : vector<48x384xf32> to vector<8x384xf32>
    %23 = vector.extract_strided_slice %19 {offsets = [24, 0], sizes = [8, 384], strides = [1, 1]} : vector<48x384xf32> to vector<8x384xf32>
    %24 = vector.extract_strided_slice %19 {offsets = [32, 0], sizes = [8, 384], strides = [1, 1]} : vector<48x384xf32> to vector<8x384xf32>
    %25 = vector.extract_strided_slice %19 {offsets = [40, 0], sizes = [8, 384], strides = [1, 1]} : vector<48x384xf32> to vector<8x384xf32>
    %c0_10 = arith.constant 0 : index
    %c0_11 = arith.constant 0 : index
    %26 = vector.load %arg5[%c0_10, %c0_11] : memref<24x8xf32, #tpu.memory_space<vmem>>, vector<24x8xf32>
    %c0_12 = arith.constant 0 : index
    %c0_13 = arith.constant 0 : index
    %27 = vector.load %arg6[%c0_12, %c0_13] : memref<24x1xf32, #tpu.memory_space<vmem>>, vector<24x1xf32>
    %c0_14 = arith.constant 0 : index
    %c0_15 = arith.constant 0 : index
    %28 = vector.load %arg7[%c0_14, %c0_15] : memref<24x8xf32, #tpu.memory_space<vmem>>, vector<24x8xf32>
    %c0_16 = arith.constant 0 : index
    %c0_17 = arith.constant 0 : index
    %29 = vector.load %arg8[%c0_16, %c0_17] : memref<24x1xf32, #tpu.memory_space<vmem>>, vector<24x1xf32>
    %cst_18 = arith.constant 5.000000e-01 : f32
    %30 = vector.broadcast %cst_18 : f32 to vector<8x384xf32>
    %31 = arith.mulf %30, %23 : vector<8x384xf32>
    %32 = math.tanh %31 : vector<8x384xf32>
    %cst_19 = arith.constant 5.000000e-01 : f32
    %33 = vector.broadcast %cst_19 : f32 to vector<8x384xf32>
    %34 = arith.mulf %33, %32 : vector<8x384xf32>
    %cst_20 = arith.constant 5.000000e-01 : f32
    %35 = vector.broadcast %cst_20 : f32 to vector<8x384xf32>
    %36 = arith.addf %34, %35 : vector<8x384xf32>
    %cst_21 = arith.constant 0.000000e+00 : f32
    %37 = vector.broadcast %cst_21 : f32 to vector<8x384xf32>
    %38 = arith.subf %37, %20 : vector<8x384xf32>
    %39 = arith.mulf %36, %38 : vector<8x384xf32>
    %cst_22 = arith.constant 0.000000e+00 : f32
    %40 = vector.broadcast %cst_22 : f32 to vector<8x384xf32>
    %41 = arith.maximumf %39, %40 : vector<8x384xf32>
    %cst_23 = arith.constant 0.000000e+00 : f32
    %42 = vector.broadcast %cst_23 : f32 to vector<8x384xf32>
    %cst_24 = arith.constant dense<0.000000e+00> : vector<24x384xf32>
    %43 = tpu.matmul %26, %41, %cst_24 {dimension_numbers = #tpu.dot_dimension_numbers<[1], [0], [0], [1], [0, 0, 1, 1], [], []>} : vector<24x8xf32>, vector<8x384xf32>, vector<24x384xf32> -> vector<24x384xf32>
    %44 = vector.broadcast %27 : vector<24x1xf32> to vector<24x384xf32>
    %45 = arith.addf %43, %44 : vector<24x384xf32>
    %cst_25 = arith.constant 5.000000e-01 : f32
    %46 = vector.broadcast %cst_25 : f32 to vector<24x384xf32>
    %47 = arith.mulf %46, %45 : vector<24x384xf32>
    %cst_26 = arith.constant 4.471500e-02 : f32
    %48 = vector.broadcast %cst_26 : f32 to vector<24x384xf32>
    %49 = arith.mulf %48, %45 : vector<24x384xf32>
    %50 = arith.mulf %49, %45 : vector<24x384xf32>
    %51 = arith.mulf %50, %45 : vector<24x384xf32>
    %52 = arith.addf %45, %51 : vector<24x384xf32>
    %cst_27 = arith.constant 0.797884583 : f32
    %53 = vector.broadcast %cst_27 : f32 to vector<24x384xf32>
    %54 = arith.mulf %53, %52 : vector<24x384xf32>
    %55 = math.tanh %54 : vector<24x384xf32>
    %cst_28 = arith.constant 1.000000e+00 : f32
    %56 = vector.broadcast %cst_28 : f32 to vector<24x384xf32>
    %57 = arith.addf %56, %55 : vector<24x384xf32>
    %58 = arith.mulf %47, %57 : vector<24x384xf32>
    %59 = vector.extract_strided_slice %58 {offsets = [0, 0], sizes = [8, 384], strides = [1, 1]} : vector<24x384xf32> to vector<8x384xf32>
    %60 = vector.extract_strided_slice %58 {offsets = [8, 0], sizes = [8, 384], strides = [1, 1]} : vector<24x384xf32> to vector<8x384xf32>
    %61 = vector.extract_strided_slice %58 {offsets = [16, 0], sizes = [8, 384], strides = [1, 1]} : vector<24x384xf32> to vector<8x384xf32>
    %62 = arith.subf %42, %61 : vector<8x384xf32>
    %63 = arith.addf %21, %62 : vector<8x384xf32>
    %64 = arith.addf %59, %24 : vector<8x384xf32>
    %cst_29 = arith.constant 5.000000e-01 : f32
    %65 = vector.broadcast %cst_29 : f32 to vector<8x384xf32>
    %66 = arith.mulf %65, %64 : vector<8x384xf32>
    %67 = math.tanh %66 : vector<8x384xf32>
    %cst_30 = arith.constant 5.000000e-01 : f32
    %68 = vector.broadcast %cst_30 : f32 to vector<8x384xf32>
    %69 = arith.mulf %68, %67 : vector<8x384xf32>
    %cst_31 = arith.constant 5.000000e-01 : f32
    %70 = vector.broadcast %cst_31 : f32 to vector<8x384xf32>
    %71 = arith.addf %69, %70 : vector<8x384xf32>
    %72 = arith.addf %60, %25 : vector<8x384xf32>
    %cst_32 = arith.constant 5.000000e-01 : f32
    %73 = vector.broadcast %cst_32 : f32 to vector<8x384xf32>
    %74 = arith.mulf %73, %72 : vector<8x384xf32>
    %75 = math.tanh %74 : vector<8x384xf32>
    %cst_33 = arith.constant 5.000000e-01 : f32
    %76 = vector.broadcast %cst_33 : f32 to vector<8x384xf32>
    %77 = arith.mulf %76, %75 : vector<8x384xf32>
    %cst_34 = arith.constant 5.000000e-01 : f32
    %78 = vector.broadcast %cst_34 : f32 to vector<8x384xf32>
    %79 = arith.addf %77, %78 : vector<8x384xf32>
    %80 = arith.mulf %39, %71 : vector<8x384xf32>
    %81 = arith.mulf %63, %79 : vector<8x384xf32>
    %82 = arith.addf %80, %81 : vector<8x384xf32>
    %cst_35 = arith.constant 0.000000e+00 : f32
    %83 = vector.broadcast %cst_35 : f32 to vector<8x384xf32>
    %84 = arith.maximumf %82, %83 : vector<8x384xf32>
    %cst_36 = arith.constant dense<0.000000e+00> : vector<24x384xf32>
    %85 = tpu.matmul %28, %84, %cst_36 {dimension_numbers = #tpu.dot_dimension_numbers<[1], [0], [0], [1], [0, 0, 1, 1], [], []>} : vector<24x8xf32>, vector<8x384xf32>, vector<24x384xf32> -> vector<24x384xf32>
    %86 = vector.broadcast %29 : vector<24x1xf32> to vector<24x384xf32>
    %87 = arith.addf %85, %86 : vector<24x384xf32>
    %cst_37 = arith.constant 5.000000e-01 : f32
    %88 = vector.broadcast %cst_37 : f32 to vector<24x384xf32>
    %89 = arith.mulf %88, %87 : vector<24x384xf32>
    %cst_38 = arith.constant 4.471500e-02 : f32
    %90 = vector.broadcast %cst_38 : f32 to vector<24x384xf32>
    %91 = arith.mulf %90, %87 : vector<24x384xf32>
    %92 = arith.mulf %91, %87 : vector<24x384xf32>
    %93 = arith.mulf %92, %87 : vector<24x384xf32>
    %94 = arith.addf %87, %93 : vector<24x384xf32>
    %cst_39 = arith.constant 0.797884583 : f32
    %95 = vector.broadcast %cst_39 : f32 to vector<24x384xf32>
    %96 = arith.mulf %95, %94 : vector<24x384xf32>
    %97 = math.tanh %96 : vector<24x384xf32>
    %cst_40 = arith.constant 1.000000e+00 : f32
    %98 = vector.broadcast %cst_40 : f32 to vector<24x384xf32>
    %99 = arith.addf %98, %97 : vector<24x384xf32>
    %100 = arith.mulf %89, %99 : vector<24x384xf32>
    %101 = vector.extract_strided_slice %100 {offsets = [0, 0], sizes = [8, 384], strides = [1, 1]} : vector<24x384xf32> to vector<8x384xf32>
    %102 = vector.extract_strided_slice %100 {offsets = [8, 0], sizes = [8, 384], strides = [1, 1]} : vector<24x384xf32> to vector<8x384xf32>
    %103 = vector.extract_strided_slice %100 {offsets = [16, 0], sizes = [8, 384], strides = [1, 1]} : vector<24x384xf32> to vector<8x384xf32>
    %104 = arith.addf %20, %84 : vector<8x384xf32>
    %105 = arith.subf %104, %103 : vector<8x384xf32>
    %106 = arith.addf %101, %22 : vector<8x384xf32>
    %cst_41 = arith.constant 5.000000e-01 : f32
    %107 = vector.broadcast %cst_41 : f32 to vector<8x384xf32>
    %108 = arith.mulf %107, %106 : vector<8x384xf32>
    %109 = math.tanh %108 : vector<8x384xf32>
    %cst_42 = arith.constant 5.000000e-01 : f32
    %110 = vector.broadcast %cst_42 : f32 to vector<8x384xf32>
    %111 = arith.mulf %110, %109 : vector<8x384xf32>
    %cst_43 = arith.constant 5.000000e-01 : f32
    %112 = vector.broadcast %cst_43 : f32 to vector<8x384xf32>
    %113 = arith.addf %111, %112 : vector<8x384xf32>
    %114 = arith.addf %102, %23 : vector<8x384xf32>
    %cst_44 = arith.constant 5.000000e-01 : f32
    %115 = vector.broadcast %cst_44 : f32 to vector<8x384xf32>
    %116 = arith.mulf %115, %114 : vector<8x384xf32>
    %117 = math.tanh %116 : vector<8x384xf32>
    %cst_45 = arith.constant 5.000000e-01 : f32
    %118 = vector.broadcast %cst_45 : f32 to vector<8x384xf32>
    %119 = arith.mulf %118, %117 : vector<8x384xf32>
    %cst_46 = arith.constant 5.000000e-01 : f32
    %120 = vector.broadcast %cst_46 : f32 to vector<8x384xf32>
    %121 = arith.addf %119, %120 : vector<8x384xf32>
    %122 = arith.mulf %82, %113 : vector<8x384xf32>
    %123 = arith.mulf %105, %121 : vector<8x384xf32>
    %124 = arith.addf %122, %123 : vector<8x384xf32>
    %cst_47 = arith.constant 0.000000e+00 : f32
    %125 = vector.broadcast %cst_47 : f32 to vector<8x384xf32>
    %126 = arith.maximumf %124, %125 : vector<8x384xf32>
    %cst_48 = arith.constant dense<0.000000e+00> : vector<24x384xf32>
    %127 = tpu.matmul %26, %126, %cst_48 {dimension_numbers = #tpu.dot_dimension_numbers<[1], [0], [0], [1], [0, 0, 1, 1], [], []>} : vector<24x8xf32>, vector<8x384xf32>, vector<24x384xf32> -> vector<24x384xf32>
    %128 = vector.broadcast %27 : vector<24x1xf32> to vector<24x384xf32>
    %129 = arith.addf %127, %128 : vector<24x384xf32>
    %cst_49 = arith.constant 5.000000e-01 : f32
    %130 = vector.broadcast %cst_49 : f32 to vector<24x384xf32>
    %131 = arith.mulf %130, %129 : vector<24x384xf32>
    %cst_50 = arith.constant 4.471500e-02 : f32
    %132 = vector.broadcast %cst_50 : f32 to vector<24x384xf32>
    %133 = arith.mulf %132, %129 : vector<24x384xf32>
    %134 = arith.mulf %133, %129 : vector<24x384xf32>
    %135 = arith.mulf %134, %129 : vector<24x384xf32>
    %136 = arith.addf %129, %135 : vector<24x384xf32>
    %cst_51 = arith.constant 0.797884583 : f32
    %137 = vector.broadcast %cst_51 : f32 to vector<24x384xf32>
    %138 = arith.mulf %137, %136 : vector<24x384xf32>
    %139 = math.tanh %138 : vector<24x384xf32>
    %cst_52 = arith.constant 1.000000e+00 : f32
    %140 = vector.broadcast %cst_52 : f32 to vector<24x384xf32>
    %141 = arith.addf %140, %139 : vector<24x384xf32>
    %142 = arith.mulf %131, %141 : vector<24x384xf32>
    %143 = vector.extract_strided_slice %142 {offsets = [0, 0], sizes = [8, 384], strides = [1, 1]} : vector<24x384xf32> to vector<8x384xf32>
    %144 = vector.extract_strided_slice %142 {offsets = [8, 0], sizes = [8, 384], strides = [1, 1]} : vector<24x384xf32> to vector<8x384xf32>
    %145 = vector.extract_strided_slice %142 {offsets = [16, 0], sizes = [8, 384], strides = [1, 1]} : vector<24x384xf32> to vector<8x384xf32>
    %146 = arith.subf %84, %145 : vector<8x384xf32>
    %147 = arith.addf %21, %146 : vector<8x384xf32>
    %148 = arith.addf %143, %24 : vector<8x384xf32>
    %cst_53 = arith.constant 5.000000e-01 : f32
    %149 = vector.broadcast %cst_53 : f32 to vector<8x384xf32>
    %150 = arith.mulf %149, %148 : vector<8x384xf32>
    %151 = math.tanh %150 : vector<8x384xf32>
    %cst_54 = arith.constant 5.000000e-01 : f32
    %152 = vector.broadcast %cst_54 : f32 to vector<8x384xf32>
    %153 = arith.mulf %152, %151 : vector<8x384xf32>
    %cst_55 = arith.constant 5.000000e-01 : f32
    %154 = vector.broadcast %cst_55 : f32 to vector<8x384xf32>
    %155 = arith.addf %153, %154 : vector<8x384xf32>
    %156 = arith.addf %144, %25 : vector<8x384xf32>
    %cst_56 = arith.constant 5.000000e-01 : f32
    %157 = vector.broadcast %cst_56 : f32 to vector<8x384xf32>
    %158 = arith.mulf %157, %156 : vector<8x384xf32>
    %159 = math.tanh %158 : vector<8x384xf32>
    %cst_57 = arith.constant 5.000000e-01 : f32
    %160 = vector.broadcast %cst_57 : f32 to vector<8x384xf32>
    %161 = arith.mulf %160, %159 : vector<8x384xf32>
    %cst_58 = arith.constant 5.000000e-01 : f32
    %162 = vector.broadcast %cst_58 : f32 to vector<8x384xf32>
    %163 = arith.addf %161, %162 : vector<8x384xf32>
    %164 = arith.mulf %124, %155 : vector<8x384xf32>
    %165 = arith.mulf %147, %163 : vector<8x384xf32>
    %166 = arith.addf %164, %165 : vector<8x384xf32>
    %cst_59 = arith.constant 0.000000e+00 : f32
    %167 = vector.broadcast %cst_59 : f32 to vector<8x384xf32>
    %168 = arith.maximumf %166, %167 : vector<8x384xf32>
    %cst_60 = arith.constant dense<0.000000e+00> : vector<24x384xf32>
    %169 = tpu.matmul %28, %168, %cst_60 {dimension_numbers = #tpu.dot_dimension_numbers<[1], [0], [0], [1], [0, 0, 1, 1], [], []>} : vector<24x8xf32>, vector<8x384xf32>, vector<24x384xf32> -> vector<24x384xf32>
    %170 = vector.broadcast %29 : vector<24x1xf32> to vector<24x384xf32>
    %171 = arith.addf %169, %170 : vector<24x384xf32>
    %cst_61 = arith.constant 5.000000e-01 : f32
    %172 = vector.broadcast %cst_61 : f32 to vector<24x384xf32>
    %173 = arith.mulf %172, %171 : vector<24x384xf32>
    %cst_62 = arith.constant 4.471500e-02 : f32
    %174 = vector.broadcast %cst_62 : f32 to vector<24x384xf32>
    %175 = arith.mulf %174, %171 : vector<24x384xf32>
    %176 = arith.mulf %175, %171 : vector<24x384xf32>
    %177 = arith.mulf %176, %171 : vector<24x384xf32>
    %178 = arith.addf %171, %177 : vector<24x384xf32>
    %cst_63 = arith.constant 0.797884583 : f32
    %179 = vector.broadcast %cst_63 : f32 to vector<24x384xf32>
    %180 = arith.mulf %179, %178 : vector<24x384xf32>
    %181 = math.tanh %180 : vector<24x384xf32>
    %cst_64 = arith.constant 1.000000e+00 : f32
    %182 = vector.broadcast %cst_64 : f32 to vector<24x384xf32>
    %183 = arith.addf %182, %181 : vector<24x384xf32>
    %184 = arith.mulf %173, %183 : vector<24x384xf32>
    %185 = vector.extract_strided_slice %184 {offsets = [0, 0], sizes = [8, 384], strides = [1, 1]} : vector<24x384xf32> to vector<8x384xf32>
    %186 = vector.extract_strided_slice %184 {offsets = [8, 0], sizes = [8, 384], strides = [1, 1]} : vector<24x384xf32> to vector<8x384xf32>
    %187 = vector.extract_strided_slice %184 {offsets = [16, 0], sizes = [8, 384], strides = [1, 1]} : vector<24x384xf32> to vector<8x384xf32>
    %188 = arith.addf %20, %168 : vector<8x384xf32>
    %189 = arith.subf %188, %187 : vector<8x384xf32>
    %190 = arith.addf %185, %22 : vector<8x384xf32>
    %cst_65 = arith.constant 5.000000e-01 : f32
    %191 = vector.broadcast %cst_65 : f32 to vector<8x384xf32>
    %192 = arith.mulf %191, %190 : vector<8x384xf32>
    %193 = math.tanh %192 : vector<8x384xf32>
    %cst_66 = arith.constant 5.000000e-01 : f32
    %194 = vector.broadcast %cst_66 : f32 to vector<8x384xf32>
    %195 = arith.mulf %194, %193 : vector<8x384xf32>
    %cst_67 = arith.constant 5.000000e-01 : f32
    %196 = vector.broadcast %cst_67 : f32 to vector<8x384xf32>
    %197 = arith.addf %195, %196 : vector<8x384xf32>
    %198 = arith.addf %186, %23 : vector<8x384xf32>
    %cst_68 = arith.constant 5.000000e-01 : f32
    %199 = vector.broadcast %cst_68 : f32 to vector<8x384xf32>
    %200 = arith.mulf %199, %198 : vector<8x384xf32>
    %201 = math.tanh %200 : vector<8x384xf32>
    %cst_69 = arith.constant 5.000000e-01 : f32
    %202 = vector.broadcast %cst_69 : f32 to vector<8x384xf32>
    %203 = arith.mulf %202, %201 : vector<8x384xf32>
    %cst_70 = arith.constant 5.000000e-01 : f32
    %204 = vector.broadcast %cst_70 : f32 to vector<8x384xf32>
    %205 = arith.addf %203, %204 : vector<8x384xf32>
    %206 = arith.mulf %166, %197 : vector<8x384xf32>
    %207 = arith.mulf %189, %205 : vector<8x384xf32>
    %208 = arith.addf %206, %207 : vector<8x384xf32>
    %cst_71 = arith.constant 0.000000e+00 : f32
    %209 = vector.broadcast %cst_71 : f32 to vector<8x384xf32>
    %210 = arith.maximumf %208, %209 : vector<8x384xf32>
    %cst_72 = arith.constant dense<0.000000e+00> : vector<24x384xf32>
    %211 = tpu.matmul %26, %210, %cst_72 {dimension_numbers = #tpu.dot_dimension_numbers<[1], [0], [0], [1], [0, 0, 1, 1], [], []>} : vector<24x8xf32>, vector<8x384xf32>, vector<24x384xf32> -> vector<24x384xf32>
    %212 = vector.broadcast %27 : vector<24x1xf32> to vector<24x384xf32>
    %213 = arith.addf %211, %212 : vector<24x384xf32>
    %cst_73 = arith.constant 5.000000e-01 : f32
    %214 = vector.broadcast %cst_73 : f32 to vector<24x384xf32>
    %215 = arith.mulf %214, %213 : vector<24x384xf32>
    %cst_74 = arith.constant 4.471500e-02 : f32
    %216 = vector.broadcast %cst_74 : f32 to vector<24x384xf32>
    %217 = arith.mulf %216, %213 : vector<24x384xf32>
    %218 = arith.mulf %217, %213 : vector<24x384xf32>
    %219 = arith.mulf %218, %213 : vector<24x384xf32>
    %220 = arith.addf %213, %219 : vector<24x384xf32>
    %cst_75 = arith.constant 0.797884583 : f32
    %221 = vector.broadcast %cst_75 : f32 to vector<24x384xf32>
    %222 = arith.mulf %221, %220 : vector<24x384xf32>
    %223 = math.tanh %222 : vector<24x384xf32>
    %cst_76 = arith.constant 1.000000e+00 : f32
    %224 = vector.broadcast %cst_76 : f32 to vector<24x384xf32>
    %225 = arith.addf %224, %223 : vector<24x384xf32>
    %226 = arith.mulf %215, %225 : vector<24x384xf32>
    %227 = vector.extract_strided_slice %226 {offsets = [0, 0], sizes = [8, 384], strides = [1, 1]} : vector<24x384xf32> to vector<8x384xf32>
    %228 = vector.extract_strided_slice %226 {offsets = [8, 0], sizes = [8, 384], strides = [1, 1]} : vector<24x384xf32> to vector<8x384xf32>
    %229 = vector.extract_strided_slice %226 {offsets = [16, 0], sizes = [8, 384], strides = [1, 1]} : vector<24x384xf32> to vector<8x384xf32>
    %230 = arith.subf %168, %229 : vector<8x384xf32>
    %231 = arith.addf %21, %230 : vector<8x384xf32>
    %232 = arith.addf %227, %24 : vector<8x384xf32>
    %cst_77 = arith.constant 5.000000e-01 : f32
    %233 = vector.broadcast %cst_77 : f32 to vector<8x384xf32>
    %234 = arith.mulf %233, %232 : vector<8x384xf32>
    %235 = math.tanh %234 : vector<8x384xf32>
    %cst_78 = arith.constant 5.000000e-01 : f32
    %236 = vector.broadcast %cst_78 : f32 to vector<8x384xf32>
    %237 = arith.mulf %236, %235 : vector<8x384xf32>
    %cst_79 = arith.constant 5.000000e-01 : f32
    %238 = vector.broadcast %cst_79 : f32 to vector<8x384xf32>
    %239 = arith.addf %237, %238 : vector<8x384xf32>
    %240 = arith.addf %228, %25 : vector<8x384xf32>
    %cst_80 = arith.constant 5.000000e-01 : f32
    %241 = vector.broadcast %cst_80 : f32 to vector<8x384xf32>
    %242 = arith.mulf %241, %240 : vector<8x384xf32>
    %243 = math.tanh %242 : vector<8x384xf32>
    %cst_81 = arith.constant 5.000000e-01 : f32
    %244 = vector.broadcast %cst_81 : f32 to vector<8x384xf32>
    %245 = arith.mulf %244, %243 : vector<8x384xf32>
    %cst_82 = arith.constant 5.000000e-01 : f32
    %246 = vector.broadcast %cst_82 : f32 to vector<8x384xf32>
    %247 = arith.addf %245, %246 : vector<8x384xf32>
    %248 = arith.mulf %208, %239 : vector<8x384xf32>
    %249 = arith.mulf %231, %247 : vector<8x384xf32>
    %250 = arith.addf %248, %249 : vector<8x384xf32>
    %cst_83 = arith.constant 0.000000e+00 : f32
    %251 = vector.broadcast %cst_83 : f32 to vector<8x384xf32>
    %252 = arith.maximumf %250, %251 : vector<8x384xf32>
    %cst_84 = arith.constant dense<0.000000e+00> : vector<24x384xf32>
    %253 = tpu.matmul %28, %252, %cst_84 {dimension_numbers = #tpu.dot_dimension_numbers<[1], [0], [0], [1], [0, 0, 1, 1], [], []>} : vector<24x8xf32>, vector<8x384xf32>, vector<24x384xf32> -> vector<24x384xf32>
    %254 = vector.broadcast %29 : vector<24x1xf32> to vector<24x384xf32>
    %255 = arith.addf %253, %254 : vector<24x384xf32>
    %cst_85 = arith.constant 5.000000e-01 : f32
    %256 = vector.broadcast %cst_85 : f32 to vector<24x384xf32>
    %257 = arith.mulf %256, %255 : vector<24x384xf32>
    %cst_86 = arith.constant 4.471500e-02 : f32
    %258 = vector.broadcast %cst_86 : f32 to vector<24x384xf32>
    %259 = arith.mulf %258, %255 : vector<24x384xf32>
    %260 = arith.mulf %259, %255 : vector<24x384xf32>
    %261 = arith.mulf %260, %255 : vector<24x384xf32>
    %262 = arith.addf %255, %261 : vector<24x384xf32>
    %cst_87 = arith.constant 0.797884583 : f32
    %263 = vector.broadcast %cst_87 : f32 to vector<24x384xf32>
    %264 = arith.mulf %263, %262 : vector<24x384xf32>
    %265 = math.tanh %264 : vector<24x384xf32>
    %cst_88 = arith.constant 1.000000e+00 : f32
    %266 = vector.broadcast %cst_88 : f32 to vector<24x384xf32>
    %267 = arith.addf %266, %265 : vector<24x384xf32>
    %268 = arith.mulf %257, %267 : vector<24x384xf32>
    %269 = vector.extract_strided_slice %268 {offsets = [0, 0], sizes = [8, 384], strides = [1, 1]} : vector<24x384xf32> to vector<8x384xf32>
    %270 = vector.extract_strided_slice %268 {offsets = [8, 0], sizes = [8, 384], strides = [1, 1]} : vector<24x384xf32> to vector<8x384xf32>
    %271 = vector.extract_strided_slice %268 {offsets = [16, 0], sizes = [8, 384], strides = [1, 1]} : vector<24x384xf32> to vector<8x384xf32>
    %272 = arith.addf %20, %252 : vector<8x384xf32>
    %273 = arith.subf %272, %271 : vector<8x384xf32>
    %274 = arith.addf %269, %22 : vector<8x384xf32>
    %cst_89 = arith.constant 5.000000e-01 : f32
    %275 = vector.broadcast %cst_89 : f32 to vector<8x384xf32>
    %276 = arith.mulf %275, %274 : vector<8x384xf32>
    %277 = math.tanh %276 : vector<8x384xf32>
    %cst_90 = arith.constant 5.000000e-01 : f32
    %278 = vector.broadcast %cst_90 : f32 to vector<8x384xf32>
    %279 = arith.mulf %278, %277 : vector<8x384xf32>
    %cst_91 = arith.constant 5.000000e-01 : f32
    %280 = vector.broadcast %cst_91 : f32 to vector<8x384xf32>
    %281 = arith.addf %279, %280 : vector<8x384xf32>
    %282 = arith.addf %270, %23 : vector<8x384xf32>
    %cst_92 = arith.constant 5.000000e-01 : f32
    %283 = vector.broadcast %cst_92 : f32 to vector<8x384xf32>
    %284 = arith.mulf %283, %282 : vector<8x384xf32>
    %285 = math.tanh %284 : vector<8x384xf32>
    %cst_93 = arith.constant 5.000000e-01 : f32
    %286 = vector.broadcast %cst_93 : f32 to vector<8x384xf32>
    %287 = arith.mulf %286, %285 : vector<8x384xf32>
    %cst_94 = arith.constant 5.000000e-01 : f32
    %288 = vector.broadcast %cst_94 : f32 to vector<8x384xf32>
    %289 = arith.addf %287, %288 : vector<8x384xf32>
    %290 = arith.mulf %250, %281 : vector<8x384xf32>
    %291 = arith.mulf %273, %289 : vector<8x384xf32>
    %292 = arith.addf %290, %291 : vector<8x384xf32>
    %cst_95 = arith.constant 0.000000e+00 : f32
    %293 = vector.broadcast %cst_95 : f32 to vector<8x384xf32>
    %294 = arith.maximumf %292, %293 : vector<8x384xf32>
    %cst_96 = arith.constant dense<0.000000e+00> : vector<24x384xf32>
    %295 = tpu.matmul %26, %294, %cst_96 {dimension_numbers = #tpu.dot_dimension_numbers<[1], [0], [0], [1], [0, 0, 1, 1], [], []>} : vector<24x8xf32>, vector<8x384xf32>, vector<24x384xf32> -> vector<24x384xf32>
    %296 = vector.broadcast %27 : vector<24x1xf32> to vector<24x384xf32>
    %297 = arith.addf %295, %296 : vector<24x384xf32>
    %cst_97 = arith.constant 5.000000e-01 : f32
    %298 = vector.broadcast %cst_97 : f32 to vector<24x384xf32>
    %299 = arith.mulf %298, %297 : vector<24x384xf32>
    %cst_98 = arith.constant 4.471500e-02 : f32
    %300 = vector.broadcast %cst_98 : f32 to vector<24x384xf32>
    %301 = arith.mulf %300, %297 : vector<24x384xf32>
    %302 = arith.mulf %301, %297 : vector<24x384xf32>
    %303 = arith.mulf %302, %297 : vector<24x384xf32>
    %304 = arith.addf %297, %303 : vector<24x384xf32>
    %cst_99 = arith.constant 0.797884583 : f32
    %305 = vector.broadcast %cst_99 : f32 to vector<24x384xf32>
    %306 = arith.mulf %305, %304 : vector<24x384xf32>
    %307 = math.tanh %306 : vector<24x384xf32>
    %cst_100 = arith.constant 1.000000e+00 : f32
    %308 = vector.broadcast %cst_100 : f32 to vector<24x384xf32>
    %309 = arith.addf %308, %307 : vector<24x384xf32>
    %310 = arith.mulf %299, %309 : vector<24x384xf32>
    %311 = vector.extract_strided_slice %310 {offsets = [0, 0], sizes = [8, 384], strides = [1, 1]} : vector<24x384xf32> to vector<8x384xf32>
    %312 = vector.extract_strided_slice %310 {offsets = [8, 0], sizes = [8, 384], strides = [1, 1]} : vector<24x384xf32> to vector<8x384xf32>
    %313 = vector.extract_strided_slice %310 {offsets = [16, 0], sizes = [8, 384], strides = [1, 1]} : vector<24x384xf32> to vector<8x384xf32>
    %314 = arith.subf %252, %313 : vector<8x384xf32>
    %315 = arith.addf %21, %314 : vector<8x384xf32>
    %316 = arith.addf %311, %24 : vector<8x384xf32>
    %cst_101 = arith.constant 5.000000e-01 : f32
    %317 = vector.broadcast %cst_101 : f32 to vector<8x384xf32>
    %318 = arith.mulf %317, %316 : vector<8x384xf32>
    %319 = math.tanh %318 : vector<8x384xf32>
    %cst_102 = arith.constant 5.000000e-01 : f32
    %320 = vector.broadcast %cst_102 : f32 to vector<8x384xf32>
    %321 = arith.mulf %320, %319 : vector<8x384xf32>
    %cst_103 = arith.constant 5.000000e-01 : f32
    %322 = vector.broadcast %cst_103 : f32 to vector<8x384xf32>
    %323 = arith.addf %321, %322 : vector<8x384xf32>
    %324 = arith.addf %312, %25 : vector<8x384xf32>
    %cst_104 = arith.constant 5.000000e-01 : f32
    %325 = vector.broadcast %cst_104 : f32 to vector<8x384xf32>
    %326 = arith.mulf %325, %324 : vector<8x384xf32>
    %327 = math.tanh %326 : vector<8x384xf32>
    %cst_105 = arith.constant 5.000000e-01 : f32
    %328 = vector.broadcast %cst_105 : f32 to vector<8x384xf32>
    %329 = arith.mulf %328, %327 : vector<8x384xf32>
    %cst_106 = arith.constant 5.000000e-01 : f32
    %330 = vector.broadcast %cst_106 : f32 to vector<8x384xf32>
    %331 = arith.addf %329, %330 : vector<8x384xf32>
    %332 = arith.mulf %292, %323 : vector<8x384xf32>
    %333 = arith.mulf %315, %331 : vector<8x384xf32>
    %334 = arith.addf %332, %333 : vector<8x384xf32>
    %cst_107 = arith.constant 0.000000e+00 : f32
    %335 = vector.broadcast %cst_107 : f32 to vector<8x384xf32>
    %336 = arith.maximumf %334, %335 : vector<8x384xf32>
    %337 = tpu.iota {dimensions = array<i32: 1>} : vector<8x384xi32>
    %c384_i32 = arith.constant 384 : i32
    %338 = arith.muli %arg1, %c384_i32 : i32
    %339 = vector.broadcast %338 : i32 to vector<8x384xi32>
    %340 = arith.addi %337, %339 : vector<8x384xi32>
    %c256_i32 = arith.constant 256 : i32
    %341 = vector.broadcast %c256_i32 : i32 to vector<8x384xi32>
    %342 = arith.cmpi slt, %340, %341 : vector<8x384xi32>
    %cst_108 = arith.constant 0.000000e+00 : f32
    %343 = vector.broadcast %cst_108 : f32 to vector<8x384xf32>
    %344 = arith.select %342, %336, %343 : vector<8x384xi1>, vector<8x384xf32>
    %c0_109 = arith.constant 0 : index
    %c0_110 = arith.constant 0 : index
    %c0_111 = arith.constant 0 : index
    %345 = vector.load %arg9[%c0_109, %c0_110, %c0_111] : memref<1x8x384xf32, #tpu.memory_space<vmem>>, vector<1x8x384xf32>
    %346 = vector.shape_cast %345 : vector<1x8x384xf32> to vector<8x384xf32>
    %347 = vector.shape_cast %344 : vector<8x384xf32> to vector<1x8x384xf32>
    tpu.vector_store %arg9[%c0_109, %c0_110, %c0_111], %347 {strides = array<i32>} : memref<1x8x384xf32, #tpu.memory_space<vmem>>, vector<1x8x384xf32>,
    return
  }
  func.func @transform_0(%arg0: i32, %arg1: i32) -> (i32, i32, i32) {
    %c0_i32 = arith.constant 0 : i32
    %c0_i32_0 = arith.constant 0 : i32
    return %arg0, %c0_i32, %arg1 : i32, i32, i32
  }
  func.func @transform_1(%arg0: i32, %arg1: i32) -> (i32, i32) {
    %c0_i32 = arith.constant 0 : i32
    %c0_i32_0 = arith.constant 0 : i32
    %c0_i32_1 = arith.constant 0 : i32
    return %c0_i32, %c0_i32_0 : i32, i32
  }
  func.func @transform_2(%arg0: i32, %arg1: i32) -> (i32, i32) {
    %c0_i32 = arith.constant 0 : i32
    %c0_i32_0 = arith.constant 0 : i32
    %c0_i32_1 = arith.constant 0 : i32
    return %c0_i32, %c0_i32_0 : i32, i32
  }
  func.func @transform_3(%arg0: i32, %arg1: i32) -> (i32, i32) {
    %c0_i32 = arith.constant 0 : i32
    %c0_i32_0 = arith.constant 0 : i32
    %c0_i32_1 = arith.constant 0 : i32
    return %c0_i32, %c0_i32_0 : i32, i32
  }
  func.func @transform_4(%arg0: i32, %arg1: i32) -> (i32, i32) {
    %c0_i32 = arith.constant 0 : i32
    %c0_i32_0 = arith.constant 0 : i32
    %c0_i32_1 = arith.constant 0 : i32
    return %c0_i32, %c0_i32_0 : i32, i32
  }
  func.func @transform_5(%arg0: i32, %arg1: i32) -> (i32, i32) {
    %c0_i32 = arith.constant 0 : i32
    %c0_i32_0 = arith.constant 0 : i32
    %c0_i32_1 = arith.constant 0 : i32
    return %c0_i32, %c0_i32_0 : i32, i32
  }
  func.func @transform_6(%arg0: i32, %arg1: i32) -> (i32, i32) {
    %c0_i32 = arith.constant 0 : i32
    %c0_i32_0 = arith.constant 0 : i32
    %c0_i32_1 = arith.constant 0 : i32
    return %c0_i32, %c0_i32_0 : i32, i32
  }
  func.func @transform_7(%arg0: i32, %arg1: i32) -> (i32, i32, i32) {
    %c0_i32 = arith.constant 0 : i32
    %c0_i32_0 = arith.constant 0 : i32
    return %arg0, %c0_i32, %arg1 : i32, i32, i32
  }
}

module attributes {stable_mosaic.version = 11 : i64} {
  func.func @kernel(%arg0: i32, %arg1: i32, %arg2: memref<1x8x128xf32, #tpu.memory_space<vmem>>, %arg3: memref<1x8x128xf32, #tpu.memory_space<vmem>>, %arg4: memref<32x72xf32, #tpu.memory_space<vmem>>, %arg5: memref<32x1xf32, #tpu.memory_space<vmem>>, %arg6: memref<32x32xf32, #tpu.memory_space<vmem>>, %arg7: memref<32x1xf32, #tpu.memory_space<vmem>>, %arg8: memref<32x1xf32, #tpu.memory_space<vmem>>, %arg9: memref<1x1xf32, #tpu.memory_space<vmem>>, %arg10: memref<1x1x128xf32, #tpu.memory_space<vmem>>, %arg11: memref<8x256xf32, #tpu.memory_space<vmem>>, %arg12: memref<72x128xf32, #tpu.memory_space<vmem>>) attributes {dimension_semantics = [#tpu.dimension_semantics<parallel>, #tpu.dimension_semantics<parallel>], iteration_bounds = array<i64: 2, 2>, scalar_prefetch = 0 : i64, scratch_operands = 2 : i64, tpu.core_type = #tpu.core_type<tc>, window_params = [{transform_indices = @transform_0, window_bounds = array<i64: 1, 8, 128>}, {transform_indices = @transform_1, window_bounds = array<i64: 1, 8, 128>}, {pipeline_mode = #tpu.pipeline_mode<synchronous>, transform_indices = @transform_2, window_bounds = array<i64: 32, 72>}, {pipeline_mode = #tpu.pipeline_mode<synchronous>, transform_indices = @transform_3, window_bounds = array<i64: 32, 1>}, {pipeline_mode = #tpu.pipeline_mode<synchronous>, transform_indices = @transform_4, window_bounds = array<i64: 32, 32>}, {pipeline_mode = #tpu.pipeline_mode<synchronous>, transform_indices = @transform_5, window_bounds = array<i64: 32, 1>}, {pipeline_mode = #tpu.pipeline_mode<synchronous>, transform_indices = @transform_6, window_bounds = array<i64: 32, 1>}, {pipeline_mode = #tpu.pipeline_mode<synchronous>, transform_indices = @transform_7, window_bounds = array<i64: 1, 1>}, {transform_indices = @transform_8, window_bounds = array<i64: 1, 1, 128>}]} {
    %c0 = arith.constant 0 : index
    %c0_0 = arith.constant 0 : index
    %c0_1 = arith.constant 0 : index
    %0 = vector.load %arg2[%c0, %c0_0, %c0_1] : memref<1x8x128xf32, #tpu.memory_space<vmem>>, vector<1x8x128xf32>
    %1 = vector.shape_cast %0 : vector<1x8x128xf32> to vector<8x128xf32>
    %c0_2 = arith.constant 0 : index
    %c0_3 = arith.constant 0 : index
    %2 = vector.load %arg11[%c0_2, %c0_3] : memref<8x256xf32, #tpu.memory_space<vmem>>, vector<8x128xf32>
    tpu.vector_store %arg11[%c0_2, %c0_3], %1 {strides = array<i32>} : memref<8x256xf32, #tpu.memory_space<vmem>>, vector<8x128xf32>,
    %c0_4 = arith.constant 0 : index
    %c0_5 = arith.constant 0 : index
    %c0_6 = arith.constant 0 : index
    %3 = vector.load %arg3[%c0_4, %c0_5, %c0_6] : memref<1x8x128xf32, #tpu.memory_space<vmem>>, vector<1x8x128xf32>
    %4 = vector.shape_cast %3 : vector<1x8x128xf32> to vector<8x128xf32>
    %c0_7 = arith.constant 0 : index
    %c128 = arith.constant 128 : index
    %5 = vector.load %arg11[%c0_7, %c128] : memref<8x256xf32, #tpu.memory_space<vmem>>, vector<8x128xf32>
    tpu.vector_store %arg11[%c0_7, %c128], %4 {strides = array<i32>} : memref<8x256xf32, #tpu.memory_space<vmem>>, vector<8x128xf32>,
    %c0_8 = arith.constant 0 : index
    %c0_9 = arith.constant 0 : index
    %6 = vector.load %arg11[%c0_8, %c0_9] : memref<8x256xf32, #tpu.memory_space<vmem>>, vector<8x128xf32>
    %c0_10 = arith.constant 0 : index
    %c0_11 = arith.constant 0 : index
    %7 = vector.load %arg12[%c0_10, %c0_11] : memref<72x128xf32, #tpu.memory_space<vmem>>, vector<8x128xf32>
    tpu.vector_store %arg12[%c0_10, %c0_11], %6 {strides = array<i32>} : memref<72x128xf32, #tpu.memory_space<vmem>>, vector<8x128xf32>,
    %c0_12 = arith.constant 0 : index
    %c1 = arith.constant 1 : index
    %8 = vector.load %arg11[%c0_12, %c1] : memref<8x256xf32, #tpu.memory_space<vmem>>, vector<8x128xf32>
    %c8 = arith.constant 8 : index
    %c0_13 = arith.constant 0 : index
    %9 = vector.load %arg12[%c8, %c0_13] : memref<72x128xf32, #tpu.memory_space<vmem>>, vector<8x128xf32>
    tpu.vector_store %arg12[%c8, %c0_13], %8 {strides = array<i32>} : memref<72x128xf32, #tpu.memory_space<vmem>>, vector<8x128xf32>,
    %c0_14 = arith.constant 0 : index
    %c2 = arith.constant 2 : index
    %10 = vector.load %arg11[%c0_14, %c2] : memref<8x256xf32, #tpu.memory_space<vmem>>, vector<8x128xf32>
    %c16 = arith.constant 16 : index
    %c0_15 = arith.constant 0 : index
    %11 = vector.load %arg12[%c16, %c0_15] : memref<72x128xf32, #tpu.memory_space<vmem>>, vector<8x128xf32>
    tpu.vector_store %arg12[%c16, %c0_15], %10 {strides = array<i32>} : memref<72x128xf32, #tpu.memory_space<vmem>>, vector<8x128xf32>,
    %c0_16 = arith.constant 0 : index
    %c16_17 = arith.constant 16 : index
    %12 = vector.load %arg11[%c0_16, %c16_17] : memref<8x256xf32, #tpu.memory_space<vmem>>, vector<8x128xf32>
    %c24 = arith.constant 24 : index
    %c0_18 = arith.constant 0 : index
    %13 = vector.load %arg12[%c24, %c0_18] : memref<72x128xf32, #tpu.memory_space<vmem>>, vector<8x128xf32>
    tpu.vector_store %arg12[%c24, %c0_18], %12 {strides = array<i32>} : memref<72x128xf32, #tpu.memory_space<vmem>>, vector<8x128xf32>,
    %c0_19 = arith.constant 0 : index
    %c17 = arith.constant 17 : index
    %14 = vector.load %arg11[%c0_19, %c17] : memref<8x256xf32, #tpu.memory_space<vmem>>, vector<8x128xf32>
    %c32 = arith.constant 32 : index
    %c0_20 = arith.constant 0 : index
    %15 = vector.load %arg12[%c32, %c0_20] : memref<72x128xf32, #tpu.memory_space<vmem>>, vector<8x128xf32>
    tpu.vector_store %arg12[%c32, %c0_20], %14 {strides = array<i32>} : memref<72x128xf32, #tpu.memory_space<vmem>>, vector<8x128xf32>,
    %c0_21 = arith.constant 0 : index
    %c18 = arith.constant 18 : index
    %16 = vector.load %arg11[%c0_21, %c18] : memref<8x256xf32, #tpu.memory_space<vmem>>, vector<8x128xf32>
    %c40 = arith.constant 40 : index
    %c0_22 = arith.constant 0 : index
    %17 = vector.load %arg12[%c40, %c0_22] : memref<72x128xf32, #tpu.memory_space<vmem>>, vector<8x128xf32>
    tpu.vector_store %arg12[%c40, %c0_22], %16 {strides = array<i32>} : memref<72x128xf32, #tpu.memory_space<vmem>>, vector<8x128xf32>,
    %c0_23 = arith.constant 0 : index
    %c32_24 = arith.constant 32 : index
    %18 = vector.load %arg11[%c0_23, %c32_24] : memref<8x256xf32, #tpu.memory_space<vmem>>, vector<8x128xf32>
    %c48 = arith.constant 48 : index
    %c0_25 = arith.constant 0 : index
    %19 = vector.load %arg12[%c48, %c0_25] : memref<72x128xf32, #tpu.memory_space<vmem>>, vector<8x128xf32>
    tpu.vector_store %arg12[%c48, %c0_25], %18 {strides = array<i32>} : memref<72x128xf32, #tpu.memory_space<vmem>>, vector<8x128xf32>,
    %c0_26 = arith.constant 0 : index
    %c33 = arith.constant 33 : index
    %20 = vector.load %arg11[%c0_26, %c33] : memref<8x256xf32, #tpu.memory_space<vmem>>, vector<8x128xf32>
    %c56 = arith.constant 56 : index
    %c0_27 = arith.constant 0 : index
    %21 = vector.load %arg12[%c56, %c0_27] : memref<72x128xf32, #tpu.memory_space<vmem>>, vector<8x128xf32>
    tpu.vector_store %arg12[%c56, %c0_27], %20 {strides = array<i32>} : memref<72x128xf32, #tpu.memory_space<vmem>>, vector<8x128xf32>,
    %c0_28 = arith.constant 0 : index
    %c34 = arith.constant 34 : index
    %22 = vector.load %arg11[%c0_28, %c34] : memref<8x256xf32, #tpu.memory_space<vmem>>, vector<8x128xf32>
    %c64 = arith.constant 64 : index
    %c0_29 = arith.constant 0 : index
    %23 = vector.load %arg12[%c64, %c0_29] : memref<72x128xf32, #tpu.memory_space<vmem>>, vector<8x128xf32>
    tpu.vector_store %arg12[%c64, %c0_29], %22 {strides = array<i32>} : memref<72x128xf32, #tpu.memory_space<vmem>>, vector<8x128xf32>,
    %c0_30 = arith.constant 0 : index
    %c0_31 = arith.constant 0 : index
    %24 = vector.load %arg4[%c0_30, %c0_31] : memref<32x72xf32, #tpu.memory_space<vmem>>, vector<32x72xf32>
    %c0_32 = arith.constant 0 : index
    %c0_33 = arith.constant 0 : index
    %25 = vector.load %arg12[%c0_32, %c0_33] : memref<72x128xf32, #tpu.memory_space<vmem>>, vector<72x128xf32>
    %cst = arith.constant dense<0.000000e+00> : vector<32x128xf32>
    %26 = tpu.matmul %24, %25, %cst {dimension_numbers = #tpu.dot_dimension_numbers<[1], [0], [0], [1], [0, 0, 1, 1], [], []>} : vector<32x72xf32>, vector<72x128xf32>, vector<32x128xf32> -> vector<32x128xf32>
    %c0_34 = arith.constant 0 : index
    %c0_35 = arith.constant 0 : index
    %27 = vector.load %arg5[%c0_34, %c0_35] : memref<32x1xf32, #tpu.memory_space<vmem>>, vector<32x1xf32>
    %28 = vector.broadcast %27 : vector<32x1xf32> to vector<32x128xf32>
    %29 = arith.addf %26, %28 : vector<32x128xf32>
    %cst_36 = arith.constant 5.000000e-01 : f32
    %30 = vector.broadcast %cst_36 : f32 to vector<32x128xf32>
    %31 = arith.mulf %30, %29 : vector<32x128xf32>
    %cst_37 = arith.constant 4.471500e-02 : f32
    %32 = vector.broadcast %cst_37 : f32 to vector<32x128xf32>
    %33 = arith.mulf %32, %29 : vector<32x128xf32>
    %34 = arith.mulf %33, %29 : vector<32x128xf32>
    %35 = arith.mulf %34, %29 : vector<32x128xf32>
    %36 = arith.addf %29, %35 : vector<32x128xf32>
    %cst_38 = arith.constant 0.797884583 : f32
    %37 = vector.broadcast %cst_38 : f32 to vector<32x128xf32>
    %38 = arith.mulf %37, %36 : vector<32x128xf32>
    %39 = math.tanh %38 : vector<32x128xf32>
    %cst_39 = arith.constant 1.000000e+00 : f32
    %40 = vector.broadcast %cst_39 : f32 to vector<32x128xf32>
    %41 = arith.addf %40, %39 : vector<32x128xf32>
    %42 = arith.mulf %31, %41 : vector<32x128xf32>
    %c0_40 = arith.constant 0 : index
    %c0_41 = arith.constant 0 : index
    %43 = vector.load %arg6[%c0_40, %c0_41] : memref<32x32xf32, #tpu.memory_space<vmem>>, vector<32x32xf32>
    %cst_42 = arith.constant dense<0.000000e+00> : vector<32x128xf32>
    %44 = tpu.matmul %43, %42, %cst_42 {dimension_numbers = #tpu.dot_dimension_numbers<[1], [0], [0], [1], [0, 0, 1, 1], [], []>} : vector<32x32xf32>, vector<32x128xf32>, vector<32x128xf32> -> vector<32x128xf32>
    %c0_43 = arith.constant 0 : index
    %c0_44 = arith.constant 0 : index
    %45 = vector.load %arg7[%c0_43, %c0_44] : memref<32x1xf32, #tpu.memory_space<vmem>>, vector<32x1xf32>
    %46 = vector.broadcast %45 : vector<32x1xf32> to vector<32x128xf32>
    %47 = arith.addf %44, %46 : vector<32x128xf32>
    %cst_45 = arith.constant 5.000000e-01 : f32
    %48 = vector.broadcast %cst_45 : f32 to vector<32x128xf32>
    %49 = arith.mulf %48, %47 : vector<32x128xf32>
    %cst_46 = arith.constant 4.471500e-02 : f32
    %50 = vector.broadcast %cst_46 : f32 to vector<32x128xf32>
    %51 = arith.mulf %50, %47 : vector<32x128xf32>
    %52 = arith.mulf %51, %47 : vector<32x128xf32>
    %53 = arith.mulf %52, %47 : vector<32x128xf32>
    %54 = arith.addf %47, %53 : vector<32x128xf32>
    %cst_47 = arith.constant 0.797884583 : f32
    %55 = vector.broadcast %cst_47 : f32 to vector<32x128xf32>
    %56 = arith.mulf %55, %54 : vector<32x128xf32>
    %57 = math.tanh %56 : vector<32x128xf32>
    %cst_48 = arith.constant 1.000000e+00 : f32
    %58 = vector.broadcast %cst_48 : f32 to vector<32x128xf32>
    %59 = arith.addf %58, %57 : vector<32x128xf32>
    %60 = arith.mulf %49, %59 : vector<32x128xf32>
    %c0_49 = arith.constant 0 : index
    %c0_50 = arith.constant 0 : index
    %61 = vector.load %arg8[%c0_49, %c0_50] : memref<32x1xf32, #tpu.memory_space<vmem>>, vector<32x1xf32>
    %62 = vector.broadcast %61 : vector<32x1xf32> to vector<32x128xf32>
    %63 = arith.mulf %60, %62 : vector<32x128xf32>
    %cst_51 = arith.constant dense<0.000000e+00> : vector<128xf32>
    %64 = vector.multi_reduction <add>, %63, %cst_51 [0] : vector<32x128xf32> to vector<128xf32>
    %65 = vector.shape_cast %64 : vector<128xf32> to vector<1x128xf32>
    %c0_52 = arith.constant 0 : index
    %c0_53 = arith.constant 0 : index
    %66 = vector.load %arg9[%c0_52, %c0_53] : memref<1x1xf32, #tpu.memory_space<vmem>>, vector<1x1xf32>
    %67 = vector.broadcast %66 : vector<1x1xf32> to vector<1x128xf32>
    %68 = arith.addf %65, %67 : vector<1x128xf32>
    %c0_54 = arith.constant 0 : index
    %c0_55 = arith.constant 0 : index
    %c0_56 = arith.constant 0 : index
    %69 = vector.load %arg10[%c0_54, %c0_55, %c0_56] : memref<1x1x128xf32, #tpu.memory_space<vmem>>, vector<1x1x128xf32>
    %70 = vector.shape_cast %69 : vector<1x1x128xf32> to vector<1x128xf32>
    %71 = vector.shape_cast %68 : vector<1x128xf32> to vector<1x1x128xf32>
    tpu.vector_store %arg10[%c0_54, %c0_55, %c0_56], %71 {strides = array<i32>} : memref<1x1x128xf32, #tpu.memory_space<vmem>>, vector<1x1x128xf32>,
    return
  }
  func.func @transform_0(%arg0: i32, %arg1: i32) -> (i32, i32, i32) {
    %c0_i32 = arith.constant 0 : i32
    %c0_i32_0 = arith.constant 0 : i32
    return %arg0, %c0_i32, %arg1 : i32, i32, i32
  }
  func.func @transform_1(%arg0: i32, %arg1: i32) -> (i32, i32, i32) {
    %c1_i32 = arith.constant 1 : i32
    %0 = arith.addi %arg1, %c1_i32 : i32
    %c1_i32_0 = arith.constant 1 : i32
    %1 = arith.muli %0, %c1_i32_0 : i32
    %c0_i32 = arith.constant 0 : i32
    %c0_i32_1 = arith.constant 0 : i32
    return %arg0, %c0_i32, %1 : i32, i32, i32
  }
  func.func @transform_2(%arg0: i32, %arg1: i32) -> (i32, i32) {
    %c0_i32 = arith.constant 0 : i32
    %c0_i32_0 = arith.constant 0 : i32
    %c0_i32_1 = arith.constant 0 : i32
    return %c0_i32, %c0_i32_0 : i32, i32
  }
  func.func @transform_3(%arg0: i32, %arg1: i32) -> (i32, i32) {
    %c0_i32 = arith.constant 0 : i32
    %c0_i32_0 = arith.constant 0 : i32
    %c0_i32_1 = arith.constant 0 : i32
    return %c0_i32, %c0_i32_0 : i32, i32
  }
  func.func @transform_4(%arg0: i32, %arg1: i32) -> (i32, i32) {
    %c0_i32 = arith.constant 0 : i32
    %c0_i32_0 = arith.constant 0 : i32
    %c0_i32_1 = arith.constant 0 : i32
    return %c0_i32, %c0_i32_0 : i32, i32
  }
  func.func @transform_5(%arg0: i32, %arg1: i32) -> (i32, i32) {
    %c0_i32 = arith.constant 0 : i32
    %c0_i32_0 = arith.constant 0 : i32
    %c0_i32_1 = arith.constant 0 : i32
    return %c0_i32, %c0_i32_0 : i32, i32
  }
  func.func @transform_6(%arg0: i32, %arg1: i32) -> (i32, i32) {
    %c0_i32 = arith.constant 0 : i32
    %c0_i32_0 = arith.constant 0 : i32
    %c0_i32_1 = arith.constant 0 : i32
    return %c0_i32, %c0_i32_0 : i32, i32
  }
  func.func @transform_7(%arg0: i32, %arg1: i32) -> (i32, i32) {
    %c0_i32 = arith.constant 0 : i32
    %c0_i32_0 = arith.constant 0 : i32
    %c0_i32_1 = arith.constant 0 : i32
    return %c0_i32, %c0_i32_0 : i32, i32
  }
  func.func @transform_8(%arg0: i32, %arg1: i32) -> (i32, i32, i32) {
    %c0_i32 = arith.constant 0 : i32
    %c0_i32_0 = arith.constant 0 : i32
    return %arg0, %c0_i32, %arg1 : i32, i32, i32
  }
}

</mosaic_0001>

<bundles_post_ra>
// kernel: squeeze.1
= control target key start
LH: loop header
LB: loop body
LE: loop exit
PB: predicated region body
PF: predicated region fallthrough
CT: control target
= control target key end

     0   :  { %s77_s10 = smov 80   ;;  %vm11_vm0 = vcmask 130048   ;;  %s78_s15 = smov 96   ;;  %s135_s0 = inlined_call_operand.vmem [shape: f32[2,224], index: 0, kind: input, shape index: {}]   ;;  %s136_s1 = inlined_call_operand.vmem [shape: f32[2,14,16], index: 1, kind: output, shape index: {}]  }
   0x1   :  { %v60_v0 = vld [vmem:[%s135_s0 + $0x2] sm:$0x3]  ;;  %v8_v1 = vld [vmem:[%s135_s0] sm:$0x3]  ;;  %s76_s0 = smov 112   ;;  %s79_s16 = smov 64  }
   0x2   :  { %7 = vst [vmem:[#allocation0 + $0x8] sm:$0x3] %v60_v0  ;;  %9 = vst [vmem:[#allocation0] sm:$0x3] %v8_v1  ;;  %s80_s17 = smov 48   ;;  %s81_s18 = smov 32  }
   0x3   :  { %s82_s19 = smov 16  }
   0x9   :  { %v18_v2 = vld.sshfl [vmem:[#allocation0] sm:$0xff pattern:$0x99999180]  }
   0xa   :  { %19 = vrot.lane.b32.xlu0 %v18_v2, %s76_s0  ;;  %31 = vrot.lane.b32.xlu1 %v18_v2, %s77_s10  ;;  %v10_v3 = vld [vmem:[#allocation0] sm:$0x3]   ;;  %v14_v4 = vld [vmem:[#allocation0 + $0x8] sm:$0x3]  }
   0xb   :  { %12 = vst.msk [vmem:[%s136_s1] ss:$16 sm:$0x3] %vm11_vm0, %v10_v3   ;;  %61 = vst.msk [vmem:[%s136_s1 + $0x8] ss:$16 sm:$0x3] %vm11_vm0, %v14_v4  }
   0xc   :  { %v48_v5 = vld [vmem:[#allocation0] sm:$0x3]  }
   0xd   :  { %v54_v6 = vld [vmem:[#allocation0] sm:$0x3]  }
   0xe   :  { %25 = vrot.lane.b32.xlu0 %v18_v2, %s78_s15  ;;  %37 = vrot.lane.b32.xlu1 %v18_v2, %s79_s16 }
  0x12   :  { %43 = vrot.lane.b32.xlu0 %v18_v2, %s80_s17  ;;  %49 = vrot.lane.b32.xlu1 %v48_v5, %s81_s18 }
  0x16   :  { %55 = vrot.lane.b32.xlu0 %v54_v6, %s82_s19 }
  0x7c   :  { %v20_v7 = vpop.permute.xlu0 %19   ;;  %v32_v8 = vpop.permute.xlu1 %31  }
  0x7d   :  { %62 = vst.msk [vmem:[%s136_s1 + $0x1] ss:$8 sm:$0xf] %vm11_vm0, %v20_v7   ;;  %64 = vst.msk [vmem:[%s136_s1 + $0x3] ss:$8 sm:$0xf] %vm11_vm0, %v32_v8  }
  0x80   :  { %v26_v9 = vpop.permute.xlu0 %25   ;;  %v38_v10 = vpop.permute.xlu1 %37  }
  0x81   :  { %63 = vst.msk [vmem:[%s136_s1 + $0x2] ss:$8 sm:$0xf] %vm11_vm0, %v26_v9   ;;  %65 = vst.msk [vmem:[%s136_s1 + $0x4] ss:$8 sm:$0xf] %vm11_vm0, %v38_v10  }
  0x84   :  { %v44_v11 = vpop.permute.xlu0 %43   ;;  %v50_v12 = vpop.permute.xlu1 %49  }
  0x85   :  { %66 = vst.msk [vmem:[%s136_s1 + $0x5] ss:$8 sm:$0xf] %vm11_vm0, %v44_v11   ;;  %67 = vst.msk [vmem:[%s136_s1 + $0x6] ss:$16 sm:$0x3] %vm11_vm0, %v50_v12  }
  0x88   :  { %v56_v13 = vpop.permute.xlu0 %55  }
  0x89   :  { %68 = vst.msk [vmem:[%s136_s1 + $0x7] ss:$16 sm:$0x3] %vm11_vm0, %v56_v13  }

// kernel: qencoder_forward.3
= control target key start
LH: loop header
LB: loop body
LE: loop exit
PB: predicated region body
PF: predicated region fallthrough
CT: control target
= control target key end

     0   :  { %s1258_s29 = smov 0   ;;  %s1260_s30 = smov 0   ;;  %s1396_s0 = inlined_call_operand.vmem [shape: f32[2,8,384], index: 0, kind: input, shape index: {}, may-alias: {0,1}]   ;;  %s1397_s1 = inlined_call_operand.vmem [shape: f32[2,8,384], index: 1, kind: input, shape index: {}, may-alias: {0,1}]   ;;  %s1398_s2 = inlined_call_operand.vmem [shape: f32[32,72], index: 2, kind: input, shape index: {}]   ;;  %s1399_s3 = inlined_call_operand.vmem [shape: f32[32,1], index: 3, kind: input, shape index: {}]   ;;  %s1400_s4 = inlined_call_operand.vmem [shape: f32[32,32], index: 4, kind: input, shape index: {}]   ;;  %s1401_s5 = inlined_call_operand.vmem [shape: f32[32,1], index: 5, kind: input, shape index: {}]   ;;  %s1402_s6 = inlined_call_operand.vmem [shape: f32[32,1], index: 6, kind: input, shape index: {}]   ;;  %s1403_s7 = inlined_call_operand.<no memory space> [shape: f32[1,1], index: 7, kind: input, shape index: {}]   ;;  %s1404_s8 = inlined_call_operand.vmem [shape: f32[2,1,256], index: 8, kind: output, shape index: {}]  }
   0x1   :  { %v13_v0 = vstv %s1403_s7  ;;  %s1262_s9 = smov 0   ;;  %s1264_s10 = smov 0  }
   0x2   :  { %14 = vst [vmem:[#allocation4] sm:$0x1] %v13_v0  ;;  %s1266_s11 = smov 0  }
   0x3 LB: > { %s29_s7 = sadd.s32 1, %s1191_s9  ;;  %s32_s12 = sadd.s32 1, %s1195_s10  ;;  %s1199_s11 = sphi %s1266_s11, %s20_s11   ;;  %s1195_s10 = sphi %s1264_s10, %s1408_s10   ;;  %s1191_s9 = sphi %s1262_s9, %s1407_s9   ;;  %s1187_s30 = sphi %s1260_s30, %s1406_s30   ;;  %s1183_s29 = sphi %s1258_s29, %s1405_s29  }
   0x4   : > { %p30_p0 = scmp.ge.s32.totalorder %s29_s7, 2  ;;  %p961_p1 = scmp.ge.s32.totalorder %s1199_s11, 1 }
   0x5   : > { %p302_p2 = scmp.lt.s32.totalorder %s1199_s11, 5 }
   0x6   : > { %s1410_s7 = smov (%p30_p0, %s29_s7), 0  ;;  %s1412_s12 = smov (!%p30_p0, %s32_s12), %s1195_s10 }
   0x7   : > { %p303_p3 = pnand %p961_p1, %p302_p2  ;;  %p34_p4 = scmp.ge.s32.totalorder %s1412_s12, 2 }
   0x8   : > { %p350_p5 = scmp.lt.s32.totalorder (!%p303_p3), %s1187_s30, 1  ;;  %p352_p6 = scmp.lt.s32.totalorder (!%p303_p3), %s1183_s29, 2  ;;  %v477_v4 = vld [vmem:[%s1398_s2] sm:$0xff] (!%p303_p3)  ;;  %vm514_vm0 = vcmask (!%p303_p3), 588800   ;;  %v1209_v6 = vmov (!%p303_p3), 0   ;;  %v492_v7 = vld [vmem:[%s1399_s3 + $0x10] sm:$0xff] (!%p303_p3) }
   0x9   : > { %s1414_s12 = smov (%p34_p4, %s1412_s12), 0  ;;  %306 = sbr.rel (%p303_p3) target bundleno = 680 (0x2a8), region = 52 }
   0xa   : > { %s358_s13 = sadd.s32 (!%p303_p3), 1, %s1183_s29  ;;  %s1201_s26 = smov (!%p303_p3), 127   ;;  %1014 = vmatprep.mubr.msk.f32.mxu0 (!%p303_p3), %vm514_vm0, %v477_v4  ;;  %v490_v5 = vld [vmem:[%s1399_s3] sm:$0xff] (!%p303_p3)  ;;  %1143 = vset.pattern.permute.xlu1 (!%p303_p3), %v1209_v6  ;;  %v491_v8 = vld [vmem:[%s1399_s3 + $0x8] sm:$0xff] (!%p303_p3)  ;;  %v493_v9 = vld [vmem:[%s1399_s3 + $0x18] sm:$0xff] (!%p303_p3)  ;;  %vm389_vm1 = vcmask (!%p303_p3), 1039360  }
   0xb   : > { %p361_p7 = scmp.lt.s32.totalorder (!%p303_p3), %s358_s13, 2  ;;  %s1202_s27 = smov (!%p303_p3), 112   ;;  %1144 = vset.pattern.permute.xlu0 (!%p303_p3), %v1209_v6  ;;  %v652_v10 = vld [vmem:[%s1401_s5] sm:$0xff] (!%p303_p3)  ;;  %v653_v11 = vld [vmem:[%s1401_s5 + $0x8] sm:$0xff] (!%p303_p3)  ;;  %v654_v12 = vld [vmem:[%s1401_s5 + $0x10] sm:$0xff] (!%p303_p3)  ;;  %vm413_vm2 = vcmask (!%p303_p3), 916480  }
   0xc   : > { %s1203_s28 = smov (!%p303_p3), 126   ;;  %s1207_s18 = smov (!%p303_p3), 95   ;;  %v655_v13 = vld [vmem:[%s1401_s5 + $0x18] sm:$0xff] (!%p303_p3)  ;;  %v810_v14 = vld [vmem:[%s1402_s6] sm:$0xff] (!%p303_p3)  ;;  %v811_v15 = vld [vmem:[%s1402_s6 + $0x8] sm:$0xff] (!%p303_p3)  ;;  %vm401_vm3 = vcmask (!%p303_p3), 1031168  }
   0xd   : > { %s1208_s19 = smov (!%p303_p3), 94   ;;  %v812_v16 = vld [vmem:[%s1402_s6 + $0x10] sm:$0xff] (!%p303_p3)  ;;  %v813_v17 = vld [vmem:[%s1402_s6 + $0x18] sm:$0xff] (!%p303_p3)  ;;  %v847_v18 = vld [vmem:[#allocation4] sm:$0x1] (!%p303_p3)  ;;  %vm425_vm4 = vcmask (!%p303_p3), 908288  }
   0xe   : > { %vm437_vm5 = vcmask (!%p303_p3), 900096   ;;  %vm449_vm6 = vcmask (!%p303_p3), 785408   ;;  %vm461_vm7 = vcmask (!%p303_p3), 777216   ;;  %vm473_vm8 = vcmask (!%p303_p3), 769024   ;;  %v478_v54 = vld [vmem:[%s1398_s2 + $0x8] sm:$0xff] (!%p303_p3)  ;;  %v479_v55 = vld [vmem:[%s1398_s2 + $0x10] sm:$0xff] (!%p303_p3) }
   0xf   : > { %v480_v56 = vld [vmem:[%s1398_s2 + $0x18] sm:$0xff] (!%p303_p3)  ;;  %v648_v57 = vld [vmem:[%s1400_s4] sm:$0xff] (!%p303_p3)  ;;  %vm676_vm9 = vcmask (!%p303_p3), 261120   ;;  %p370_p8 = scmp.lt.s32.totalorder (!%p303_p3), %s1183_s29, 1 }
  0x10   : > { %s1416_s30 = smov (!%p350_p5, %s1187_s30), 1  ;;  %s1418_s13 = smov (!%p361_p7, %s358_s13), 2  ;;  %1028 = vmatprep.mubr.msk.f32.mxu1 %vm676_vm9, %v648_v57 }
  0x11   : > { %s353_s14 = scalar_select %p352_p6, %s1183_s29, 2 }
  0x12   : > { %s1058_s15 = smul.u32 3, %s1416_s30  ;;  %s1420_s29 = smov (!%p370_p8, %s1183_s29), 1 }
  0x14   : > { %s355_s16 = sadd.s32 %s1058_s15, %s353_s14  ;;  %s364_s21 = sadd.s32 %s1058_s15, %s1418_s13 }
  0x15   : > { %s962_s17 = sshll.u32 %s355_s16, 3  ;;  %s963_s22 = sshll.u32 %s364_s21, 3 }
  0x16   : > { %s357_s20 = scalar_lea.vmem %s1396_s0, %s962_s17  ;;  %s366_s25 = scalar_lea.vmem %s1397_s1, %s963_s22 }
  0x17   : > { %v1299_v1 = vld [vmem:[%s357_s20] sm:$0xff]  ;;  %s1204_s14 = smov 111   ;;  %s1205_s16 = smov 110  }
  0x18   : > { %v377_v2 = vld [vmem:[%s366_s25] sm:$0xff]  ;;  %s1206_s13 = smov 96  }
  0x19   : > { %v1108_v3 = vpack.i.bf16 %v377_v2, %v1299_v1 }
  0x1b   : > { %1109 = vrot.lane.b32.xlu0 %v1108_v3, %s1201_s26  ;;  %1119 = vrot.lane.b32.xlu1 %v1108_v3, %s1202_s27  ;;  %s964_s26 = sshll.u32 %s1416_s30, 1 }
  0x1c   : > { %s373_s27 = sadd.s32 %s964_s26, %s1420_s29 }
  0x1f   : > { %1114 = vrot.lane.b32.xlu0 %v1108_v3, %s1203_s28  ;;  %1124 = vrot.lane.b32.xlu1 %v1108_v3, %s1204_s14 }
  0x23   : > { %1129 = vrot.lane.b32.xlu0 %v1108_v3, %s1205_s16  ;;  %1134 = vrot.lane.b32.xlu1 %v1108_v3, %s1206_s13  ;;  %s374_s16 = scalar_lea.vmem %s1404_s8, %s373_s27 }
  0x27   : > { %1139 = vrot.lane.b32.xlu0 %v1108_v3, %s1207_s18  ;;  %469 = vrot.lane.b32.xlu1 %v1299_v1, %s1208_s19 }
  0x2b   : > { %471 = vrot.lane.b32.xlu0 %v377_v2, %s1208_s19  ;;  %496 = vperm.xlu1 %1143, %v490_v5  }
  0x2f   : > { %506 = vperm.xlu1 %1143, %v492_v7   ;;  %501 = vperm.xlu0 %1144, %v491_v8  }
  0x33   : > { %511 = vperm.xlu1 %1143, %v493_v9   ;;  %658 = vperm.xlu0 %1144, %v652_v10  }
  0x37   : > { %663 = vperm.xlu1 %1143, %v653_v11   ;;  %668 = vperm.xlu0 %1144, %v654_v12  }
  0x3b   : > { %673 = vperm.xlu1 %1143, %v655_v13   ;;  %816 = vperm.xlu0 %1144, %v810_v14  }
  0x3f   : > { %821 = vperm.xlu1 %1143, %v811_v15   ;;  %826 = vperm.xlu0 %1144, %v812_v16  }
  0x43   : > { %831 = vperm.xlu1 %1143, %v813_v17   ;;  %850 = vperm.xlu0 %1144, %v847_v18  }
  0x8d   : > { %v1110_v19 = vpop.permute.xlu0 %1109  ;;  %v1120_v20 = vpop.permute.xlu1 %1119 }
  0x8e   : > { %v1112_v21 = vunpack.i.h.bf16 %v1110_v19  ;;  %v1111_v22 = vunpack.i.l.bf16 %v1110_v19  ;;  %v1122_v23 = vunpack.i.h.bf16 %v1120_v20  ;;  %v1121_v24 = vunpack.i.l.bf16 %v1120_v20 }
  0x90   : > { %v390_v25 = vsel %vm389_vm1, %v1111_v22, %v1112_v21  ;;  %v414_v29 = vsel %vm413_vm2, %v1121_v24, %v1122_v23 }
  0x91   : > { %v1115_v26 = vpop.permute.xlu0 %1114  ;;  %v1034_v27 = vpack.c.bf16 %v390_v25, %v1299_v1  ;;  %v1125_v28 = vpop.permute.xlu1 %1124 }
  0x92   : > { %v1117_v30 = vunpack.i.h.bf16 %v1115_v26  ;;  %v1116_v31 = vunpack.i.l.bf16 %v1115_v26  ;;  %v1127_v32 = vunpack.i.h.bf16 %v1125_v28  ;;  %v1126_v33 = vunpack.i.l.bf16 %v1125_v28 }
  0x93   : > { %1035 = vmatprep.subr.bf16.mxu0 %v1034_v27 }
  0x94   : > { %1037 = vmatpush3.bf16.msra.mxu0 %v1034_v27  ;;  %v402_v34 = vsel %vm401_vm3, %v1116_v31, %v1117_v30  ;;  %v426_v38 = vsel %vm425_vm4, %v1126_v33, %v1127_v32 }
  0x95   : > { %v1130_v35 = vpop.permute.xlu0 %1129  ;;  %v1038_v36 = vpack.c.bf16 %v414_v29, %v402_v34  ;;  %v1135_v37 = vpop.permute.xlu1 %1134 }
  0x96   : > { %v1132_v39 = vunpack.i.h.bf16 %v1130_v35  ;;  %v1131_v40 = vunpack.i.l.bf16 %v1130_v35  ;;  %v1137_v41 = vunpack.i.h.bf16 %v1135_v37  ;;  %v1136_v42 = vunpack.i.l.bf16 %v1135_v37 }
  0x97   : > { %1039 = vmatprep.subr.bf16.mxu0 %v1038_v36 }
  0x98   : > { %1041 = vmatpush3.bf16.msra.mxu0 %v1038_v36  ;;  %v438_v43 = vsel %vm437_vm5, %v1131_v40, %v1132_v39  ;;  %v450_v48 = vsel %vm449_vm6, %v1136_v42, %v1137_v41 }
  0x99   : > { %v1140_v44 = vpop.permute.xlu0 %1139  ;;  %v1042_v45 = vpack.c.bf16 %v438_v43, %v426_v38  ;;  %v470_v49 = vpop.permute.xlu1 %469 }
  0x9a   : > { %v1142_v46 = vunpack.i.h.bf16 %v1140_v44  ;;  %v1141_v47 = vunpack.i.l.bf16 %v1140_v44  ;;  %v649_v44 = vld [vmem:[%s1400_s4 + $0x8] sm:$0xff] }
  0x9b   : > { %1043 = vmatprep.subr.bf16.mxu0 %v1042_v45 }
  0x9c   : > { %1045 = vmatpush3.bf16.msra.mxu0 %v1042_v45  ;;  %v462_v50 = vsel %vm461_vm7, %v1141_v47, %v1142_v46  ;;  %v650_v45 = vld [vmem:[%s1400_s4 + $0x10] sm:$0xff]  ;;  %v651_v46 = vld [vmem:[%s1400_s4 + $0x18] sm:$0xff] }
  0x9d   : > { %v1046_v51 = vpack.c.bf16 %v462_v50, %v450_v48  ;;  %v472_v52 = vpop.permute.xlu0 %471 }
  0x9e   : > { %v474_v53 = vsel %vm473_vm8, %v470_v49, %v472_v52 }
  0x9f   : > { %1047 = vmatprep.subr.bf16.mxu0 %v1046_v51 }
  0xa0   : > { %1049 = vmatpush3.bf16.msra.mxu0 %v1046_v51 }
  0xa1   : > { %1012 = vmatprep.subr.mxu0 %v474_v53 }
  0xa4   : > { %1013 = vmatpush3.msra.mxu0 %v474_v53 }
  0xa5   : > { %1015 = vmatmul.mubr.msk.f32.vlgmr.msra.gmra.mrb[0].mxu0 %vm514_vm0, %v478_v54 }
  0xa6   : > { %1017 = vmatprep.mubr.msk.f32.mxu0 %vm514_vm0, %v479_v55 }
  0xa9   : > { %1018 = vmatmul.mubr.msk.f32.gmra.mrb[2].mxu0 %vm514_vm0, %v480_v56 }
  0xaa   : > { %v497_v58 = vpop.permute.xlu1 %496 }
  0xae   : > { %v507_v59 = vpop.permute.xlu1 %506  ;;  %v502_v60 = vpop.permute.xlu0 %501 }
  0xb2   : > { %v512_v2 = vpop.permute.xlu1 %511  ;;  %v659_v48 = vpop.permute.xlu0 %658 }
  0xb6   : > { %v664_v47 = vpop.permute.xlu1 %663  ;;  %v669_v57 = vpop.permute.xlu0 %668 }
  0xba   : > { %v674_v54 = vpop.permute.xlu1 %673 }
 0x178   : > { %v1016_v61 = vpop.f32.mrb[0].mxu0 }
 0x179   : > { %v599_v62 = vadd.f32 %v1016_v61, %v502_v60  ;;  %v593_v63 = vpop.f32.mrb[1].mxu0 }
 0x17a   : > { %v594_v0 = vadd.f32 %v593_v63, %v497_v58 }
 0x17b   : > { %v617_v1 = vmul.f32 0.044715, %v599_v62  ;;  %v613_v28 = vmul.f32 0.5, %v599_v62 }
 0x17c   : > { %v616_v3 = vmul.f32 0.044715, %v594_v0  ;;  %v1019_v4 = vpop.f32.mrb[2].mxu0  ;;  %v612_v30 = vmul.f32 0.5, %v594_v0 }
 0x17d   : > { %v621_v5 = vmul.f32 %v617_v1, %v599_v62  ;;  %v609_v6 = vadd.f32 %v1019_v4, %v512_v2  ;;  %v603_v7 = vpop.f32.mrb[3].mxu0 }
 0x17e   : > { %v620_v8 = vmul.f32 %v616_v3, %v594_v0  ;;  %v604_v9 = vadd.f32 %v603_v7, %v507_v59 }
 0x17f   : > { %v619_v10 = vmul.f32 0.044715, %v609_v6  ;;  %v625_v11 = vmul.f32 %v621_v5, %v599_v62  ;;  %v615_v36 = vmul.f32 0.5, %v609_v6 }
 0x180   : > { %v618_v12 = vmul.f32 0.044715, %v604_v9  ;;  %v624_v13 = vmul.f32 %v620_v8, %v594_v0  ;;  %v614_v39 = vmul.f32 0.5, %v604_v9 }
 0x181   : > { %v623_v14 = vmul.f32 %v619_v10, %v609_v6  ;;  %v629_v15 = vadd.f32 %v625_v11, %v599_v62 }
 0x182   : > { %v622_v16 = vmul.f32 %v618_v12, %v604_v9  ;;  %v628_v17 = vadd.f32 %v624_v13, %v594_v0 }
 0x183   : > { %v627_v18 = vmul.f32 %v623_v14, %v609_v6  ;;  %v633_v19 = vmul.f32 0.7978846, %v629_v15 }
 0x184   : > { %v626_v20 = vmul.f32 %v622_v16, %v604_v9  ;;  %v632_v21 = vmul.f32 0.7978846, %v628_v17 }
 0x185   : > { %1145 = vtanh.f32 %v633_v19  ;;  %v631_v22 = vadd.f32 %v627_v18, %v609_v6 }
 0x186   : > { %1147 = vtanh.f32 %v632_v21  ;;  %v630_v23 = vadd.f32 %v626_v20, %v604_v9  ;;  %v817_v21 = vpop.permute.xlu0 %816 }
 0x187   : > { %v635_v24 = vmul.f32 0.7978846, %v631_v22 }
 0x188   : > { %v634_v25 = vmul.f32 0.7978846, %v630_v23 }
 0x189   : > { %1149 = vtanh.f32 %v635_v24  ;;  %v822_v24 = vpop.permute.xlu1 %821 }
 0x18a   : > { %1151 = vtanh.f32 %v634_v25 }
 0x18f   : > { %v1146_v26 = vpop.eup %1145 }
 0x190   : > { %v1148_v27 = vpop.eup %1147  ;;  %v641_v29 = vadd.f32 1.0, %v1146_v26 }
 0x191   : > { %v640_v31 = vadd.f32 1.0, %v1148_v27 }
 0x192   : > { %v645_v32 = vmul.f32 %v641_v29, %v613_v28 }
 0x193   : > { %v1150_v33 = vpop.eup %1149  ;;  %v644_v34 = vmul.f32 %v640_v31, %v612_v30 }
 0x194   : > { %v1152_v35 = vpop.eup %1151  ;;  %v643_v37 = vadd.f32 1.0, %v1150_v33 }
 0x195   : > { %v1050_v38 = vpack.c.bf16 %v645_v32, %v644_v34  ;;  %v642_v40 = vadd.f32 1.0, %v1152_v35 }
 0x196   : > { %v647_v41 = vmul.f32 %v643_v37, %v615_v36  ;;  %v827_v36 = vpop.permute.xlu0 %826 }
 0x197   : > { %1051 = vmatprep.subr.bf16.mxu1 %v1050_v38  ;;  %v646_v42 = vmul.f32 %v642_v40, %v614_v39 }
 0x198   : > { %1053 = vmatpush3.bf16.msra.mxu1 %v1050_v38  ;;  %v832_v38 = vpop.permute.xlu1 %831 }
 0x199   : > { %v1054_v43 = vpack.c.bf16 %v647_v41, %v646_v42  ;;  %v853_v41 = vlaneseq }
 0x19b   : > { %1055 = vmatprep.subr.bf16.mxu1 %v1054_v43 }
 0x19c   : > { %1057 = vmatpush3.bf16.msra.mxu1 %v1054_v43 }
 0x19f   : > { %1029 = vmatmul.mubr.msk.f32.vlgmr.msra.gmra.mrb[0].mxu1 %vm676_vm9, %v649_v44  ;;  %v854_v44 = vshrl.u32 %v853_v41, 7 }
 0x1a0   : > { %1031 = vmatprep.mubr.msk.f32.mxu1 %vm676_vm9, %v650_v45 }
 0x1a3   : > { %1032 = vmatmul.mubr.msk.f32.gmra.mrb[2].mxu1 %vm676_vm9, %v651_v46 }
 0x272   : > { %v1030_v49 = vpop.f32.mrb[0].mxu1 }
 0x273   : > { %v761_v50 = vadd.f32 %v1030_v49, %v664_v47  ;;  %v755_v51 = vpop.f32.mrb[1].mxu1  ;;  %v855_v47 = vsub.s32 0, %v854_v44  ;;  %v851_v49 = vpop.permute.xlu0 %850 }
 0x274   : > { %v756_v52 = vadd.f32 %v755_v51, %v659_v48 }
 0x275   : > { %v779_v53 = vmul.f32 0.044715, %v761_v50  ;;  %v775_v17 = vmul.f32 0.5, %v761_v50  ;;  %v856_v51 = vrot.slane %v851_v49, %v855_v47 }
 0x276   : > { %v778_v55 = vmul.f32 0.044715, %v756_v52  ;;  %v1033_v56 = vpop.f32.mrb[2].mxu1  ;;  %v774_v19 = vmul.f32 0.5, %v756_v52 }
 0x277   : > { %v783_v58 = vmul.f32 %v779_v53, %v761_v50  ;;  %v771_v59 = vadd.f32 %v1033_v56, %v674_v54  ;;  %v765_v60 = vpop.f32.mrb[3].mxu1 }
 0x278   : > { %v782_v61 = vmul.f32 %v778_v55, %v756_v52  ;;  %v766_v62 = vadd.f32 %v765_v60, %v669_v57 }
 0x279   : > { %v787_v63 = vmul.f32 %v783_v58, %v761_v50  ;;  %v781_v0 = vmul.f32 0.044715, %v771_v59  ;;  %v777_v30 = vmul.f32 0.5, %v771_v59 }
 0x27a   : > { %v786_v1 = vmul.f32 %v782_v61, %v756_v52  ;;  %v780_v2 = vmul.f32 0.044715, %v766_v62  ;;  %v776_v31 = vmul.f32 0.5, %v766_v62 }
 0x27b   : > { %v791_v3 = vadd.f32 %v787_v63, %v761_v50  ;;  %v785_v4 = vmul.f32 %v781_v0, %v771_v59 }
 0x27c   : > { %v790_v5 = vadd.f32 %v786_v1, %v756_v52  ;;  %v784_v6 = vmul.f32 %v780_v2, %v766_v62 }
 0x27d   : > { %v795_v7 = vmul.f32 0.7978846, %v791_v3  ;;  %v789_v8 = vmul.f32 %v785_v4, %v771_v59 }
 0x27e   : > { %v794_v9 = vmul.f32 0.7978846, %v790_v5  ;;  %v788_v10 = vmul.f32 %v784_v6, %v766_v62 }
 0x27f   : > { %1153 = vtanh.f32 %v795_v7  ;;  %v793_v11 = vadd.f32 %v789_v8, %v771_v59 }
 0x280   : > { %1155 = vtanh.f32 %v794_v9  ;;  %v792_v12 = vadd.f32 %v788_v10, %v766_v62 }
 0x281   : > { %v797_v13 = vmul.f32 0.7978846, %v793_v11 }
 0x282   : > { %v796_v14 = vmul.f32 0.7978846, %v792_v12 }
 0x283   : > { %1157 = vtanh.f32 %v797_v13 }
 0x284   : > { %1159 = vtanh.f32 %v796_v14 }
 0x289   : > { %v1154_v15 = vpop.eup %1153 }
 0x28a   : > { %v1156_v16 = vpop.eup %1155  ;;  %v803_v18 = vadd.f32 1.0, %v1154_v15 }
 0x28b   : > { %v802_v20 = vadd.f32 1.0, %v1156_v16 }
 0x28c   : > { %v807_v22 = vmul.f32 %v803_v18, %v775_v17 }
 0x28d   : > { %v1158_v23 = vpop.eup %1157  ;;  %v806_v25 = vmul.f32 %v802_v20, %v774_v19 }
 0x28e   : > { %v1160_v26 = vpop.eup %1159  ;;  %v835_v27 = vmul.f32 %v822_v24, %v807_v22  ;;  %v805_v28 = vadd.f32 1.0, %v1158_v23 }
 0x28f   : > { %v834_v29 = vmul.f32 %v817_v21, %v806_v25  ;;  %v804_v32 = vadd.f32 1.0, %v1160_v26 }
 0x290   : > { %v809_v34 = vmul.f32 %v805_v28, %v777_v30 }
 0x291   : > { %v838_v33 = vadd.f32 %v835_v27, %v834_v29  ;;  %v808_v35 = vmul.f32 %v804_v32, %v776_v31 }
 0x292   : > { %v837_v39 = vmul.f32 %v832_v38, %v809_v34 }
 0x293   : > { %v836_v37 = vmul.f32 %v827_v36, %v808_v35 }
 0x295   : > { %v839_v40 = vadd.f32 %v838_v33, %v836_v37 }
 0x297   : > { %v840_v42 = vadd.f32 %v839_v40, %v837_v39 }
 0x299   : > { %v841_v43 = vrot.slane %v840_v42, 4 }
 0x29b   : > { %v842_v45 = vadd.f32 %v841_v43, %v840_v42 }
 0x29d   : > { %v843_v46 = vrot.slane %v842_v45, 2 }
 0x29f   : > { %v844_v48 = vadd.f32 %v843_v46, %v842_v45 }
 0x2a1   : > { %v845_v50 = vrot.slane %v844_v48, 1 }
 0x2a3   : > { %v846_v52 = vadd.f32 %v845_v50, %v844_v48 }
 0x2a5   : > { %v857_v53 = vadd.f32 %v856_v51, %v846_v52 }
 0x2a7   : > { %858 = vst [vmem:[%s374_s16] sm:$0x1] %v857_v53 }
 0x2a8 PF: > { %s20_s11 = sadd.s32 1, %s1199_s11   ;;  %s1405_s29 = smov %s1191_s9 }
 0x2a9   : > { %p17_p9 = scmp.ge.s32.totalorder %s20_s11, 6   ;;  %s1406_s30 = smov %s1195_s10 }
 0x2aa   : > { %s1407_s9 = smov %s1410_s7  ;;  %s1408_s10 = smov %s1414_s12 }
 0x2ab   :  { %19 = sbr.rel (!%p17_p9) target bundleno = 3 (0x3), region = 85 }

// kernel: qencoder_forward.2
= control target key start
LH: loop header
LB: loop body
LE: loop exit
PB: predicated region body
PF: predicated region fallthrough
CT: control target
= control target key end

     0   :  { %s3523_s24 = smov 0   ;;  %s3525_s25 = smov 0   ;;  %s4567_s0 = inlined_call_operand.vmem [shape: f32[2,4,384], index: 0, kind: input, shape index: {}]   ;;  %s4568_s1 = inlined_call_operand.vmem [shape: f32[48,4], index: 1, kind: input, shape index: {}]   ;;  %s4569_s2 = inlined_call_operand.vmem [shape: f32[48,1], index: 2, kind: input, shape index: {}]   ;;  %s4570_s3 = inlined_call_operand.vmem [shape: f32[24,8], index: 3, kind: input, shape index: {}]   ;;  %s4571_s4 = inlined_call_operand.vmem [shape: f32[24,1], index: 4, kind: input, shape index: {}]   ;;  %s4572_s5 = inlined_call_operand.vmem [shape: f32[24,8], index: 5, kind: input, shape index: {}]   ;;  %s4573_s6 = inlined_call_operand.vmem [shape: f32[24,1], index: 6, kind: input, shape index: {}]   ;;  %s4574_s7 = inlined_call_operand.vmem [shape: f32[2,8,384], index: 7, kind: output, shape index: {}]  }
   0x1   :  { %s3527_s26 = smov 0  }
   0x2 LB: > { %s29_s27 = sadd.s32 1, %s3474_s25  ;;  %p2984_p0 = scmp.ge.s32.totalorder %s3478_s26, 1  ;;  %s3478_s26 = sphi %s3527_s26, %s17_s26   ;;  %s3474_s25 = sphi %s3525_s25, %s4580_s25   ;;  %s3470_s24 = sphi %s3523_s24, %s4579_s24  }
   0x3   : > { %p31_p1 = scmp.ge.s32.totalorder %s29_s27, 2  ;;  %p258_p2 = scmp.lt.s32.totalorder %s3478_s26, 3 }
   0x5   : > { %s4582_s27 = smov (%p31_p1, %s29_s27), 0  ;;  %p259_p3 = pnand %p2984_p0, %p258_p2 }
   0x7   : > { %262 = sbr.rel (%p259_p3) target bundleno = 2202 (0x89a), region = 48 }
   0xe   : > { %p299_p4 = scmp.lt.s32.totalorder %s3470_s24, 1  ;;  %v3480_v0 = vmov 0.0   ;;  %v3481_v1 = vmov 0   ;;  %v330_v2 = vld [vmem:[%s4569_s2 + $0x20] sm:$0xff]  ;;  %v329_v3 = vld [vmem:[%s4569_s2 + $0x18] sm:$0xff]  ;;  %v331_v4 = vld [vmem:[%s4569_s2 + $0x28] sm:$0xff] }
   0xf   : > { %455 = vmatprep.mubr.f32.mxu0 %v3480_v0  ;;  %485 = vmatprep.mubr.f32.mxu1 %v3480_v0  ;;  %v326_v5 = vld [vmem:[%s4569_s2] sm:$0xff]  ;;  %vm384_vm0 = vcmask 1043456   ;;  %vm365_vm1 = vcmask 31744   ;;  %v325_v9 = vld [vmem:[%s4568_s1 + $0x28] sm:$0xff]  ;;  %v322_v14 = vld [vmem:[%s4568_s1 + $0x10] sm:$0xff]  ;;  %vm3482_vm2 = vmmov 0  }
  0x10   : > { %s4584_s24 = smov (!%p299_p4, %s3470_s24), 1  ;;  %3201 = vset.pattern.permute.xlu1 %v3481_v1  ;;  %3200 = vset.pattern.permute.xlu0 %v3481_v1  ;;  %v320_v8 = vld [vmem:[%s4568_s1] sm:$0xff]  ;;  %v753_v11 = vld [vmem:[%s4571_s4 + $0x8] sm:$0xff]  ;;  %v754_v16 = vld [vmem:[%s4571_s4 + $0x10] sm:$0xff]  ;;  %vm797_vm3 = vcmask 64512  }
  0x11   : > { %354 = vperm.xlu1 %3201, %v330_v2   ;;  %349 = vperm.xlu0 %3200, %v329_v3   ;;  %s3171_s9 = smul.u32 12, %s4584_s24  ;;  %v752_v12 = vld [vmem:[%s4571_s4] sm:$0xff]  ;;  %v321_v13 = vld [vmem:[%s4568_s1 + $0x8] sm:$0xff]  ;;  %v323_v17 = vld [vmem:[%s4568_s1 + $0x18] sm:$0xff] }
  0x12   : > { %s3172_s14 = smul.u32 24, %s4584_s24  ;;  %v327_v15 = vld [vmem:[%s4569_s2 + $0x8] sm:$0xff]  ;;  %v328_v18 = vld [vmem:[%s4569_s2 + $0x10] sm:$0xff]  ;;  %v324_v20 = vld [vmem:[%s4568_s1 + $0x20] sm:$0xff] }
  0x13   : > { %s306_s17 = scalar_lea.vmem %s4567_s0, %s3171_s9  ;;  %v759_v19 = vld [vmem:[%s4573_s6 + $0x8] sm:$0xff]  ;;  %v758_v21 = vld [vmem:[%s4573_s6] sm:$0xff]  ;;  %v760_v22 = vld [vmem:[%s4573_s6 + $0x10] sm:$0xff] }
  0x14   : > { %s3561_s20 = scalar_lea.vmem %s4574_s7, %s3172_s14  ;;  %v318_v6 = vld [vmem:[%s306_s17] sm:$0xff]  ;;  %v319_v10 = vld [vmem:[%s306_s17 + $0x8] sm:$0xf] }
  0x15   : > { %359 = vperm.xlu1 %3201, %v331_v4   ;;  %334 = vperm.xlu0 %3200, %v326_v5   ;;  %v364_v7 = vcombine.high %v318_v6, %v318_v6  ;;  %2892 = vst [vmem:[%s3561_s20 + $0x10] sm:$0xff] %v3480_v0 }
  0x17   : > { %2987 = vmatprep.subr.msk.mxu0 %vm384_vm0, %v364_v7  ;;  %3169 = vmatprep.subr.msk.mxu1 %vm384_vm0, %v364_v7 }
  0x18   : > { %2988 = vmatpush1.msk.msra.mxu0 %vm384_vm0, %v318_v6  ;;  %3170 = vmatpush1.msk.msra.mxu1 %vm384_vm0, %v318_v6 }
  0x19   : > { %2989 = vmatmul.mubr.msk.f32.vlgmr.msra.gmra.mrb[0].mxu0 %vm365_vm1, %v320_v8  ;;  %2994 = vmatmul.mubr.msk.f32.vlgmr.msra.gmra.mrb[0].mxu1 %vm365_vm1, %v325_v9 }
  0x1a   : > { %3081 = vmatprep.subr.msk.mxu1 %vm384_vm0, %v319_v10  ;;  %461 = vmatprep.mubr.f32.mxu0 %v3480_v0 }
  0x1b   : > { %3082 = vmatpush3.msk.msra.mxu1 %vm384_vm0, %v319_v10  ;;  %3083 = vmatprep.mubr.msk.f32.mxu1 %vm365_vm1, %v320_v8 }
  0x1c   : > { %789 = vperm.xlu1 %3201, %v753_v11   ;;  %784 = vperm.xlu0 %3200, %v752_v12  }
  0x1d   : > { %2990 = vmatmul.mubr.msk.f32.gmra.mrb[2].mxu0 %vm365_vm1, %v321_v13  ;;  %3084 = vmatmul.mubr.msk.f32.vlgmr.msra.gmra.mrb[2].mxu1 %vm365_vm1, %v321_v13 }
  0x1e   : > { %467 = vmatprep.mubr.f32.mxu0 %v3480_v0  ;;  %3086 = vmatprep.mubr.msk.f32.mxu1 %vm365_vm1, %v322_v14 }
  0x1f   : > { %3092 = vmatprep.subr.mxu0 %v3480_v0 }
  0x20   : > { %339 = vperm.xlu1 %3201, %v327_v15   ;;  %794 = vperm.xlu0 %3200, %v754_v16  }
  0x21   : > { %2991 = vmatmul.mubr.msk.f32.gmra.mrb[4].mxu0 %vm365_vm1, %v322_v14  ;;  %3087 = vmatmul.mubr.msk.f32.gmra.mrb[4].mxu1 %vm365_vm1, %v323_v17 }
  0x22   : > { %473 = vmatprep.mubr.f32.mxu0 %v3480_v0  ;;  %3089 = vmatprep.mubr.msk.f32.mxu1 %vm365_vm1, %v324_v20 }
  0x24   : > { %344 = vperm.xlu0 %3200, %v328_v18   ;;  %1101 = vperm.xlu1 %3201, %v758_v21  }
  0x25   : > { %2992 = vmatmul.mubr.msk.f32.gmra.mrb[6].mxu0 %vm365_vm1, %v323_v17  ;;  %3090 = vmatmul.mubr.msk.f32.gmra.mrb[6].mxu1 %vm365_vm1, %v325_v9 }
  0x26   : > { %479 = vmatprep.mubr.f32.mxu0 %v3480_v0  ;;  %871 = vmatprep.mubr.f32.mxu1 %v3480_v0 }
  0x28   : > { %1106 = vperm.xlu0 %3200, %v759_v19   ;;  %1111 = vperm.xlu1 %3201, %v760_v22  }
  0x29   : > { %2993 = vmatmul.mubr.msk.f32.gmra.mrb[8].mxu0 %vm365_vm1, %v324_v20 }
  0x2a   : > { %3094 = vmatprep.mubr.msk.f32.mxu0 %vm3482_vm2, %v3480_v0 }
  0x90   : > { %v350_v27 = vpop.permute.xlu0 %349 }
  0x94   : > { %v335_v36 = vpop.permute.xlu0 %334 }
  0xec   : > { %v457_v23 = vpop.f32.mrb[0].mxu0  ;;  %v3633_v24 = vpop.f32.mrb[0].mxu1 }
  0xed   : > { %v459_v25 = vpop.f32.mrb[1].mxu0  ;;  %v3635_v26 = vpop.f32.mrb[1].mxu1  ;;  %v3649_v48 = vadd.f32 %v457_v23, %v335_v36 }
  0xee   : > { %v3651_v51 = vadd.f32 %v459_v25, %v335_v36 }
  0xef   : > { %v605_v55 = vmul.f32 0.044715, %v3649_v48 }
  0xf0   : > { %v3637_v28 = vpop.f32.mrb[2].mxu0  ;;  %v3639_v29 = vpop.f32.mrb[2].mxu1  ;;  %v606_v57 = vmul.f32 0.044715, %v3651_v51 }
  0xf1   : > { %v3641_v30 = vpop.f32.mrb[3].mxu0  ;;  %v558_v31 = vpop.f32.mrb[3].mxu1  ;;  %v623_v61 = vmul.f32 %v605_v55, %v3649_v48  ;;  %v588_v55 = vmul.f32 0.5, %v3651_v51 }
  0xf2   : > { %v559_v38 = vadd.f32 %v558_v31, %v335_v36  ;;  %v624_v1 = vmul.f32 %v606_v57, %v3651_v51  ;;  %v3693_v57 = vld [vmem:[%s4570_s3 + $0x8] sm:$0xff] }
  0xf3   : > { %v641_v4 = vmul.f32 %v623_v61, %v3649_v48  ;;  %v3705_v61 = vld [vmem:[%s4570_s3 + $0x10] sm:$0xff] }
  0xf4   : > { %v3643_v32 = vpop.f32.mrb[4].mxu0  ;;  %v3088_v33 = vpop.f32.mrb[4].mxu1  ;;  %v607_v41 = vmul.f32 0.044715, %v559_v38  ;;  %v642_v7 = vmul.f32 %v624_v1, %v3651_v51 }
  0xf5   : > { %v3645_v34 = vpop.f32.mrb[5].mxu0  ;;  %v3647_v35 = vpop.f32.mrb[5].mxu1  ;;  %v574_v40 = vadd.f32 %v3088_v33, %v350_v27  ;;  %v659_v11 = vadd.f32 %v641_v4, %v3649_v48 }
  0xf6   : > { %v625_v44 = vmul.f32 %v607_v41, %v559_v38  ;;  %v660_v13 = vadd.f32 %v642_v7, %v3651_v51 }
  0xf7   : > { %v616_v42 = vmul.f32 0.044715, %v574_v40  ;;  %v598_v8 = vmul.f32 0.5, %v574_v40  ;;  %v677_v15 = vmul.f32 0.7978846, %v659_v11 }
  0xf8   : > { %v475_v37 = vpop.f32.mrb[6].mxu0  ;;  %v643_v49 = vmul.f32 %v625_v44, %v559_v38  ;;  %v678_v17 = vmul.f32 0.7978846, %v660_v13 }
  0xf9   : > { %v477_v39 = vpop.f32.mrb[7].mxu0  ;;  %v634_v43 = vmul.f32 %v616_v42, %v574_v40  ;;  %v476_v46 = vadd.f32 %v475_v37, %v350_v27 }
  0xfa   : > { %v478_v53 = vadd.f32 %v477_v39, %v350_v27  ;;  %v661_v56 = vadd.f32 %v643_v49, %v559_v38  ;;  %v589_v27 = vmul.f32 0.5, %v559_v38  ;;  %v3679_v49 = vld [vmem:[%s4570_s3] sm:$0xff] }
  0xfb   : > { %v652_v45 = vmul.f32 %v634_v43, %v574_v40  ;;  %v614_v50 = vmul.f32 0.044715, %v476_v46  ;;  %v596_v19 = vmul.f32 0.5, %v476_v46 }
  0xfc   : > { %v615_v59 = vmul.f32 0.044715, %v478_v53  ;;  %v679_v62 = vmul.f32 0.7978846, %v661_v56  ;;  %v597_v31 = vmul.f32 0.5, %v478_v53 }
  0xfd   : > { %v670_v47 = vadd.f32 %v652_v45, %v574_v40  ;;  %v632_v54 = vmul.f32 %v614_v50, %v476_v46 }
  0xfe   : > { %v633_v63 = vmul.f32 %v615_v59, %v478_v53 }
  0xff   : > { %v688_v52 = vmul.f32 0.7978846, %v670_v47  ;;  %v650_v58 = vmul.f32 %v632_v54, %v476_v46 }
 0x100   : > { %v651_v3 = vmul.f32 %v633_v63, %v478_v53 }
 0x101   : > { %3203 = vtanh.f32 %v688_v52  ;;  %v668_v60 = vadd.f32 %v650_v58, %v476_v46 }
 0x102   : > { %v669_v5 = vadd.f32 %v651_v3, %v478_v53  ;;  %v587_v53 = vmul.f32 0.5, %v3649_v48 }
 0x103   : > { %v686_v2 = vmul.f32 0.7978846, %v668_v60 }
 0x104   : > { %v687_v10 = vmul.f32 0.7978846, %v669_v5  ;;  %v481_v5 = vpop.f32.mrb[8].mxu0 }
 0x105   : > { %3205 = vtanh.f32 %v686_v2  ;;  %v483_v7 = vpop.f32.mrb[9].mxu0 }
 0x106   : > { %3207 = vtanh.f32 %v679_v62 }
 0x107   : > { %3209 = vtanh.f32 %v687_v10 }
 0x10b   : > { %v3204_v6 = vpop.eup %3203 }
 0x10c   : > { %v724_v9 = vadd.f32 1.0, %v3204_v6  ;;  %v3091_v6 = vpop.f32.mrb[6].mxu1 }
 0x10e   : > { %v3660_v12 = vmul.f32 %v724_v9, %v598_v8  ;;  %v578_v8 = vpop.f32.mrb[7].mxu1  ;;  %v355_v9 = vpop.permute.xlu1 %354 }
 0x10f   : > { %v3206_v16 = vpop.eup %3205  ;;  %v3727_v11 = vadd.f32 %v578_v8, %v355_v9 }
 0x110   : > { %4577 = vst [vmem:[#allocation2_spill] sm:$0xff] %v3660_v12  ;;  %v763_v14 = vmul.f32 0.5, %v3660_v12  ;;  %v3208_v18 = vpop.eup %3207  ;;  %v722_v20 = vadd.f32 1.0, %v3206_v16 }
 0x111   : > { %v715_v22 = vadd.f32 1.0, %v3208_v18  ;;  %v3210_v23 = vpop.eup %3209 }
 0x112   : > { %3211 = vtanh.f32 %v763_v14  ;;  %v3664_v21 = vmul.f32 %v722_v20, %v596_v19  ;;  %v723_v33 = vadd.f32 1.0, %v3210_v23  ;;  %v360_v10 = vpop.permute.xlu1 %359  ;;  %v619_v14 = vmul.f32 0.044715, %v3727_v11 }
 0x113   : > { %3213 = vtanh.f32 %v677_v15  ;;  %v3667_v36 = vmul.f32 %v715_v22, %v589_v27  ;;  %v3729_v13 = vadd.f32 %v3091_v6, %v360_v10  ;;  %v3741_v20 = vadd.f32 %v3635_v26, %v360_v10 }
 0x114   : > { %3215 = vtanh.f32 %v678_v17  ;;  %v761_v25 = vmul.f32 0.5, %v3664_v21  ;;  %v3669_v37 = vmul.f32 %v723_v33, %v597_v31  ;;  %v3736_v17 = vadd.f32 %v3633_v24, %v360_v10 }
 0x115   : > { %v775_v43 = vsub.f32 0.0, %v3667_v36  ;;  %v622_v15 = vmul.f32 0.044715, %v3729_v13  ;;  %v637_v18 = vmul.f32 %v619_v14, %v3727_v11  ;;  %v3744_v23 = vadd.f32 %v481_v5, %v355_v9 }
 0x116   : > { %3217 = vtanh.f32 %v761_v25  ;;  %v762_v41 = vmul.f32 0.5, %v3669_v37  ;;  %v3733_v16 = vpop.permute.xlu1 %789  ;;  %v620_v22 = vmul.f32 0.044715, %v3736_v17  ;;  %v3747_v27 = vadd.f32 %v483_v7, %v355_v9 }
 0x117   : > { %v640_v19 = vmul.f32 %v622_v15, %v3729_v13  ;;  %v655_v25 = vmul.f32 %v637_v18, %v3727_v11  ;;  %v621_v24 = vmul.f32 0.044715, %v3741_v20 }
 0x118   : > { %3219 = vtanh.f32 %v762_v41  ;;  %v638_v26 = vmul.f32 %v620_v22, %v3736_v17  ;;  %v617_v41 = vmul.f32 0.044715, %v3744_v23 }
 0x119   : > { %v658_v33 = vmul.f32 %v640_v19, %v3729_v13 }
 0x11a   : > { %v340_v31 = vpop.permute.xlu1 %339 }
 0x11b   : > { %v3780_v5 = vadd.f32 %v3641_v30, %v340_v31 }
 0x11c   : > { %v3212_v39 = vpop.eup %3211 }
 0x11d   : > { %v769_v40 = vmul.f32 0.5, %v3212_v39  ;;  %v3214_v44 = vpop.eup %3213  ;;  %v3752_v39 = vadd.f32 %v3639_v29, %v340_v31  ;;  %v639_v29 = vmul.f32 %v621_v24, %v3741_v20  ;;  %v609_v24 = vmul.f32 0.044715, %v3780_v5 }
 0x11e   : > { %v3216_v45 = vpop.eup %3215  ;;  %v713_v38 = vadd.f32 1.0, %v3214_v44 }
 0x11f   : > { %v772_v42 = vadd.f32 0.5, %v769_v40  ;;  %v714_v52 = vadd.f32 1.0, %v3216_v45  ;;  %v3754_v40 = vpop.permute.xlu0 %784  ;;  %v676_v45 = vadd.f32 %v658_v33, %v3729_v13 }
 0x120   : > { %v3218_v50 = vpop.eup %3217  ;;  %v3686_v56 = vmul.f32 %v713_v38, %v587_v53 }
 0x121   : > { %v3673_v46 = vmul.f32 %v775_v43, %v772_v42  ;;  %v767_v54 = vmul.f32 0.5, %v3218_v50  ;;  %v3695_v48 = vmul.f32 %v714_v52, %v588_v55  ;;  %v673_v42 = vadd.f32 %v655_v25, %v3727_v11 }
 0x122   : > { %v3220_v58 = vpop.eup %3219  ;;  %v773_v60 = vsub.f32 0.0, %v3686_v56  ;;  %v618_v43 = vmul.f32 0.044715, %v3747_v27  ;;  %v610_v50 = vmul.f32 0.044715, %v3752_v39  ;;  %v3767_v52 = vadd.f32 %v3637_v28, %v340_v31 }
 0x123   : > { %v781_v47 = vmax.f32 %v3673_v46, 0.0  ;;  %v770_v59 = vadd.f32 0.5, %v767_v54  ;;  %v768_v51 = vmul.f32 0.5, %v3220_v58  ;;  %v774_v63 = vsub.f32 0.0, %v3695_v48  ;;  %v3786_v10 = vpop.permute.xlu0 %794 }
 0x124   : > { %v656_v54 = vmul.f32 %v638_v26, %v3736_v17  ;;  %v635_v55 = vmul.f32 %v617_v41, %v3744_v23  ;;  %v691_v58 = vmul.f32 0.7978846, %v673_v42  ;;  %v657_v28 = vmul.f32 %v639_v29, %v3741_v20 }
 0x125   : > { %3093 = vmatpush3.msra.mxu0 %v781_v47  ;;  %v771_v62 = vadd.f32 0.5, %v768_v51  ;;  %v3708_v1 = vmul.f32 %v773_v60, %v770_v59  ;;  %v636_v59 = vmul.f32 %v618_v43, %v3747_v27  ;;  %v694_v60 = vmul.f32 0.7978846, %v676_v45 }
 0x126   : > { %3095 = vmatmul.mubr.msk.f32.vlgmr.msra.gmra.mrb[10].mxu0 %vm797_vm3, %v3679_v49  ;;  %3103 = vmatprep.subr.mxu0 %v3480_v0  ;;  %v608_v6 = vmul.f32 0.044715, %v3767_v52  ;;  %v674_v9 = vadd.f32 %v656_v54, %v3736_v17  ;;  %v653_v14 = vmul.f32 %v635_v55, %v3744_v23  ;;  %3221 = vtanh.f32 %v691_v58 }
 0x127   : > { %3097 = vmatprep.mubr.msk.f32.mxu0 %vm3482_vm2, %v3480_v0  ;;  %v3710_v2 = vmul.f32 %v774_v63, %v771_v62  ;;  %v779_v4 = vmax.f32 %v3708_v1, 0.0  ;;  %v654_v15 = vmul.f32 %v636_v59, %v3747_v27  ;;  %3223 = vtanh.f32 %v694_v60 }
 0x128   : > { %v675_v31 = vadd.f32 %v657_v28, %v3741_v20  ;;  %v692_v43 = vmul.f32 0.7978846, %v674_v9  ;;  %v671_v45 = vadd.f32 %v653_v14, %v3744_v23  ;;  %v627_v55 = vmul.f32 %v609_v24, %v3780_v5 }
 0x129   : > { %v780_v3 = vmax.f32 %v3710_v2, 0.0 }
 0x12a   : > { %3098 = vmatmul.mubr.msk.f32.gmra.mrb[12].mxu0 %vm797_vm3, %v3693_v57  ;;  %v689_v28 = vmul.f32 0.7978846, %v671_v45 }
 0x12b   : > { %3100 = vmatprep.mubr.msk.f32.mxu0 %vm3482_vm2, %v3480_v0  ;;  %807 = vmatprep.subr.mxu1 %v780_v3 }
 0x12c   : > { %808 = vmatpush1.msra.mxu1 %v779_v4  ;;  %v628_v4 = vmul.f32 %v610_v50, %v3752_v39 }
 0x12d   : > { %3002 = vmatmul.mubr.msk.f32.vlgmr.msra.gmra.mrb[8].mxu1 %vm797_vm3, %v3679_v49 }
 0x12e   : > { %3101 = vmatmul.mubr.msk.f32.gmra.mrb[14].mxu0 %vm797_vm3, %v3705_v61  ;;  %877 = vmatprep.mubr.f32.mxu1 %v3480_v0  ;;  %v646_v33 = vmul.f32 %v628_v4, %v3752_v39 }
 0x12f   : > { %3105 = vmatprep.mubr.msk.f32.mxu0 %vm3482_vm2, %v3480_v0 }
 0x130   : > { %v664_v54 = vadd.f32 %v646_v33, %v3752_v39  ;;  %v3222_v9 = vpop.eup %3221 }
 0x131   : > { %3003 = vmatmul.mubr.msk.f32.gmra.mrb[10].mxu1 %vm797_vm3, %v3693_v57 }
 0x132   : > { %883 = vmatprep.mubr.f32.mxu1 %v3480_v0  ;;  %v682_v14 = vmul.f32 0.7978846, %v664_v54 }
 0x135   : > { %3004 = vmatmul.mubr.msk.f32.gmra.mrb[12].mxu1 %vm797_vm3, %v3705_v61 }
 0x136   : > { %1187 = vmatprep.mubr.f32.mxu1 %v3480_v0 }
 0x1f9   : > { %v956_v44 = vpop.f32.mrb[10].mxu0 }
 0x1fa   : > { %v3762_v38 = vadd.f32 %v956_v44, %v3754_v40  ;;  %v3096_v47 = vpop.f32.mrb[11].mxu0  ;;  %v626_v44 = vmul.f32 %v608_v6, %v3767_v52 }
 0x1fb   : > { %v672_v47 = vadd.f32 %v654_v15, %v3747_v27  ;;  %v3820_v15 = vmul.f32 %v627_v55, %v3780_v5 }
 0x1fc   : > { %v981_v53 = vmul.f32 0.044715, %v3762_v38 }
 0x1fd   : > { %v961_v51 = vpop.f32.mrb[12].mxu0  ;;  %v690_v6 = vmul.f32 0.7978846, %v672_v47 }
 0x1fe   : > { %v990_v62 = vmul.f32 %v981_v53, %v3762_v38  ;;  %v3775_v63 = vadd.f32 %v961_v51, %v3733_v16  ;;  %v3099_v3 = vpop.f32.mrb[13].mxu0  ;;  %v693_v53 = vmul.f32 0.7978846, %v675_v31 }
 0x1ff   : > { %v3812_v3 = vmul.f32 %v626_v44, %v3767_v52  ;;  %v727_v44 = vadd.f32 1.0, %v3222_v9 }
 0x200   : > { %v999_v7 = vmul.f32 %v990_v62, %v3762_v38  ;;  %v984_v8 = vmul.f32 0.044715, %v3775_v63  ;;  %v873_v58 = vpop.f32.mrb[8].mxu1 }
 0x201   : > { %v966_v18 = vpop.f32.mrb[14].mxu0  ;;  %v3808_v51 = vadd.f32 %v873_v58, %v3754_v40  ;;  %v875_v60 = vpop.f32.mrb[9].mxu1 }
 0x202   : > { %v1008_v30 = vadd.f32 %v999_v7, %v3762_v38  ;;  %v993_v19 = vmul.f32 %v984_v8, %v3775_v63  ;;  %v3793_v22 = vadd.f32 %v966_v18, %v3786_v10  ;;  %v3102_v25 = vpop.f32.mrb[15].mxu0  ;;  %v3815_v4 = vadd.f32 %v875_v60, %v3754_v40 }
 0x203   : > { %v979_v7 = vmul.f32 0.044715, %v3808_v51  ;;  %v604_v25 = vmul.f32 0.5, %v3729_v13 }
 0x204   : > { %v1017_v26 = vmul.f32 0.7978846, %v1008_v30  ;;  %v1002_v41 = vmul.f32 %v993_v19, %v3775_v63  ;;  %v987_v42 = vmul.f32 0.044715, %v3793_v22  ;;  %v980_v18 = vmul.f32 0.044715, %v3815_v4  ;;  %v3224_v19 = vpop.eup %3223 }
 0x205   : > { %v879_v30 = vpop.f32.mrb[10].mxu1  ;;  %v988_v31 = vmul.f32 %v979_v7, %v3808_v51  ;;  %v730_v47 = vadd.f32 1.0, %v3224_v19 }
 0x206   : > { %3225 = vtanh.f32 %v1017_v26  ;;  %v1011_v29 = vadd.f32 %v1002_v41, %v3775_v63  ;;  %v996_v50 = vmul.f32 %v987_v42, %v3793_v22  ;;  %v3826_v24 = vadd.f32 %v879_v30, %v3733_v16  ;;  %v881_v26 = vpop.f32.mrb[11].mxu1 }
 0x207   : > { %3227 = vtanh.f32 %v692_v43  ;;  %v601_v41 = vmul.f32 0.5, %v3727_v11  ;;  %v989_v42 = vmul.f32 %v980_v18, %v3815_v4  ;;  %v3831_v43 = vadd.f32 %v881_v26, %v3733_v16 }
 0x208   : > { %v1020_v59 = vmul.f32 0.7978846, %v1011_v29  ;;  %v1005_v62 = vmul.f32 %v996_v50, %v3793_v22  ;;  %v997_v45 = vmul.f32 %v988_v31, %v3808_v51  ;;  %v982_v13 = vmul.f32 0.044715, %v3826_v24  ;;  %v885_v54 = vpop.f32.mrb[12].mxu1 }
 0x209   : > { %v972_v29 = vmul.f32 0.5, %v3762_v38  ;;  %v998_v50 = vmul.f32 %v989_v42, %v3815_v4  ;;  %v887_v60 = vpop.f32.mrb[13].mxu1  ;;  %v3848_v7 = vmul.f32 %v727_v44, %v601_v41  ;;  %v975_v31 = vmul.f32 0.5, %v3775_v63 }
 0x20a   : > { %3229 = vtanh.f32 %v1020_v59  ;;  %v1014_v8 = vadd.f32 %v1005_v62, %v3793_v22  ;;  %v1006_v55 = vadd.f32 %v997_v45, %v3808_v51  ;;  %v991_v58 = vmul.f32 %v982_v13, %v3826_v24 }
 0x20b   : > { %3231 = vtanh.f32 %v693_v53  ;;  %v983_v53 = vmul.f32 0.044715, %v3831_v43  ;;  %v3841_v59 = vadd.f32 %v885_v54, %v3786_v10 }
 0x20c   : > { %v1023_v33 = vmul.f32 0.7978846, %v1014_v8  ;;  %3233 = vtanh.f32 %v689_v28  ;;  %v1007_v28 = vadd.f32 %v998_v50, %v3815_v4  ;;  %v1015_v8 = vmul.f32 0.7978846, %v1006_v55 }
 0x20d   : > { %3235 = vtanh.f32 %v690_v6  ;;  %v992_v38 = vmul.f32 %v983_v53, %v3831_v43  ;;  %v3846_v6 = vadd.f32 %v887_v60, %v3786_v10  ;;  %v1000_v9 = vmul.f32 %v991_v58, %v3826_v24 }
 0x20e   : > { %3237 = vtanh.f32 %v1023_v33  ;;  %v985_v18 = vmul.f32 0.044715, %v3841_v59  ;;  %v1016_v33 = vmul.f32 0.7978846, %v1007_v28  ;;  %v3861_v58 = vmul.f32 %v730_v47, %v604_v25 }
 0x20f   : > { %v1001_v26 = vmul.f32 %v992_v38, %v3831_v43  ;;  %3239 = vtanh.f32 %v1015_v8  ;;  %v1009_v45 = vadd.f32 %v1000_v9, %v3826_v24  ;;  %v986_v41 = vmul.f32 0.044715, %v3846_v6 }
 0x210   : > { %v3226_v11 = vpop.eup %3225  ;;  %v994_v13 = vmul.f32 %v985_v18, %v3841_v59  ;;  %3241 = vtanh.f32 %v1016_v33  ;;  %v663_v25 = vadd.f32 %v3820_v15, %v3780_v5 }
 0x211   : > { %v1035_v62 = vadd.f32 1.0, %v3226_v11  ;;  %v3228_v30 = vpop.eup %3227  ;;  %3243 = vtanh.f32 %v682_v14  ;;  %v1018_v63 = vmul.f32 0.7978846, %v1009_v45  ;;  %v995_v11 = vmul.f32 %v986_v41, %v3846_v6 }
 0x212   : > { %v1003_v54 = vmul.f32 %v994_v13, %v3841_v59  ;;  %v662_v14 = vadd.f32 %v3812_v3, %v3767_v52  ;;  %v599_v3 = vmul.f32 0.5, %v3744_v23  ;;  %v978_v23 = vmul.f32 0.5, %v3793_v22 }
 0x213   : > { %v1044_v19 = vmul.f32 %v1035_v62, %v972_v29  ;;  %v1010_v29 = vadd.f32 %v1001_v26, %v3831_v43  ;;  %3245 = vtanh.f32 %v1018_v63  ;;  %v1004_v9 = vmul.f32 %v995_v11, %v3846_v6 }
 0x214   : > { %v3230_v42 = vpop.eup %3229  ;;  %v1012_v8 = vadd.f32 %v1003_v54, %v3841_v59  ;;  %v602_v26 = vmul.f32 0.5, %v3736_v17  ;;  %v680_v13 = vmul.f32 0.7978846, %v662_v14  ;;  %v681_v11 = vmul.f32 0.7978846, %v663_v25 }
 0x215   : > { %v3232_v44 = vpop.eup %3231  ;;  %v1059_v50 = vadd.f32 %v1044_v19, %v3848_v7  ;;  %v1038_v53 = vadd.f32 1.0, %v3230_v42  ;;  %v1019_v62 = vmul.f32 0.7978846, %v1010_v29  ;;  %v1013_v33 = vadd.f32 %v1004_v9, %v3846_v6 }
 0x216   : > { %v3234_v55 = vpop.eup %3233  ;;  %v1021_v47 = vmul.f32 0.7978846, %v1012_v8  ;;  %v603_v42 = vmul.f32 0.5, %v3741_v20  ;;  %v600_v29 = vmul.f32 0.5, %v3747_v27  ;;  %v729_v8 = vadd.f32 1.0, %v3232_v44 }
 0x217   : > { %v1047_v60 = vmul.f32 %v1038_v53, %v975_v31  ;;  %v1062_v28 = vmul.f32 0.5, %v1059_v50  ;;  %v3236_v38 = vpop.eup %3235  ;;  %3247 = vtanh.f32 %v1019_v62  ;;  %v1022_v45 = vmul.f32 0.7978846, %v1013_v33 }
 0x218   : > { %v3238_v19 = vpop.eup %3237  ;;  %v725_v41 = vadd.f32 1.0, %v3234_v55  ;;  %v592_v53 = vmul.f32 0.5, %v3752_v39  ;;  %v726_v63 = vadd.f32 1.0, %v3236_v38  ;;  %v971_v62 = vmul.f32 0.5, %v3815_v4 }
 0x219   : > { %v1074_v18 = vadd.f32 %v1047_v60, %v3861_v58  ;;  %3249 = vtanh.f32 %v1062_v28  ;;  %v3240_v50 = vpop.eup %3239  ;;  %v1041_v54 = vadd.f32 1.0, %v3238_v19  ;;  %v970_v60 = vmul.f32 0.5, %v3808_v51 }
 0x21a   : > { %v3242_v15 = vpop.eup %3241  ;;  %v1033_v17 = vadd.f32 1.0, %v3240_v50  ;;  %v728_v55 = vadd.f32 1.0, %v3228_v30  ;;  %v3879_v39 = vmul.f32 %v725_v41, %v599_v3  ;;  %v3881_v9 = vmul.f32 %v726_v63, %v600_v29 }
 0x21b   : > { %v1077_v31 = vmul.f32 0.5, %v1074_v18  ;;  %v3244_v20 = vpop.eup %3243  ;;  %v1034_v28 = vadd.f32 1.0, %v3242_v15  ;;  %v1050_v51 = vmul.f32 %v1041_v54, %v978_v23  ;;  %v973_v4 = vmul.f32 0.5, %v3826_v24 }
 0x21c   : > { %v1042_v27 = vmul.f32 %v1033_v17, %v970_v60  ;;  %v718_v19 = vadd.f32 1.0, %v3244_v20  ;;  %v974_v30 = vmul.f32 0.5, %v3831_v43  ;;  %v3889_v41 = vmul.f32 %v729_v8, %v603_v42 }
 0x21d   : > { %3251 = vtanh.f32 %v1077_v31  ;;  %v3246_v38 = vpop.eup %3245  ;;  %v1043_v14 = vmul.f32 %v1034_v28, %v971_v62  ;;  %v1053_v29 = vsub.f32 0.0, %v1050_v51 }
 0x21e   : > { %3253 = vtanh.f32 %v1021_v47  ;;  %v1057_v33 = vadd.f32 %v1042_v27, %v3879_v39  ;;  %v1036_v25 = vadd.f32 1.0, %v3246_v38  ;;  %v3891_v24 = vmul.f32 %v718_v19, %v592_v53 }
 0x21f   : > { %3255 = vtanh.f32 %v1022_v45  ;;  %v1058_v31 = vadd.f32 %v1043_v14, %v3881_v9  ;;  %v3887_v45 = vmul.f32 %v728_v55, %v602_v26  ;;  %v976_v14 = vmul.f32 0.5, %v3841_v59 }
 0x220   : > { %3257 = vtanh.f32 %v680_v13  ;;  %v1045_v44 = vmul.f32 %v1036_v25, %v973_v4  ;;  %v1060_v3 = vmul.f32 0.5, %v1057_v33  ;;  %v1056_v42 = vadd.f32 %v1053_v29, %v3891_v24  ;;  %v3907_v4 = vld [vmem:[%s4572_s5] sm:$0xff] }
 0x221   : > { %v3248_v18 = vpop.eup %3247  ;;  %3259 = vtanh.f32 %v681_v11  ;;  %v1061_v63 = vmul.f32 0.5, %v1058_v31  ;;  %v590_v31 = vmul.f32 0.5, %v3767_v52 }
 0x222   : > { %v1037_v47 = vadd.f32 1.0, %v3248_v18  ;;  %v1072_v15 = vadd.f32 %v1045_v44, %v3887_v45  ;;  %3261 = vtanh.f32 %v1060_v3  ;;  %v977_v18 = vmul.f32 0.5, %v3846_v6  ;;  %v3919_v44 = vld [vmem:[%s4572_s5 + $0x8] sm:$0xff] }
 0x223   : > { %v3250_v22 = vpop.eup %3249  ;;  %3263 = vtanh.f32 %v1061_v63 }
 0x224   : > { %v1068_v13 = vmul.f32 0.5, %v3250_v22  ;;  %v1046_v50 = vmul.f32 %v1037_v47, %v974_v30  ;;  %v1075_v17 = vmul.f32 0.5, %v1072_v15 }
 0x226   : > { %v1071_v43 = vadd.f32 0.5, %v1068_v13  ;;  %v1073_v26 = vadd.f32 %v1046_v50, %v3889_v41  ;;  %3265 = vtanh.f32 %v1075_v17  ;;  %v591_v50 = vmul.f32 0.5, %v3780_v5  ;;  %v3934_v5 = vld [vmem:[%s4572_s5 + $0x10] sm:$0xff] }
 0x227   : > { %v3252_v54 = vpop.eup %3251 }
 0x228   : > { %v1083_v11 = vmul.f32 0.5, %v3252_v54  ;;  %v3254_v60 = vpop.eup %3253  ;;  %v1076_v28 = vmul.f32 0.5, %v1073_v26  ;;  %v1089_v53 = vmul.f32 %v1071_v43, %v3673_v46 }
 0x229   : > { %v3256_v20 = vpop.eup %3255  ;;  %v1039_v55 = vadd.f32 1.0, %v3254_v60 }
 0x22a   : > { %v1086_v62 = vadd.f32 0.5, %v1083_v11  ;;  %v3258_v23 = vpop.eup %3257  ;;  %3267 = vtanh.f32 %v1076_v28  ;;  %v1040_v38 = vadd.f32 1.0, %v3256_v20 }
 0x22b   : > { %v3260_v8 = vpop.eup %3259  ;;  %v1048_v19 = vmul.f32 %v1039_v55, %v976_v14  ;;  %v716_v30 = vadd.f32 1.0, %v3258_v23 }
 0x22c   : > { %v1092_v27 = vmul.f32 %v1086_v62, %v1056_v42  ;;  %v3262_v46 = vpop.eup %3261  ;;  %v1049_v25 = vmul.f32 %v1040_v38, %v977_v18  ;;  %v717_v47 = vadd.f32 1.0, %v3260_v8 }
 0x22d   : > { %v3264_v22 = vpop.eup %3263  ;;  %v1066_v59 = vmul.f32 0.5, %v3262_v46  ;;  %v1051_v13 = vsub.f32 0.0, %v1048_v19  ;;  %v3922_v54 = vmul.f32 %v716_v30, %v590_v31  ;;  %v3971_v30 = vpop.permute.xlu1 %1101 }
 0x22e   : > { %v3898_v51 = vadd.f32 %v1092_v27, %v1089_v53  ;;  %v1067_v6 = vmul.f32 0.5, %v3264_v22  ;;  %v1052_v29 = vsub.f32 0.0, %v1049_v25  ;;  %v3924_v11 = vmul.f32 %v717_v47, %v591_v50 }
 0x22f   : > { %v1069_v15 = vadd.f32 0.5, %v1066_v59  ;;  %v1054_v60 = vadd.f32 %v1051_v13, %v3922_v54 }
 0x230   : > { %v3902_v33 = vmax.f32 %v3898_v51, 0.0  ;;  %v3266_v3 = vpop.eup %3265  ;;  %v1070_v52 = vadd.f32 0.5, %v1067_v6  ;;  %v1055_v20 = vadd.f32 %v1052_v29, %v3924_v11 }
 0x231   : > { %v1081_v43 = vmul.f32 0.5, %v3266_v3  ;;  %v1087_v62 = vmul.f32 %v1069_v15, %v3708_v1  ;;  %v345_v1 = vpop.permute.xlu0 %344 }
 0x232   : > { %3104 = vmatpush3.msra.mxu0 %v3902_v33  ;;  %v1088_v23 = vmul.f32 %v1070_v52, %v3710_v2  ;;  %v569_v2 = vadd.f32 %v3647_v35, %v345_v1  ;;  %v3966_v46 = vadd.f32 %v3643_v32, %v345_v1  ;;  %v3969_v25 = vadd.f32 %v3645_v34, %v345_v1 }
 0x233   : > { %3106 = vmatmul.mubr.msk.f32.vlgmr.msra.gmra.mrb[16].mxu0 %vm797_vm3, %v3907_v4  ;;  %3114 = vmatprep.subr.mxu0 %v3480_v0  ;;  %v1084_v17 = vadd.f32 0.5, %v1081_v43 }
 0x234   : > { %3108 = vmatprep.mubr.msk.f32.mxu0 %vm3482_vm2, %v3480_v0  ;;  %v3268_v63 = vpop.eup %3267  ;;  %v613_v14 = vmul.f32 0.044715, %v569_v2  ;;  %v611_v47 = vmul.f32 0.044715, %v3966_v46  ;;  %v612_v35 = vmul.f32 0.044715, %v3969_v25 }
 0x235   : > { %v1082_v26 = vmul.f32 0.5, %v3268_v63  ;;  %v1090_v28 = vmul.f32 %v1084_v17, %v1054_v60  ;;  %v3976_v3 = vpop.permute.xlu0 %1106 }
 0x236   : > { %v631_v18 = vmul.f32 %v613_v14, %v569_v2  ;;  %v629_v50 = vmul.f32 %v611_v47, %v3966_v46  ;;  %v630_v15 = vmul.f32 %v612_v35, %v3969_v25 }
 0x237   : > { %3109 = vmatmul.mubr.msk.f32.gmra.mrb[18].mxu0 %vm797_vm3, %v3919_v44  ;;  %v1085_v42 = vadd.f32 0.5, %v1082_v26  ;;  %v3941_v53 = vadd.f32 %v1090_v28, %v1087_v62  ;;  %v3981_v26 = vpop.permute.xlu1 %1111 }
 0x238   : > { %3111 = vmatprep.mubr.msk.f32.mxu0 %vm3482_vm2, %v3480_v0  ;;  %v649_v19 = vmul.f32 %v631_v18, %v569_v2  ;;  %v647_v17 = vmul.f32 %v629_v50, %v3966_v46 }
 0x239   : > { %v1091_v55 = vmul.f32 %v1085_v42, %v1055_v20  ;;  %v3951_v8 = vmax.f32 %v3941_v53, 0.0 }
 0x23a   : > { %v667_v22 = vadd.f32 %v649_v19, %v569_v2  ;;  %v665_v18 = vadd.f32 %v647_v17, %v3966_v46 }
 0x23b   : > { %3112 = vmatmul.mubr.msk.f32.gmra.mrb[20].mxu0 %vm797_vm3, %v3934_v5  ;;  %v3945_v27 = vadd.f32 %v1091_v55, %v1088_v23  ;;  %v648_v23 = vmul.f32 %v630_v15, %v3969_v25 }
 0x23c   : > { %3116 = vmatprep.mubr.msk.f32.mxu0 %vm3482_vm2, %v3480_v0  ;;  %v685_v31 = vmul.f32 0.7978846, %v667_v22 }
 0x23d   : > { %v3948_v38 = vmax.f32 %v3945_v27, 0.0 }
 0x23e   : > { %3269 = vtanh.f32 %v685_v31 }
 0x23f   : > { %1123 = vmatprep.subr.mxu1 %v3948_v38 }
 0x240   : > { %1124 = vmatpush1.msra.mxu1 %v3951_v8 }
 0x241   : > { %3008 = vmatmul.mubr.msk.f32.vlgmr.msra.gmra.mrb[14].mxu1 %vm797_vm3, %v3907_v4 }
 0x242   : > { %1193 = vmatprep.mubr.f32.mxu1 %v3480_v0 }
 0x245   : > { %3009 = vmatmul.mubr.msk.f32.gmra.mrb[16].mxu1 %vm797_vm3, %v3919_v44 }
 0x246   : > { %1199 = vmatprep.mubr.f32.mxu1 %v3480_v0 }
 0x248   : > { %v3270_v35 = vpop.eup %3269 }
 0x249   : > { %3010 = vmatmul.mubr.msk.f32.gmra.mrb[18].mxu1 %vm797_vm3, %v3934_v5  ;;  %v721_v15 = vadd.f32 1.0, %v3270_v35 }
 0x24a   : > { %1479 = vmatprep.mubr.f32.mxu1 %v3480_v0 }
 0x306   : > { %v1272_v59 = vpop.f32.mrb[16].mxu0 }
 0x307   : > { %v1273_v0 = vadd.f32 %v1272_v59, %v3971_v30  ;;  %v3107_v6 = vpop.f32.mrb[17].mxu0  ;;  %v666_v59 = vadd.f32 %v648_v23, %v3969_v25 }
 0x309   : > { %v1297_v13 = vmul.f32 0.044715, %v1273_v0 }
 0x30a   : > { %v1277_v32 = vpop.f32.mrb[18].mxu0 }
 0x30b   : > { %v1306_v34 = vmul.f32 %v1297_v13, %v1273_v0  ;;  %v1278_v29 = vadd.f32 %v1277_v32, %v3976_v3  ;;  %v3110_v63 = vpop.f32.mrb[19].mxu0  ;;  %v683_v13 = vmul.f32 0.7978846, %v665_v18 }
 0x30d   : > { %v1315_v43 = vmul.f32 %v1306_v34, %v1273_v0  ;;  %v1300_v52 = vmul.f32 0.044715, %v1278_v29  ;;  %v684_v34 = vmul.f32 0.7978846, %v666_v59  ;;  %v1288_v59 = vmul.f32 0.5, %v1273_v0 }
 0x30e   : > { %v1282_v60 = vpop.f32.mrb[20].mxu0 }
 0x30f   : > { %v1324_v20 = vadd.f32 %v1315_v43, %v1273_v0  ;;  %v1309_v42 = vmul.f32 %v1300_v52, %v1278_v29  ;;  %v3985_v62 = vadd.f32 %v1282_v60, %v3981_v26  ;;  %v3113_v28 = vpop.f32.mrb[21].mxu0 }
 0x311   : > { %v1333_v55 = vmul.f32 0.7978846, %v1324_v20  ;;  %v1318_v1 = vmul.f32 %v1309_v42, %v1278_v29  ;;  %v1303_v14 = vmul.f32 0.044715, %v3985_v62  ;;  %v595_v20 = vmul.f32 0.5, %v569_v2 }
 0x313   : > { %3271 = vtanh.f32 %v1333_v55  ;;  %v1327_v19 = vadd.f32 %v1318_v1, %v1278_v29  ;;  %v1312_v22 = vmul.f32 %v1303_v14, %v3985_v62  ;;  %v4010_v18 = vmul.f32 %v721_v15, %v595_v20 }
 0x314   : > { %v1189_v31 = vpop.f32.mrb[14].mxu1 }
 0x315   : > { %v1336_v47 = vmul.f32 0.7978846, %v1327_v19  ;;  %v1321_v6 = vmul.f32 %v1312_v22, %v3985_v62  ;;  %v3994_v32 = vadd.f32 %v1189_v31, %v3971_v30  ;;  %v1191_v50 = vpop.f32.mrb[15].mxu1 }
 0x316   : > { %v3997_v63 = vadd.f32 %v1191_v50, %v3971_v30 }
 0x317   : > { %3273 = vtanh.f32 %v1336_v47  ;;  %v1295_v43 = vmul.f32 0.044715, %v3994_v32  ;;  %v1330_v52 = vadd.f32 %v1321_v6, %v3985_v62 }
 0x318   : > { %v1296_v60 = vmul.f32 0.044715, %v3997_v63  ;;  %v1195_v17 = vpop.f32.mrb[16].mxu1  ;;  %3275 = vtanh.f32 %v683_v13  ;;  %v1291_v13 = vmul.f32 0.5, %v1278_v29 }
 0x319   : > { %v1304_v42 = vmul.f32 %v1295_v43, %v3994_v32  ;;  %v4004_v28 = vadd.f32 %v1195_v17, %v3976_v3  ;;  %v1197_v23 = vpop.f32.mrb[17].mxu1  ;;  %3277 = vtanh.f32 %v684_v34  ;;  %v1339_v22 = vmul.f32 0.7978846, %v1330_v52 }
 0x31a   : > { %v1305_v55 = vmul.f32 %v1296_v60, %v3997_v63  ;;  %v4008_v1 = vadd.f32 %v1197_v23, %v3976_v3 }
 0x31b   : > { %v1313_v19 = vmul.f32 %v1304_v42, %v3994_v32  ;;  %v1298_v2 = vmul.f32 0.044715, %v4004_v28  ;;  %3279 = vtanh.f32 %v1339_v22 }
 0x31c   : > { %v1314_v6 = vmul.f32 %v1305_v55, %v3997_v63  ;;  %v1299_v35 = vmul.f32 0.044715, %v4008_v1  ;;  %v1201_v31 = vpop.f32.mrb[18].mxu1 }
 0x31d   : > { %v3272_v14 = vpop.eup %3271  ;;  %v1322_v50 = vadd.f32 %v1313_v19, %v3994_v32  ;;  %v1307_v34 = vmul.f32 %v1298_v2, %v4004_v28  ;;  %v4019_v15 = vadd.f32 %v1201_v31, %v3981_v26  ;;  %v1203_v43 = vpop.f32.mrb[19].mxu1 }
 0x31e   : > { %v1351_v47 = vadd.f32 1.0, %v3272_v14  ;;  %v1323_v52 = vadd.f32 %v1314_v6, %v3997_v63  ;;  %v1308_v0 = vmul.f32 %v1299_v35, %v4008_v1  ;;  %v4024_v17 = vadd.f32 %v1203_v43, %v3981_v26 }
 0x31f   : > { %v1331_v42 = vmul.f32 0.7978846, %v1322_v50  ;;  %v1316_v29 = vmul.f32 %v1307_v34, %v4004_v28  ;;  %v1301_v23 = vmul.f32 0.044715, %v4019_v15 }
 0x320   : > { %v1360_v60 = vmul.f32 %v1351_v47, %v1288_v59  ;;  %v1332_v19 = vmul.f32 0.7978846, %v1323_v52  ;;  %v1317_v2 = vmul.f32 %v1308_v0, %v4008_v1  ;;  %v1302_v22 = vmul.f32 0.044715, %v4024_v17 }
 0x321   : > { %v3274_v20 = vpop.eup %3273  ;;  %3281 = vtanh.f32 %v1331_v42  ;;  %v1325_v59 = vadd.f32 %v1316_v29, %v4004_v28  ;;  %v1310_v47 = vmul.f32 %v1301_v23, %v4019_v15 }
 0x322   : > { %v1375_v55 = vadd.f32 %v1360_v60, %v4010_v18  ;;  %v1354_v14 = vadd.f32 1.0, %v3274_v20  ;;  %3283 = vtanh.f32 %v1332_v19  ;;  %v1326_v35 = vadd.f32 %v1317_v2, %v4008_v1  ;;  %v3276_v31 = vpop.eup %3275 }
 0x323   : > { %v1334_v50 = vmul.f32 0.7978846, %v1325_v59  ;;  %v3278_v43 = vpop.eup %3277  ;;  %v1319_v0 = vmul.f32 %v1310_v47, %v4019_v15  ;;  %v1311_v20 = vmul.f32 %v1302_v22, %v4024_v17  ;;  %v593_v2 = vmul.f32 0.5, %v3966_v46 }
 0x324   : > { %v1363_v6 = vmul.f32 %v1354_v14, %v1291_v13  ;;  %v1378_v34 = vmul.f32 0.5, %v1375_v55  ;;  %v1335_v52 = vmul.f32 0.7978846, %v1326_v35  ;;  %v719_v14 = vadd.f32 1.0, %v3276_v31 }
 0x325   : > { %3285 = vtanh.f32 %v1334_v50  ;;  %v1320_v13 = vmul.f32 %v1311_v20, %v4024_v17  ;;  %v1328_v29 = vadd.f32 %v1319_v0, %v4019_v15  ;;  %v3280_v23 = vpop.eup %3279  ;;  %v720_v59 = vadd.f32 1.0, %v3278_v43 }
 0x326   : > { %v1390_v60 = vadd.f32 %v1363_v6, %v3660_v12  ;;  %3287 = vtanh.f32 %v1335_v52  ;;  %v594_v6 = vmul.f32 0.5, %v3969_v25  ;;  %v1286_v35 = vmul.f32 0.5, %v3994_v32 }
 0x327   : > { %3289 = vtanh.f32 %v1378_v34  ;;  %v1329_v55 = vadd.f32 %v1320_v13, %v4024_v17  ;;  %v1337_v50 = vmul.f32 0.7978846, %v1328_v29  ;;  %v1287_v34 = vmul.f32 0.5, %v3997_v63 }
 0x328   : > { %v1393_v42 = vmul.f32 0.5, %v1390_v60  ;;  %v1357_v60 = vadd.f32 1.0, %v3280_v23  ;;  %v4044_v20 = vmul.f32 %v719_v14, %v593_v2  ;;  %v1294_v46 = vmul.f32 0.5, %v3985_v62 }
 0x329   : > { %v1338_v0 = vmul.f32 0.7978846, %v1329_v55  ;;  %v1289_v25 = vmul.f32 0.5, %v4004_v28  ;;  %v1290_v23 = vmul.f32 0.5, %v4008_v1  ;;  %v1369_v28 = vadd.f32 %v3902_v33, %v3667_v36 }
 0x32a   : > { %3291 = vtanh.f32 %v1393_v42  ;;  %v4046_v42 = vmul.f32 %v720_v59, %v594_v6  ;;  %v1366_v55 = vmul.f32 %v1357_v60, %v1294_v46 }
 0x32b   : > { %v3282_v19 = vpop.eup %3281  ;;  %3293 = vtanh.f32 %v1337_v50 }
 0x32c   : > { %v3284_v47 = vpop.eup %3283  ;;  %v1349_v22 = vadd.f32 1.0, %v3282_v19  ;;  %3295 = vtanh.f32 %v1338_v0  ;;  %v1372_v50 = vsub.f32 %v1369_v28, %v1366_v55  ;;  %v4064_v55 = vld [vmem:[%s3561_s20 + $0x10] sm:$0xff] }
 0x32d   : > { %v1350_v52 = vadd.f32 1.0, %v3284_v47 }
 0x32e   : > { %v1358_v13 = vmul.f32 %v1349_v22, %v1286_v35 }
 0x32f   : > { %v3286_v31 = vpop.eup %3285  ;;  %v1359_v43 = vmul.f32 %v1350_v52, %v1287_v34 }
 0x330   : > { %v3288_v12 = vpop.eup %3287  ;;  %v1373_v32 = vadd.f32 %v1358_v13, %v4044_v20  ;;  %v1352_v29 = vadd.f32 1.0, %v3286_v31 }
 0x331   : > { %v3290_v63 = vpop.eup %3289  ;;  %v1353_v14 = vadd.f32 1.0, %v3288_v12  ;;  %v1374_v19 = vadd.f32 %v1359_v43, %v4046_v42 }
 0x332   : > { %v1361_v59 = vmul.f32 %v1352_v29, %v1289_v25  ;;  %v1384_v47 = vmul.f32 0.5, %v3290_v63  ;;  %v1376_v62 = vmul.f32 0.5, %v1373_v32 }
 0x333   : > { %v1362_v6 = vmul.f32 %v1353_v14, %v1290_v23  ;;  %v1377_v22 = vmul.f32 0.5, %v1374_v19  ;;  %v1292_v14 = vmul.f32 0.5, %v4019_v15 }
 0x334   : > { %v3292_v2 = vpop.eup %3291  ;;  %v1388_v34 = vadd.f32 %v1361_v59, %v3664_v21  ;;  %v1387_v1 = vadd.f32 0.5, %v1384_v47  ;;  %3297 = vtanh.f32 %v1376_v62 }
 0x335   : > { %v1399_v35 = vmul.f32 0.5, %v3292_v2  ;;  %3299 = vtanh.f32 %v1377_v22  ;;  %v1389_v12 = vadd.f32 %v1362_v6, %v3669_v37  ;;  %v3294_v43 = vpop.eup %3293  ;;  %v1293_v2 = vmul.f32 0.5, %v4024_v17 }
 0x336   : > { %v1391_v52 = vmul.f32 0.5, %v1388_v34  ;;  %v1405_v0 = vmul.f32 %v1387_v1, %v3898_v51  ;;  %v3296_v25 = vpop.eup %3295  ;;  %v1355_v29 = vadd.f32 1.0, %v3294_v43  ;;  %v1367_v6 = vadd.f32 %v3951_v8, %v3686_v56 }
 0x337   : > { %v1402_v60 = vadd.f32 0.5, %v1399_v35  ;;  %v1392_v31 = vmul.f32 0.5, %v1389_v12  ;;  %v1356_v63 = vadd.f32 1.0, %v3296_v25  ;;  %v1368_v22 = vadd.f32 %v3948_v38, %v3695_v48 }
 0x338   : > { %3301 = vtanh.f32 %v1391_v52  ;;  %v1364_v47 = vmul.f32 %v1355_v29, %v1292_v14 }
 0x339   : > { %v1408_v13 = vmul.f32 %v1402_v60, %v1372_v50  ;;  %3303 = vtanh.f32 %v1392_v31 }
 0x33a   : > { %v1370_v1 = vsub.f32 %v1367_v6, %v1364_v47 }
 0x33b   : > { %v4058_v46 = vadd.f32 %v1408_v13, %v1405_v0 }
 0x33d   : > { %v1414_v32 = vmax.f32 %v4058_v46, 0.0 }
 0x33e   : > { %v3298_v23 = vpop.eup %3297 }
 0x33f   : > { %3115 = vmatpush3.msra.mxu0 %v1414_v32  ;;  %v3300_v51 = vpop.eup %3299  ;;  %v1382_v19 = vmul.f32 0.5, %v3298_v23 }
 0x340   : > { %3117 = vmatmul.mubr.msk.f32.vlgmr.msra.gmra.mrb[22].mxu0 %vm797_vm3, %v3679_v49  ;;  %3125 = vmatprep.subr.mxu0 %v4064_v55  ;;  %v1383_v59 = vmul.f32 0.5, %v3300_v51  ;;  %v1365_v49 = vmul.f32 %v1356_v63, %v1293_v2 }
 0x341   : > { %3119 = vmatprep.mubr.msk.f32.mxu0 %vm3482_vm2, %v4064_v55  ;;  %v1385_v15 = vadd.f32 0.5, %v1382_v19 }
 0x342   : > { %v3302_v62 = vpop.eup %3301  ;;  %v1386_v17 = vadd.f32 0.5, %v1383_v59  ;;  %v1371_v60 = vsub.f32 %v1368_v22, %v1365_v49 }
 0x343   : > { %v3304_v28 = vpop.eup %3303  ;;  %v1397_v35 = vmul.f32 0.5, %v3302_v62 }
 0x344   : > { %3120 = vmatmul.mubr.msk.f32.gmra.mrb[24].mxu0 %vm797_vm3, %v3693_v57  ;;  %v1398_v34 = vmul.f32 0.5, %v3304_v28  ;;  %v1403_v57 = vmul.f32 %v1385_v15, %v3941_v53  ;;  %v1404_v0 = vmul.f32 %v1386_v17, %v3945_v27  ;;  %v4102_v53 = vld [vmem:[%s4570_s3 + $0x8] sm:$0xff]  ;;  %v4110_v27 = vld [vmem:[%s4570_s3 + $0x10] sm:$0xff] }
 0x345   : > { %3122 = vmatprep.mubr.msk.f32.mxu0 %vm3482_vm2, %v4064_v55  ;;  %v1400_v50 = vadd.f32 0.5, %v1397_v35 }
 0x346   : > { %v1401_v12 = vadd.f32 0.5, %v1398_v34 }
 0x347   : > { %v1406_v52 = vmul.f32 %v1400_v50, %v1370_v1 }
 0x348   : > { %3123 = vmatmul.mubr.msk.f32.gmra.mrb[26].mxu0 %vm797_vm3, %v3705_v61  ;;  %v1407_v13 = vmul.f32 %v1401_v12, %v1371_v60  ;;  %v4094_v61 = vld [vmem:[%s4570_s3] sm:$0xff] }
 0x349   : > { %3127 = vmatprep.mubr.msk.f32.mxu0 %vm3482_vm2, %v4064_v55  ;;  %v4085_v31 = vadd.f32 %v1406_v52, %v1403_v57 }
 0x34a   : > { %v4087_v43 = vadd.f32 %v1407_v13, %v1404_v0 }
 0x34b   : > { %v1412_v32 = vmax.f32 %v4085_v31, 0.0 }
 0x34c   : > { %v1413_v25 = vmax.f32 %v4087_v43, 0.0 }
 0x34e   : > { %1415 = vmatprep.subr.mxu1 %v1413_v25 }
 0x34f   : > { %1416 = vmatpush1.msra.mxu1 %v1412_v32 }
 0x350   : > { %3014 = vmatmul.mubr.msk.f32.vlgmr.msra.gmra.mrb[20].mxu1 %vm797_vm3, %v4094_v61 }
 0x351   : > { %1485 = vmatprep.mubr.f32.mxu1 %v4064_v55 }
 0x354   : > { %3015 = vmatmul.mubr.msk.f32.gmra.mrb[22].mxu1 %vm797_vm3, %v4102_v53 }
 0x355   : > { %1491 = vmatprep.mubr.f32.mxu1 %v4064_v55 }
 0x358   : > { %3016 = vmatmul.mubr.msk.f32.gmra.mrb[24].mxu1 %vm797_vm3, %v4110_v27 }
 0x359   : > { %1771 = vmatprep.mubr.f32.mxu1 %v4064_v55 }
 0x413   : > { %v1564_v29 = vpop.f32.mrb[22].mxu0 }
 0x414   : > { %v1565_v23 = vadd.f32 %v1564_v29, %v3754_v40  ;;  %v3118_v63 = vpop.f32.mrb[23].mxu0 }
 0x416   : > { %v1589_v51 = vmul.f32 0.044715, %v1565_v23 }
 0x417   : > { %v1569_v14 = vpop.f32.mrb[24].mxu0 }
 0x418   : > { %v1598_v19 = vmul.f32 %v1589_v51, %v1565_v23  ;;  %v1570_v2 = vadd.f32 %v1569_v14, %v3733_v16  ;;  %v3121_v59 = vpop.f32.mrb[25].mxu0 }
 0x41a   : > { %v1607_v47 = vmul.f32 %v1598_v19, %v1565_v23  ;;  %v1592_v62 = vmul.f32 0.044715, %v1570_v2 }
 0x41b   : > { %v1574_v49 = vpop.f32.mrb[26].mxu0 }
 0x41c   : > { %v1616_v28 = vadd.f32 %v1607_v47, %v1565_v23  ;;  %v1601_v6 = vmul.f32 %v1592_v62, %v1570_v2  ;;  %v4118_v15 = vadd.f32 %v1574_v49, %v3786_v10  ;;  %v3124_v35 = vpop.f32.mrb[27].mxu0  ;;  %v1580_v62 = vmul.f32 0.5, %v1565_v23 }
 0x41e   : > { %v1625_v22 = vmul.f32 0.7978846, %v1616_v28  ;;  %v1610_v17 = vmul.f32 %v1601_v6, %v1570_v2  ;;  %v1595_v34 = vmul.f32 0.044715, %v4118_v15 }
 0x420   : > { %3305 = vtanh.f32 %v1625_v22  ;;  %v1619_v1 = vadd.f32 %v1610_v17, %v1570_v2  ;;  %v1604_v50 = vmul.f32 %v1595_v34, %v4118_v15 }
 0x422   : > { %v1628_v60 = vmul.f32 0.7978846, %v1619_v1  ;;  %v1613_v12 = vmul.f32 %v1604_v50, %v4118_v15 }
 0x423   : > { %v1481_v52 = vpop.f32.mrb[20].mxu1 }
 0x424   : > { %3307 = vtanh.f32 %v1628_v60  ;;  %v1622_v57 = vadd.f32 %v1613_v12, %v4118_v15  ;;  %v4125_v0 = vadd.f32 %v1481_v52, %v3754_v40  ;;  %v1483_v13 = vpop.f32.mrb[21].mxu1  ;;  %v1583_v12 = vmul.f32 0.5, %v1570_v2 }
 0x425   : > { %v4128_v25 = vadd.f32 %v1483_v13, %v3754_v40 }
 0x426   : > { %v1631_v32 = vmul.f32 0.7978846, %v1622_v57  ;;  %v1587_v29 = vmul.f32 0.044715, %v4125_v0 }
 0x427   : > { %v1588_v63 = vmul.f32 0.044715, %v4128_v25  ;;  %v1487_v51 = vpop.f32.mrb[22].mxu1 }
 0x428   : > { %v1596_v19 = vmul.f32 %v1587_v29, %v4125_v0  ;;  %v4134_v59 = vadd.f32 %v1487_v51, %v3733_v16  ;;  %v1489_v47 = vpop.f32.mrb[23].mxu1  ;;  %3309 = vtanh.f32 %v1631_v32 }
 0x429   : > { %v1597_v28 = vmul.f32 %v1588_v63, %v4128_v25  ;;  %v4138_v6 = vadd.f32 %v1489_v47, %v3733_v16 }
 0x42a   : > { %v3306_v14 = vpop.eup %3305  ;;  %v1605_v35 = vmul.f32 %v1596_v19, %v4125_v0  ;;  %v1590_v22 = vmul.f32 0.044715, %v4134_v59 }
 0x42b   : > { %v1643_v49 = vadd.f32 1.0, %v3306_v14  ;;  %v1606_v34 = vmul.f32 %v1597_v28, %v4128_v25  ;;  %v1591_v1 = vmul.f32 0.044715, %v4138_v6  ;;  %v1493_v50 = vpop.f32.mrb[24].mxu1 }
 0x42c   : > { %v1614_v23 = vadd.f32 %v1605_v35, %v4125_v0  ;;  %v1599_v57 = vmul.f32 %v1590_v22, %v4134_v59  ;;  %v4147_v52 = vadd.f32 %v1493_v50, %v3786_v10  ;;  %v1495_v13 = vpop.f32.mrb[25].mxu1 }
 0x42d   : > { %v1652_v17 = vmul.f32 %v1643_v49, %v1580_v62  ;;  %v1615_v63 = vadd.f32 %v1606_v34, %v4128_v25  ;;  %v1600_v51 = vmul.f32 %v1591_v1, %v4138_v6  ;;  %v4156_v28 = vadd.f32 %v1495_v13, %v3786_v10 }
 0x42e   : > { %v3308_v60 = vpop.eup %3307  ;;  %v1623_v14 = vmul.f32 0.7978846, %v1614_v23  ;;  %v1608_v19 = vmul.f32 %v1599_v57, %v4134_v59  ;;  %v1593_v2 = vmul.f32 0.044715, %v4147_v52 }
 0x42f   : > { %v1667_v32 = vadd.f32 %v1652_v17, %v3848_v7  ;;  %v1646_v29 = vadd.f32 1.0, %v3308_v60  ;;  %v1624_v62 = vmul.f32 0.7978846, %v1615_v63  ;;  %v1609_v49 = vmul.f32 %v1600_v51, %v4138_v6 }
 0x430   : > { %3311 = vtanh.f32 %v1623_v14  ;;  %v1617_v35 = vadd.f32 %v1608_v19, %v4134_v59  ;;  %v1602_v22 = vmul.f32 %v1593_v2, %v4147_v52  ;;  %v1586_v2 = vmul.f32 0.5, %v4118_v15 }
 0x431   : > { %v1655_v47 = vmul.f32 %v1646_v29, %v1583_v12  ;;  %v1670_v17 = vmul.f32 0.5, %v1667_v32  ;;  %3313 = vtanh.f32 %v1624_v62  ;;  %v1618_v1 = vadd.f32 %v1609_v49, %v4138_v6 }
 0x432   : > { %v1626_v50 = vmul.f32 0.7978846, %v1617_v35  ;;  %v1611_v60 = vmul.f32 %v1602_v22, %v4147_v52  ;;  %v1594_v12 = vmul.f32 0.044715, %v4156_v28  ;;  %v3310_v13 = vpop.eup %3309  ;;  %v1578_v22 = vmul.f32 0.5, %v4125_v0 }
 0x433   : > { %v1682_v34 = vadd.f32 %v1655_v47, %v3861_v58  ;;  %v1627_v23 = vmul.f32 0.7978846, %v1618_v1  ;;  %3315 = vtanh.f32 %v1670_v17  ;;  %v1649_v51 = vadd.f32 1.0, %v3310_v13 }
 0x434   : > { %3317 = vtanh.f32 %v1626_v50  ;;  %v1620_v29 = vadd.f32 %v1611_v60, %v4147_v52  ;;  %v1603_v63 = vmul.f32 %v1594_v12, %v4156_v28 }
 0x435   : > { %v1685_v57 = vmul.f32 0.5, %v1682_v34  ;;  %3319 = vtanh.f32 %v1627_v23  ;;  %v1658_v35 = vmul.f32 %v1649_v51, %v1586_v2  ;;  %v1579_v34 = vmul.f32 0.5, %v4128_v25 }
 0x436   : > { %v1612_v32 = vmul.f32 %v1603_v63, %v4156_v28  ;;  %v1629_v14 = vmul.f32 0.7978846, %v1620_v29  ;;  %v1581_v29 = vmul.f32 0.5, %v4134_v59  ;;  %v1582_v51 = vmul.f32 0.5, %v4138_v6 }
 0x437   : > { %3321 = vtanh.f32 %v1685_v57 }
 0x438   : > { %v1621_v19 = vadd.f32 %v1612_v32, %v4156_v28  ;;  %3323 = vtanh.f32 %v1629_v14  ;;  %v1661_v32 = vsub.f32 %v3902_v33, %v1658_v35 }
 0x43a   : > { %v3312_v47 = vpop.eup %3311  ;;  %v1630_v62 = vmul.f32 0.7978846, %v1621_v19 }
 0x43b   : > { %v3314_v49 = vpop.eup %3313  ;;  %v1641_v17 = vadd.f32 1.0, %v3312_v47 }
 0x43c   : > { %v1642_v1 = vadd.f32 1.0, %v3314_v49  ;;  %3325 = vtanh.f32 %v1630_v62 }
 0x43d   : > { %v3316_v50 = vpop.eup %3315  ;;  %v1650_v60 = vmul.f32 %v1641_v17, %v1578_v22 }
 0x43e   : > { %v3318_v12 = vpop.eup %3317  ;;  %v1651_v23 = vmul.f32 %v1642_v1, %v1579_v34  ;;  %v1676_v57 = vmul.f32 0.5, %v3316_v50  ;;  %v1664_v34 = vadd.f32 %v1661_v32, %v3891_v24 }
 0x43f   : > { %v3320_v13 = vpop.eup %3319  ;;  %v1665_v15 = vadd.f32 %v1650_v60, %v3879_v39  ;;  %v1644_v63 = vadd.f32 1.0, %v3318_v12 }
 0x440   : > { %v1645_v14 = vadd.f32 1.0, %v3320_v13  ;;  %v1666_v25 = vadd.f32 %v1651_v23, %v3881_v9  ;;  %v1679_v2 = vadd.f32 0.5, %v1676_v57 }
 0x441   : > { %v3322_v0 = vpop.eup %3321  ;;  %v1653_v19 = vmul.f32 %v1644_v63, %v1581_v29  ;;  %v1668_v62 = vmul.f32 0.5, %v1665_v15  ;;  %v1584_v29 = vmul.f32 0.5, %v4147_v52  ;;  %v1585_v63 = vmul.f32 0.5, %v4156_v28 }
 0x442   : > { %v1691_v47 = vmul.f32 0.5, %v3322_v0  ;;  %v1654_v49 = vmul.f32 %v1645_v14, %v1582_v51  ;;  %v1669_v22 = vmul.f32 0.5, %v1666_v25  ;;  %v3324_v35 = vpop.eup %3323  ;;  %v1697_v6 = vmul.f32 %v1679_v2, %v4058_v46 }
 0x443   : > { %v1680_v17 = vadd.f32 %v1653_v19, %v3887_v45  ;;  %3327 = vtanh.f32 %v1668_v62  ;;  %v1647_v57 = vadd.f32 1.0, %v3324_v35 }
 0x444   : > { %v1694_v59 = vadd.f32 0.5, %v1691_v47  ;;  %3329 = vtanh.f32 %v1669_v22  ;;  %v1681_v33 = vadd.f32 %v1654_v49, %v3889_v41 }
 0x445   : > { %v1683_v50 = vmul.f32 0.5, %v1680_v17  ;;  %v1656_v46 = vmul.f32 %v1647_v57, %v1584_v29 }
 0x446   : > { %v1700_v1 = vmul.f32 %v1694_v59, %v1664_v34  ;;  %v3326_v60 = vpop.eup %3325  ;;  %v1684_v12 = vmul.f32 0.5, %v1681_v33 }
 0x447   : > { %3331 = vtanh.f32 %v1683_v50  ;;  %v1648_v15 = vadd.f32 1.0, %v3326_v60  ;;  %v1659_v52 = vsub.f32 %v3951_v8, %v1656_v46 }
 0x448   : > { %v4180_v23 = vadd.f32 %v1700_v1, %v1697_v6  ;;  %3333 = vtanh.f32 %v1684_v12 }
 0x449   : > { %v1657_v0 = vmul.f32 %v1648_v15, %v1585_v63  ;;  %v1662_v17 = vadd.f32 %v1659_v52, %v3922_v54 }
 0x44a   : > { %v4183_v13 = vmax.f32 %v4180_v23, 0.0 }
 0x44b   : > { %v1660_v19 = vsub.f32 %v3948_v38, %v1657_v0 }
 0x44c   : > { %3126 = vmatpush3.msra.mxu0 %v4183_v13 }
 0x44d   : > { %3128 = vmatmul.mubr.msk.f32.vlgmr.msra.gmra.mrb[28].mxu0 %vm797_vm3, %v3907_v4  ;;  %3136 = vmatprep.subr.mxu0 %v4064_v55  ;;  %v3328_v32 = vpop.eup %3327  ;;  %v1663_v59 = vadd.f32 %v1660_v19, %v3924_v11 }
 0x44e   : > { %3130 = vmatprep.mubr.msk.f32.mxu0 %vm3482_vm2, %v4064_v55  ;;  %v3330_v51 = vpop.eup %3329  ;;  %v1674_v14 = vmul.f32 0.5, %v3328_v32 }
 0x44f   : > { %v1675_v25 = vmul.f32 0.5, %v3330_v51 }
 0x450   : > { %v1677_v47 = vadd.f32 0.5, %v1674_v14 }
 0x451   : > { %3131 = vmatmul.mubr.msk.f32.gmra.mrb[30].mxu0 %vm797_vm3, %v3919_v44  ;;  %v3332_v28 = vpop.eup %3331  ;;  %v1678_v49 = vadd.f32 0.5, %v1675_v25 }
 0x452   : > { %3133 = vmatprep.mubr.msk.f32.mxu0 %vm3482_vm2, %v4064_v55  ;;  %v3334_v2 = vpop.eup %3333  ;;  %v1689_v62 = vmul.f32 0.5, %v3332_v28  ;;  %v1695_v33 = vmul.f32 %v1677_v47, %v4085_v31 }
 0x453   : > { %v1690_v22 = vmul.f32 0.5, %v3334_v2  ;;  %v1696_v35 = vmul.f32 %v1678_v49, %v4087_v43 }
 0x454   : > { %v1692_v34 = vadd.f32 0.5, %v1689_v62 }
 0x455   : > { %3134 = vmatmul.mubr.msk.f32.gmra.mrb[32].mxu0 %vm797_vm3, %v3934_v5  ;;  %v1693_v8 = vadd.f32 0.5, %v1690_v22 }
 0x456   : > { %3138 = vmatprep.mubr.msk.f32.mxu0 %vm3482_vm2, %v4064_v55  ;;  %v1698_v38 = vmul.f32 %v1692_v34, %v1662_v17 }
 0x457   : > { %v1699_v6 = vmul.f32 %v1693_v8, %v1663_v59 }
 0x458   : > { %v4207_v1 = vadd.f32 %v1698_v38, %v1695_v33 }
 0x459   : > { %v4209_v50 = vadd.f32 %v1699_v6, %v1696_v35 }
 0x45a   : > { %v4215_v12 = vmax.f32 %v4207_v1, 0.0 }
 0x45b   : > { %v4212_v60 = vmax.f32 %v4209_v50, 0.0 }
 0x45d   : > { %1707 = vmatprep.subr.mxu1 %v4212_v60 }
 0x45e   : > { %1708 = vmatpush1.msra.mxu1 %v4215_v12 }
 0x45f   : > { %3020 = vmatmul.mubr.msk.f32.vlgmr.msra.gmra.mrb[26].mxu1 %vm797_vm3, %v3907_v4 }
 0x460   : > { %1777 = vmatprep.mubr.f32.mxu1 %v4064_v55 }
 0x463   : > { %3021 = vmatmul.mubr.msk.f32.gmra.mrb[28].mxu1 %vm797_vm3, %v3919_v44 }
 0x464   : > { %1783 = vmatprep.mubr.f32.mxu1 %v4064_v55 }
 0x467   : > { %3022 = vmatmul.mubr.msk.f32.gmra.mrb[30].mxu1 %vm797_vm3, %v3934_v5 }
 0x468   : > { %2063 = vmatprep.mubr.f32.mxu1 %v4064_v55 }
 0x520   : > { %v1856_v31 = vpop.f32.mrb[28].mxu0 }
 0x521   : > { %v1857_v43 = vadd.f32 %v1856_v31, %v3971_v30  ;;  %v3129_v57 = vpop.f32.mrb[29].mxu0 }
 0x523   : > { %v1881_v15 = vmul.f32 0.044715, %v1857_v43  ;;  %v1872_v57 = vmul.f32 0.5, %v1857_v43 }
 0x524   : > { %v1861_v29 = vpop.f32.mrb[30].mxu0 }
 0x525   : > { %v1890_v63 = vmul.f32 %v1881_v15, %v1857_v43  ;;  %v1862_v4 = vadd.f32 %v1861_v29, %v3976_v3  ;;  %v3132_v46 = vpop.f32.mrb[31].mxu0 }
 0x527   : > { %v1899_v32 = vmul.f32 %v1890_v63, %v1857_v43  ;;  %v1884_v0 = vmul.f32 0.044715, %v1862_v4 }
 0x528   : > { %v1866_v44 = vpop.f32.mrb[32].mxu0 }
 0x529   : > { %v1908_v51 = vadd.f32 %v1899_v32, %v1857_v43  ;;  %v1893_v14 = vmul.f32 %v1884_v0, %v1862_v4  ;;  %v4231_v25 = vadd.f32 %v1866_v44, %v3981_v26  ;;  %v3135_v5 = vpop.f32.mrb[33].mxu0 }
 0x52b   : > { %v1917_v52 = vmul.f32 0.7978846, %v1908_v51  ;;  %v1902_v28 = vmul.f32 %v1893_v14, %v1862_v4  ;;  %v1887_v19 = vmul.f32 0.044715, %v4231_v25 }
 0x52d   : > { %3335 = vtanh.f32 %v1917_v52  ;;  %v1911_v2 = vadd.f32 %v1902_v28, %v1862_v4  ;;  %v1896_v47 = vmul.f32 %v1887_v19, %v4231_v25  ;;  %v1875_v52 = vmul.f32 0.5, %v1862_v4 }
 0x52f   : > { %v1920_v62 = vmul.f32 0.7978846, %v1911_v2  ;;  %v1905_v49 = vmul.f32 %v1896_v47, %v4231_v25 }
 0x531   : > { %3337 = vtanh.f32 %v1920_v62  ;;  %v1914_v22 = vadd.f32 %v1905_v49, %v4231_v25 }
 0x532   : > { %v1773_v17 = vpop.f32.mrb[26].mxu1 }
 0x533   : > { %v1774_v34 = vadd.f32 %v1773_v17, %v3971_v30  ;;  %v1775_v59 = vpop.f32.mrb[27].mxu1  ;;  %v1923_v35 = vmul.f32 0.7978846, %v1914_v22 }
 0x534   : > { %v4239_v8 = vadd.f32 %v1775_v59, %v3971_v30 }
 0x535   : > { %v1879_v33 = vmul.f32 0.044715, %v1774_v34  ;;  %3339 = vtanh.f32 %v1923_v35 }
 0x536   : > { %v1880_v6 = vmul.f32 0.044715, %v4239_v8  ;;  %v1779_v31 = vpop.f32.mrb[28].mxu1 }
 0x537   : > { %v3336_v38 = vpop.eup %3335  ;;  %v1888_v29 = vmul.f32 %v1879_v33, %v1774_v34  ;;  %v4243_v63 = vadd.f32 %v1779_v31, %v3976_v3  ;;  %v1781_v46 = vpop.f32.mrb[29].mxu1 }
 0x538   : > { %v1935_v15 = vadd.f32 1.0, %v3336_v38  ;;  %v1889_v32 = vmul.f32 %v1880_v6, %v4239_v8  ;;  %v4247_v0 = vadd.f32 %v1781_v46, %v3976_v3  ;;  %v4578_v46 = vld [vmem:[#allocation2_spill] sm:$0xff] }
 0x539   : > { %v1897_v51 = vmul.f32 %v1888_v29, %v1774_v34  ;;  %v1882_v14 = vmul.f32 0.044715, %v4243_v63 }
 0x53a   : > { %v1944_v44 = vmul.f32 %v1935_v15, %v1872_v57  ;;  %v1898_v43 = vmul.f32 %v1889_v32, %v4239_v8  ;;  %v1883_v28 = vmul.f32 0.044715, %v4247_v0  ;;  %v1785_v19 = vpop.f32.mrb[30].mxu1 }
 0x53b   : > { %v3338_v5 = vpop.eup %3337  ;;  %v1906_v62 = vadd.f32 %v1897_v51, %v1774_v34  ;;  %v1891_v49 = vmul.f32 %v1882_v14, %v4243_v63  ;;  %v1787_v22 = vpop.f32.mrb[31].mxu1  ;;  %v4257_v33 = vadd.f32 %v1785_v19, %v3981_v26 }
 0x53c   : > { %v1959_v2 = vadd.f32 %v1944_v44, %v4010_v18  ;;  %v1938_v47 = vadd.f32 1.0, %v3338_v5  ;;  %v1907_v17 = vadd.f32 %v1898_v43, %v4239_v8  ;;  %v1892_v59 = vmul.f32 %v1883_v28, %v4247_v0 }
 0x53d   : > { %v4260_v4 = vadd.f32 %v1787_v22, %v3981_v26  ;;  %v1915_v35 = vmul.f32 0.7978846, %v1906_v62  ;;  %v1900_v6 = vmul.f32 %v1891_v49, %v4243_v63  ;;  %v1885_v29 = vmul.f32 0.044715, %v4257_v33 }
 0x53e   : > { %v1947_v38 = vmul.f32 %v1938_v47, %v1875_v52  ;;  %v1962_v31 = vmul.f32 0.5, %v1959_v2  ;;  %v1916_v57 = vmul.f32 0.7978846, %v1907_v17  ;;  %v1901_v15 = vmul.f32 %v1892_v59, %v4247_v0 }
 0x53f   : > { %3341 = vtanh.f32 %v1915_v35  ;;  %v1909_v44 = vadd.f32 %v1900_v6, %v4243_v63  ;;  %v1894_v14 = vmul.f32 %v1885_v29, %v4257_v33  ;;  %v1886_v52 = vmul.f32 0.044715, %v4260_v4  ;;  %v3340_v47 = vpop.eup %3339 }
 0x540   : > { %v1974_v32 = vadd.f32 %v1947_v38, %v4578_v46  ;;  %3343 = vtanh.f32 %v1916_v57  ;;  %v1910_v51 = vadd.f32 %v1901_v15, %v4247_v0  ;;  %v1941_v38 = vadd.f32 1.0, %v3340_v47 }
 0x541   : > { %v1918_v5 = vmul.f32 0.7978846, %v1909_v44  ;;  %3345 = vtanh.f32 %v1962_v31  ;;  %v1903_v28 = vmul.f32 %v1894_v14, %v4257_v33  ;;  %v1895_v2 = vmul.f32 %v1886_v52, %v4260_v4 }
 0x542   : > { %v1919_v43 = vmul.f32 0.7978846, %v1910_v51  ;;  %v1977_v19 = vmul.f32 0.5, %v1974_v32  ;;  %v1870_v35 = vmul.f32 0.5, %v1774_v34  ;;  %v1871_v15 = vmul.f32 0.5, %v4239_v8 }
 0x543   : > { %3347 = vtanh.f32 %v1918_v5  ;;  %v1904_v62 = vmul.f32 %v1895_v2, %v4260_v4  ;;  %v1912_v49 = vadd.f32 %v1903_v28, %v4257_v33  ;;  %v1878_v44 = vmul.f32 0.5, %v4231_v25 }
 0x544   : > { %3349 = vtanh.f32 %v1919_v43  ;;  %v1953_v52 = vadd.f32 %v4183_v13, %v3667_v36  ;;  %v1873_v28 = vmul.f32 0.5, %v4243_v63 }
 0x545   : > { %3351 = vtanh.f32 %v1977_v19  ;;  %v1913_v22 = vadd.f32 %v1904_v62, %v4260_v4  ;;  %v1921_v31 = vmul.f32 0.7978846, %v1912_v49  ;;  %v1950_v34 = vmul.f32 %v1941_v38, %v1878_v44 }
 0x546   : > { %v1874_v62 = vmul.f32 0.5, %v4247_v0 }
 0x547   : > { %v1922_v32 = vmul.f32 0.7978846, %v1913_v22  ;;  %3353 = vtanh.f32 %v1921_v31  ;;  %v1956_v38 = vsub.f32 %v1953_v52, %v1950_v34  ;;  %v1876_v34 = vmul.f32 0.5, %v4257_v33 }
 0x548   : > { %v1952_v33 = vadd.f32 %v4212_v60, %v3695_v48 }
 0x549   : > { %v3342_v17 = vpop.eup %3341  ;;  %3355 = vtanh.f32 %v1922_v32 }
 0x54a   : > { %v3344_v59 = vpop.eup %3343  ;;  %v1933_v6 = vadd.f32 1.0, %v3342_v17 }
 0x54b   : > { %v3346_v57 = vpop.eup %3345  ;;  %v1934_v29 = vadd.f32 1.0, %v3344_v59 }
 0x54c   : > { %v1942_v51 = vmul.f32 %v1933_v6, %v1870_v35  ;;  %v1968_v14 = vmul.f32 0.5, %v3346_v57 }
 0x54d   : > { %v3348_v5 = vpop.eup %3347  ;;  %v1943_v43 = vmul.f32 %v1934_v29, %v1871_v15 }
 0x54e   : > { %v3350_v19 = vpop.eup %3349  ;;  %v1957_v2 = vadd.f32 %v1942_v51, %v4044_v20  ;;  %v1936_v47 = vadd.f32 1.0, %v3348_v5  ;;  %v1971_v17 = vadd.f32 0.5, %v1968_v14 }
 0x54f   : > { %v3352_v8 = vpop.eup %3351  ;;  %v1937_v49 = vadd.f32 1.0, %v3350_v19  ;;  %v1958_v25 = vadd.f32 %v1943_v43, %v4046_v42 }
 0x550   : > { %v1945_v22 = vmul.f32 %v1936_v47, %v1873_v28  ;;  %v1983_v59 = vmul.f32 0.5, %v3352_v8  ;;  %v1960_v35 = vmul.f32 0.5, %v1957_v2  ;;  %v1989_v0 = vmul.f32 %v1971_v17, %v4180_v23 }
 0x551   : > { %v1946_v6 = vmul.f32 %v1937_v49, %v1874_v62  ;;  %v1961_v57 = vmul.f32 0.5, %v1958_v25  ;;  %v3354_v14 = vpop.eup %3353  ;;  %v1877_v47 = vmul.f32 0.5, %v4260_v4  ;;  %v1951_v17 = vadd.f32 %v4215_v12, %v3686_v56 }
 0x552   : > { %v1972_v63 = vadd.f32 %v1945_v22, %v3664_v21  ;;  %v1986_v15 = vadd.f32 0.5, %v1983_v59  ;;  %3357 = vtanh.f32 %v1960_v35  ;;  %v1939_v52 = vadd.f32 1.0, %v3354_v14 }
 0x553   : > { %3359 = vtanh.f32 %v1961_v57  ;;  %v1973_v31 = vadd.f32 %v1946_v6, %v3669_v37  ;;  %v3356_v43 = vpop.eup %3355 }
 0x554   : > { %v1992_v29 = vmul.f32 %v1986_v15, %v1956_v38  ;;  %v1975_v32 = vmul.f32 0.5, %v1972_v63  ;;  %v1940_v23 = vadd.f32 1.0, %v3356_v43  ;;  %v1948_v62 = vmul.f32 %v1939_v52, %v1876_v34 }
 0x555   : > { %v1976_v44 = vmul.f32 0.5, %v1973_v31 }
 0x556   : > { %v4286_v51 = vadd.f32 %v1992_v29, %v1989_v0  ;;  %3361 = vtanh.f32 %v1975_v32  ;;  %v1949_v25 = vmul.f32 %v1940_v23, %v1877_v47  ;;  %v1954_v57 = vsub.f32 %v1951_v17, %v1948_v62 }
 0x557   : > { %3363 = vtanh.f32 %v1976_v44 }
 0x558   : > { %v1998_v5 = vmax.f32 %v4286_v51, 0.0  ;;  %v1955_v38 = vsub.f32 %v1952_v33, %v1949_v25 }
 0x55a   : > { %3137 = vmatpush3.msra.mxu0 %v1998_v5 }
 0x55b   : > { %3139 = vmatmul.mubr.msk.f32.vlgmr.msra.gmra.mrb[34].mxu0 %vm797_vm3, %v4094_v61  ;;  %3147 = vmatprep.subr.mxu0 %v4064_v55 }
 0x55c   : > { %v3358_v28 = vpop.eup %3357  ;;  %3141 = vmatprep.mubr.msk.f32.mxu0 %vm3482_vm2, %v4064_v55 }
 0x55d   : > { %v3360_v19 = vpop.eup %3359  ;;  %v1966_v2 = vmul.f32 0.5, %v3358_v28 }
 0x55e   : > { %v1967_v8 = vmul.f32 0.5, %v3360_v19 }
 0x55f   : > { %3142 = vmatmul.mubr.msk.f32.gmra.mrb[36].mxu0 %vm797_vm3, %v4102_v53  ;;  %v1969_v59 = vadd.f32 0.5, %v1966_v2 }
 0x560   : > { %v3362_v49 = vpop.eup %3361  ;;  %3144 = vmatprep.mubr.msk.f32.mxu0 %vm3482_vm2, %v4064_v55  ;;  %v1970_v4 = vadd.f32 0.5, %v1967_v8 }
 0x561   : > { %v3364_v22 = vpop.eup %3363  ;;  %v1981_v35 = vmul.f32 0.5, %v3362_v49  ;;  %v1987_v31 = vmul.f32 %v1969_v59, %v4207_v1 }
 0x562   : > { %v1982_v6 = vmul.f32 0.5, %v3364_v22  ;;  %v1988_v29 = vmul.f32 %v1970_v4, %v4209_v50 }
 0x563   : > { %3145 = vmatmul.mubr.msk.f32.gmra.mrb[38].mxu0 %vm797_vm3, %v4110_v27  ;;  %v1984_v63 = vadd.f32 0.5, %v1981_v35 }
 0x564   : > { %v1985_v15 = vadd.f32 0.5, %v1982_v6  ;;  %3149 = vmatprep.mubr.msk.f32.mxu0 %vm3482_vm2, %v4064_v55 }
 0x565   : > { %v1990_v0 = vmul.f32 %v1984_v63, %v1954_v57 }
 0x566   : > { %v1991_v32 = vmul.f32 %v1985_v15, %v1955_v38 }
 0x567   : > { %v4310_v44 = vadd.f32 %v1990_v0, %v1987_v31 }
 0x568   : > { %v4312_v14 = vadd.f32 %v1991_v32, %v1988_v29 }
 0x569   : > { %v1996_v43 = vmax.f32 %v4310_v44, 0.0 }
 0x56a   : > { %v1997_v5 = vmax.f32 %v4312_v14, 0.0 }
 0x56c   : > { %1999 = vmatprep.subr.mxu1 %v1997_v5 }
 0x56d   : > { %2000 = vmatpush1.msra.mxu1 %v1996_v43 }
 0x56e   : > { %3026 = vmatmul.mubr.msk.f32.vlgmr.msra.gmra.mrb[32].mxu1 %vm797_vm3, %v4094_v61 }
 0x56f   : > { %2069 = vmatprep.mubr.f32.mxu1 %v4064_v55 }
 0x572   : > { %3027 = vmatmul.mubr.msk.f32.gmra.mrb[34].mxu1 %vm797_vm3, %v4102_v53 }
 0x573   : > { %2075 = vmatprep.mubr.f32.mxu1 %v4064_v55 }
 0x576   : > { %3028 = vmatmul.mubr.msk.f32.gmra.mrb[36].mxu1 %vm797_vm3, %v4110_v27 }
 0x577   : > { %2355 = vmatprep.mubr.f32.mxu1 %v4064_v55 }
 0x62e   : > { %v2148_v1 = vpop.f32.mrb[34].mxu0 }
 0x62f   : > { %v2149_v50 = vadd.f32 %v2148_v1, %v3754_v40  ;;  %v3140_v52 = vpop.f32.mrb[35].mxu0 }
 0x631   : > { %v2173_v28 = vmul.f32 0.044715, %v2149_v50  ;;  %v2164_v5 = vmul.f32 0.5, %v2149_v50 }
 0x632   : > { %v2153_v23 = vpop.f32.mrb[36].mxu0 }
 0x633   : > { %v2182_v19 = vmul.f32 %v2173_v28, %v2149_v50  ;;  %v2154_v61 = vadd.f32 %v2153_v23, %v3733_v16  ;;  %v3143_v34 = vpop.f32.mrb[37].mxu0 }
 0x635   : > { %v2191_v2 = vmul.f32 %v2182_v19, %v2149_v50  ;;  %v2176_v47 = vmul.f32 0.044715, %v2154_v61 }
 0x636   : > { %v2158_v53 = vpop.f32.mrb[38].mxu0 }
 0x637   : > { %v2200_v8 = vadd.f32 %v2191_v2, %v2149_v50  ;;  %v2185_v62 = vmul.f32 %v2176_v47, %v2154_v61  ;;  %v4328_v49 = vadd.f32 %v2158_v53, %v3786_v10  ;;  %v3146_v27 = vpop.f32.mrb[39].mxu0  ;;  %v2167_v50 = vmul.f32 0.5, %v2154_v61 }
 0x639   : > { %v2209_v55 = vmul.f32 0.7978846, %v2200_v8  ;;  %v2194_v25 = vmul.f32 %v2185_v62, %v2154_v61  ;;  %v2179_v22 = vmul.f32 0.044715, %v4328_v49 }
 0x63b   : > { %3365 = vtanh.f32 %v2209_v55  ;;  %v2203_v17 = vadd.f32 %v2194_v25, %v2154_v61  ;;  %v2188_v59 = vmul.f32 %v2179_v22, %v4328_v49 }
 0x63d   : > { %v2212_v35 = vmul.f32 0.7978846, %v2203_v17  ;;  %v2197_v33 = vmul.f32 %v2188_v59, %v4328_v49 }
 0x63f   : > { %3367 = vtanh.f32 %v2212_v35  ;;  %v2206_v4 = vadd.f32 %v2197_v33, %v4328_v49 }
 0x641   : > { %v2065_v6 = vpop.f32.mrb[32].mxu1  ;;  %v2215_v15 = vmul.f32 0.7978846, %v2206_v4 }
 0x642   : > { %v4335_v57 = vadd.f32 %v2065_v6, %v3754_v40  ;;  %v2067_v63 = vpop.f32.mrb[33].mxu1 }
 0x643   : > { %v4338_v38 = vadd.f32 %v2067_v63, %v3754_v40  ;;  %3369 = vtanh.f32 %v2215_v15 }
 0x644   : > { %v2171_v31 = vmul.f32 0.044715, %v4335_v57 }
 0x645   : > { %v3366_v0 = vpop.eup %3365  ;;  %v2172_v29 = vmul.f32 0.044715, %v4338_v38  ;;  %v2071_v32 = vpop.f32.mrb[34].mxu1 }
 0x646   : > { %v2227_v43 = vadd.f32 1.0, %v3366_v0  ;;  %v2180_v1 = vmul.f32 %v2171_v31, %v4335_v57  ;;  %v4344_v52 = vadd.f32 %v2071_v32, %v3733_v16  ;;  %v2073_v28 = vpop.f32.mrb[35].mxu1 }
 0x647   : > { %v2181_v23 = vmul.f32 %v2172_v29, %v4338_v38  ;;  %v4348_v19 = vadd.f32 %v2073_v28, %v3733_v16 }
 0x648   : > { %v2236_v34 = vmul.f32 %v2227_v43, %v2164_v5  ;;  %v2189_v2 = vmul.f32 %v2180_v1, %v4335_v57  ;;  %v2174_v47 = vmul.f32 0.044715, %v4344_v52 }
 0x649   : > { %v3368_v53 = vpop.eup %3367  ;;  %v2190_v8 = vmul.f32 %v2181_v23, %v4338_v38  ;;  %v2175_v62 = vmul.f32 0.044715, %v4348_v19  ;;  %v2077_v27 = vpop.f32.mrb[36].mxu1 }
 0x64a   : > { %v2251_v55 = vadd.f32 %v2236_v34, %v3848_v7  ;;  %v2230_v25 = vadd.f32 1.0, %v3368_v53  ;;  %v2198_v22 = vadd.f32 %v2189_v2, %v4335_v57  ;;  %v2183_v17 = vmul.f32 %v2174_v47, %v4344_v52  ;;  %v2079_v59 = vpop.f32.mrb[37].mxu1 }
 0x64b   : > { %v2199_v35 = vadd.f32 %v2190_v8, %v4338_v38  ;;  %v2184_v33 = vmul.f32 %v2175_v62, %v4348_v19  ;;  %v4360_v4 = vadd.f32 %v2077_v27, %v3786_v10  ;;  %v4363_v61 = vadd.f32 %v2079_v59, %v3786_v10 }
 0x64c   : > { %v2239_v6 = vmul.f32 %v2230_v25, %v2167_v50  ;;  %v2207_v63 = vmul.f32 0.7978846, %v2198_v22  ;;  %v2192_v7 = vmul.f32 %v2183_v17, %v4344_v52  ;;  %v2254_v15 = vmul.f32 0.5, %v2251_v55 }
 0x64d   : > { %v2208_v31 = vmul.f32 0.7978846, %v2199_v35  ;;  %v2193_v0 = vmul.f32 %v2184_v33, %v4348_v19  ;;  %v2177_v29 = vmul.f32 0.044715, %v4360_v4  ;;  %v2178_v23 = vmul.f32 0.044715, %v4363_v61  ;;  %v3370_v53 = vpop.eup %3369 }
 0x64e   : > { %v2266_v32 = vadd.f32 %v2239_v6, %v3861_v58  ;;  %3371 = vtanh.f32 %v2207_v63  ;;  %v2201_v5 = vadd.f32 %v2192_v7, %v4344_v52  ;;  %v2233_v62 = vadd.f32 1.0, %v3370_v53 }
 0x64f   : > { %3373 = vtanh.f32 %v2208_v31  ;;  %v2202_v43 = vadd.f32 %v2193_v0, %v4348_v19  ;;  %v2186_v1 = vmul.f32 %v2177_v29, %v4360_v4  ;;  %v2187_v58 = vmul.f32 %v2178_v23, %v4363_v61 }
 0x650   : > { %v2210_v28 = vmul.f32 0.7978846, %v2201_v5  ;;  %3375 = vtanh.f32 %v2254_v15  ;;  %v2269_v47 = vmul.f32 0.5, %v2266_v32  ;;  %v2170_v25 = vmul.f32 0.5, %v4328_v49 }
 0x651   : > { %v2211_v34 = vmul.f32 0.7978846, %v2202_v43  ;;  %v2195_v2 = vmul.f32 %v2186_v1, %v4360_v4  ;;  %v2196_v8 = vmul.f32 %v2187_v58, %v4363_v61  ;;  %v2162_v33 = vmul.f32 0.5, %v4335_v57 }
 0x652   : > { %3377 = vtanh.f32 %v2210_v28  ;;  %v2242_v35 = vmul.f32 %v2233_v62, %v2170_v25  ;;  %v2163_v7 = vmul.f32 0.5, %v4338_v38  ;;  %v2165_v43 = vmul.f32 0.5, %v4344_v52 }
 0x653   : > { %3379 = vtanh.f32 %v2211_v34  ;;  %v2204_v50 = vadd.f32 %v2195_v2, %v4360_v4  ;;  %v2205_v55 = vadd.f32 %v2196_v8, %v4363_v61  ;;  %v2166_v23 = vmul.f32 0.5, %v4348_v19 }
 0x654   : > { %3381 = vtanh.f32 %v2269_v47  ;;  %v2245_v28 = vsub.f32 %v4183_v13, %v2242_v35 }
 0x655   : > { %v2213_v27 = vmul.f32 0.7978846, %v2204_v50  ;;  %v2214_v17 = vmul.f32 0.7978846, %v2205_v55 }
 0x657   : > { %3383 = vtanh.f32 %v2213_v27  ;;  %v2248_v27 = vadd.f32 %v2245_v28, %v3891_v24 }
 0x658   : > { %v3372_v22 = vpop.eup %3371  ;;  %3385 = vtanh.f32 %v2214_v17 }
 0x659   : > { %v3374_v59 = vpop.eup %3373  ;;  %v2225_v6 = vadd.f32 1.0, %v3372_v22 }
 0x65a   : > { %v3376_v63 = vpop.eup %3375  ;;  %v2226_v15 = vadd.f32 1.0, %v3374_v59 }
 0x65b   : > { %v2234_v31 = vmul.f32 %v2225_v6, %v2162_v33  ;;  %v2260_v0 = vmul.f32 0.5, %v3376_v63  ;;  %v2168_v63 = vmul.f32 0.5, %v4360_v4 }
 0x65c   : > { %v3378_v29 = vpop.eup %3377  ;;  %v2235_v32 = vmul.f32 %v2226_v15, %v2163_v7  ;;  %v2169_v7 = vmul.f32 0.5, %v4363_v61  ;;  %v3449_v15 = vld [vmem:[%s4572_s5] sm:$0xff] }
 0x65d   : > { %v3380_v5 = vpop.eup %3379  ;;  %v2249_v49 = vadd.f32 %v2234_v31, %v3879_v39  ;;  %v2228_v1 = vadd.f32 1.0, %v3378_v29  ;;  %v2263_v47 = vadd.f32 0.5, %v2260_v0  ;;  %v4402_v31 = vld [vmem:[%s3561_s20 + $0x10] sm:$0xff] }
 0x65e   : > { %v3382_v57 = vpop.eup %3381  ;;  %v2229_v34 = vadd.f32 1.0, %v3380_v5  ;;  %v2250_v38 = vadd.f32 %v2235_v32, %v3881_v9  ;;  %v3451_v5 = vld [vmem:[%s4572_s5 + $0x8] sm:$0xff] }
 0x65f   : > { %v2237_v2 = vmul.f32 %v2228_v1, %v2165_v43  ;;  %v2275_v53 = vmul.f32 0.5, %v3382_v57  ;;  %v2252_v58 = vmul.f32 0.5, %v2249_v49  ;;  %v2281_v19 = vmul.f32 %v2263_v47, %v4286_v51 }
 0x660   : > { %v2238_v50 = vmul.f32 %v2229_v34, %v2166_v23  ;;  %v2253_v8 = vmul.f32 0.5, %v2250_v38 }
 0x661   : > { %v2264_v62 = vadd.f32 %v2237_v2, %v3887_v45  ;;  %v2278_v52 = vadd.f32 0.5, %v2275_v53  ;;  %3387 = vtanh.f32 %v2252_v58  ;;  %v3384_v55 = vpop.eup %3383  ;;  %v3452_v2 = vld [vmem:[%s4572_s5 + $0x10] sm:$0xff] }
 0x662   : > { %3389 = vtanh.f32 %v2253_v8  ;;  %v2265_v13 = vadd.f32 %v2238_v50, %v3889_v41  ;;  %v3386_v17 = vpop.eup %3385  ;;  %v2231_v33 = vadd.f32 1.0, %v3384_v55 }
 0x663   : > { %v2284_v25 = vmul.f32 %v2278_v52, %v2248_v27  ;;  %v2267_v22 = vmul.f32 0.5, %v2264_v62  ;;  %v2232_v6 = vadd.f32 1.0, %v3386_v17 }
 0x664   : > { %v2268_v59 = vmul.f32 0.5, %v2265_v13  ;;  %v2240_v51 = vmul.f32 %v2231_v33, %v2168_v63 }
 0x665   : > { %v4390_v35 = vadd.f32 %v2284_v25, %v2281_v19  ;;  %3391 = vtanh.f32 %v2267_v22  ;;  %v2241_v4 = vmul.f32 %v2232_v6, %v2169_v7 }
 0x666   : > { %3393 = vtanh.f32 %v2268_v59  ;;  %v2243_v49 = vsub.f32 %v4215_v12, %v2240_v51 }
 0x667   : > { %v2290_v24 = vmax.f32 %v4390_v35, 0.0  ;;  %v2244_v1 = vsub.f32 %v4212_v60, %v2241_v4 }
 0x668   : > { %v2246_v47 = vadd.f32 %v2243_v49, %v3922_v54 }
 0x669   : > { %3148 = vmatpush3.msra.mxu0 %v2290_v24  ;;  %v2247_v53 = vadd.f32 %v2244_v1, %v3924_v11 }
 0x66a   : > { %3150 = vmatmul.mubr.msk.f32.vlgmr.msra.gmra.mrb[40].mxu0 %vm797_vm3, %v3449_v15  ;;  %3158 = vmatprep.subr.mxu0 %v4402_v31 }
 0x66b   : > { %v3388_v0 = vpop.eup %3387  ;;  %3152 = vmatprep.mubr.msk.f32.mxu0 %vm3482_vm2, %v4402_v31 }
 0x66c   : > { %v3390_v61 = vpop.eup %3389  ;;  %v2258_v29 = vmul.f32 0.5, %v3388_v0 }
 0x66d   : > { %v2259_v32 = vmul.f32 0.5, %v3390_v61 }
 0x66e   : > { %3153 = vmatmul.mubr.msk.f32.gmra.mrb[42].mxu0 %vm797_vm3, %v3451_v5  ;;  %v2261_v57 = vadd.f32 0.5, %v2258_v29 }
 0x66f   : > { %v3392_v43 = vpop.eup %3391  ;;  %3155 = vmatprep.mubr.msk.f32.mxu0 %vm3482_vm2, %v4402_v31  ;;  %v2262_v34 = vadd.f32 0.5, %v2259_v32 }
 0x670   : > { %v3394_v28 = vpop.eup %3393  ;;  %v2273_v23 = vmul.f32 0.5, %v3392_v43  ;;  %v2279_v60 = vmul.f32 %v2261_v57, %v4310_v44 }
 0x671   : > { %v2274_v38 = vmul.f32 0.5, %v3394_v28  ;;  %v2280_v8 = vmul.f32 %v2262_v34, %v4312_v14 }
 0x672   : > { %3156 = vmatmul.mubr.msk.f32.gmra.mrb[44].mxu0 %vm797_vm3, %v3452_v2  ;;  %v2276_v12 = vadd.f32 0.5, %v2273_v23 }
 0x673   : > { %v2277_v58 = vadd.f32 0.5, %v2274_v38  ;;  %3160 = vmatprep.mubr.msk.f32.mxu0 %vm3482_vm2, %v4402_v31 }
 0x674   : > { %v2282_v50 = vmul.f32 %v2276_v12, %v2246_v47 }
 0x675   : > { %v2283_v62 = vmul.f32 %v2277_v58, %v2247_v53 }
 0x676   : > { %v4425_v27 = vadd.f32 %v2282_v50, %v2279_v60 }
 0x677   : > { %v4427_v52 = vadd.f32 %v2283_v62, %v2280_v8 }
 0x678   : > { %v4433_v55 = vmax.f32 %v4425_v27, 0.0 }
 0x679   : > { %v4430_v13 = vmax.f32 %v4427_v52, 0.0 }
 0x67b   : > { %2291 = vmatprep.subr.mxu1 %v4430_v13 }
 0x67c   : > { %2292 = vmatpush1.msra.mxu1 %v4433_v55 }
 0x67d   : > { %3032 = vmatmul.mubr.msk.f32.vlgmr.msra.gmra.mrb[38].mxu1 %vm797_vm3, %v3449_v15 }
 0x67e   : > { %2361 = vmatprep.mubr.f32.mxu1 %v4402_v31 }
 0x681   : > { %3033 = vmatmul.mubr.msk.f32.gmra.mrb[40].mxu1 %vm797_vm3, %v3451_v5 }
 0x682   : > { %2367 = vmatprep.mubr.f32.mxu1 %v4402_v31 }
 0x685   : > { %3034 = vmatmul.mubr.msk.f32.gmra.mrb[42].mxu1 %vm797_vm3, %v3452_v2 }
 0x686   : > { %2647 = vmatprep.mubr.f32.mxu1 %v4402_v31 }
 0x73d   : > { %v2440_v44 = vpop.f32.mrb[40].mxu0 }
 0x73e   : > { %v2441_v14 = vadd.f32 %v2440_v44, %v3971_v30  ;;  %v3151_v19 = vpop.f32.mrb[41].mxu0 }
 0x740   : > { %v2465_v25 = vmul.f32 0.044715, %v2441_v14  ;;  %v2456_v60 = vmul.f32 0.5, %v2441_v14 }
 0x741   : > { %v2445_v22 = vpop.f32.mrb[42].mxu0 }
 0x742   : > { %v2474_v17 = vmul.f32 %v2465_v25, %v2441_v14  ;;  %v2446_v59 = vadd.f32 %v2445_v22, %v3976_v3  ;;  %v3154_v33 = vpop.f32.mrb[43].mxu0 }
 0x744   : > { %v2483_v6 = vmul.f32 %v2474_v17, %v2441_v14  ;;  %v2468_v63 = vmul.f32 0.044715, %v2446_v59 }
 0x745   : > { %v2450_v7 = vpop.f32.mrb[44].mxu0 }
 0x746   : > { %v2492_v51 = vadd.f32 %v2483_v6, %v2441_v14  ;;  %v2477_v15 = vmul.f32 %v2468_v63, %v2446_v59  ;;  %v2451_v0 = vadd.f32 %v2450_v7, %v3981_v26  ;;  %v3157_v4 = vpop.f32.mrb[45].mxu0  ;;  %v2459_v6 = vmul.f32 0.5, %v2446_v59 }
 0x748   : > { %v2501_v61 = vmul.f32 0.7978846, %v2492_v51  ;;  %v2486_v29 = vmul.f32 %v2477_v15, %v2446_v59  ;;  %v2471_v32 = vmul.f32 0.044715, %v2451_v0 }
 0x74a   : > { %3395 = vtanh.f32 %v2501_v61  ;;  %v2495_v5 = vadd.f32 %v2486_v29, %v2446_v59  ;;  %v2480_v49 = vmul.f32 %v2471_v32, %v2451_v0 }
 0x74c   : > { %v2504_v43 = vmul.f32 0.7978846, %v2495_v5  ;;  %v2489_v1 = vmul.f32 %v2480_v49, %v2451_v0  ;;  %v4480_v49 = vadd.f32 %v2290_v24, %v3667_v36 }
 0x74e   : > { %3397 = vtanh.f32 %v2504_v43  ;;  %v2498_v28 = vadd.f32 %v2489_v1, %v2451_v0 }
 0x750   : > { %v2507_v57 = vmul.f32 0.7978846, %v2498_v28  ;;  %v2357_v23 = vpop.f32.mrb[38].mxu1 }
 0x751   : > { %v4447_v34 = vadd.f32 %v2357_v23, %v3971_v30  ;;  %v2359_v38 = vpop.f32.mrb[39].mxu1  ;;  %v2462_v23 = vmul.f32 0.5, %v2451_v0 }
 0x752   : > { %3399 = vtanh.f32 %v2507_v57  ;;  %v4450_v2 = vadd.f32 %v2359_v38, %v3971_v30 }
 0x753   : > { %v2463_v47 = vmul.f32 0.044715, %v4447_v34 }
 0x754   : > { %v3396_v12 = vpop.eup %3395  ;;  %v2464_v53 = vmul.f32 0.044715, %v4450_v2  ;;  %v2363_v58 = vpop.f32.mrb[40].mxu1 }
 0x755   : > { %v2519_v50 = vadd.f32 1.0, %v3396_v12  ;;  %v2472_v8 = vmul.f32 %v2463_v47, %v4447_v34  ;;  %v4456_v62 = vadd.f32 %v2363_v58, %v3976_v3  ;;  %v2365_v44 = vpop.f32.mrb[41].mxu1 }
 0x756   : > { %v2473_v19 = vmul.f32 %v2464_v53, %v4450_v2  ;;  %v4460_v25 = vadd.f32 %v2365_v44, %v3976_v3 }
 0x757   : > { %v2528_v30 = vmul.f32 %v2519_v50, %v2456_v60  ;;  %v2481_v22 = vmul.f32 %v2472_v8, %v4447_v34  ;;  %v2466_v17 = vmul.f32 0.044715, %v4456_v62 }
 0x758   : > { %v3398_v33 = vpop.eup %3397  ;;  %v2482_v14 = vmul.f32 %v2473_v19, %v4450_v2  ;;  %v2467_v63 = vmul.f32 0.044715, %v4460_v25  ;;  %v2369_v7 = vpop.f32.mrb[42].mxu1 }
 0x759   : > { %v2522_v51 = vadd.f32 1.0, %v3398_v33  ;;  %v2490_v15 = vadd.f32 %v2481_v22, %v4447_v34  ;;  %v2475_v4 = vmul.f32 %v2466_v17, %v4456_v62  ;;  %v4469_v3 = vadd.f32 %v2369_v7, %v3981_v26  ;;  %v2371_v61 = vpop.f32.mrb[43].mxu1 }
 0x75a   : > { %v2491_v29 = vadd.f32 %v2482_v14, %v4450_v2  ;;  %v2476_v32 = vmul.f32 %v2467_v63, %v4460_v25  ;;  %v4474_v59 = vadd.f32 %v2371_v61, %v3981_v26  ;;  %v2543_v5 = vadd.f32 %v2528_v30, %v4010_v18 }
 0x75b   : > { %v2531_v43 = vmul.f32 %v2522_v51, %v2459_v6  ;;  %v2499_v1 = vmul.f32 0.7978846, %v2490_v15  ;;  %v2484_v28 = vmul.f32 %v2475_v4, %v4456_v62  ;;  %v2469_v12 = vmul.f32 0.044715, %v4469_v3 }
 0x75c   : > { %v3400_v57 = vpop.eup %3399  ;;  %v2500_v38 = vmul.f32 0.7978846, %v2491_v29  ;;  %v2485_v47 = vmul.f32 %v2476_v32, %v4460_v25  ;;  %v2470_v18 = vmul.f32 0.044715, %v4474_v59  ;;  %v2546_v58 = vmul.f32 0.5, %v2543_v5 }
 0x75d   : > { %3401 = vtanh.f32 %v2499_v1  ;;  %v2493_v26 = vadd.f32 %v2484_v28, %v4456_v62  ;;  %v2525_v53 = vadd.f32 1.0, %v3400_v57  ;;  %v2478_v24 = vmul.f32 %v2469_v12, %v4469_v3 }
 0x75e   : > { %3403 = vtanh.f32 %v2500_v38  ;;  %v2494_v36 = vadd.f32 %v2485_v47, %v4460_v25  ;;  %v2479_v0 = vmul.f32 %v2470_v18, %v4474_v59  ;;  %v2558_v8 = vadd.f32 %v2531_v43, %v4578_v46 }
 0x75f   : > { %v2502_v60 = vmul.f32 0.7978846, %v2493_v26  ;;  %v2534_v50 = vmul.f32 %v2525_v53, %v2462_v23  ;;  %v2487_v19 = vmul.f32 %v2478_v24, %v4469_v3  ;;  %3405 = vtanh.f32 %v2546_v58 }
 0x760   : > { %v2503_v44 = vmul.f32 0.7978846, %v2494_v36  ;;  %v2488_v30 = vmul.f32 %v2479_v0, %v4474_v59  ;;  %v2561_v17 = vmul.f32 0.5, %v2558_v8  ;;  %v2454_v46 = vmul.f32 0.5, %v4447_v34 }
 0x761   : > { %3407 = vtanh.f32 %v2502_v60  ;;  %v2540_v22 = vsub.f32 %v4480_v49, %v2534_v50  ;;  %v2496_v33 = vadd.f32 %v2487_v19, %v4469_v3  ;;  %v2455_v15 = vmul.f32 0.5, %v4450_v2 }
 0x762   : > { %3409 = vtanh.f32 %v2503_v44  ;;  %v2497_v6 = vadd.f32 %v2488_v30, %v4474_v59  ;;  %v2457_v57 = vmul.f32 0.5, %v4456_v62  ;;  %v2458_v34 = vmul.f32 0.5, %v4460_v25 }
 0x763   : > { %3411 = vtanh.f32 %v2561_v17  ;;  %v2505_v51 = vmul.f32 0.7978846, %v2496_v33 }
 0x764   : > { %v2506_v61 = vmul.f32 0.7978846, %v2497_v6  ;;  %v2461_v6 = vmul.f32 0.5, %v4474_v59  ;;  %v2536_v59 = vadd.f32 %v4430_v13, %v3695_v48 }
 0x765   : > { %3413 = vtanh.f32 %v2505_v51 }
 0x766   : > { %3415 = vtanh.f32 %v2506_v61 }
 0x767   : > { %v3402_v14 = vpop.eup %3401 }
 0x768   : > { %v3404_v63 = vpop.eup %3403  ;;  %v2517_v7 = vadd.f32 1.0, %v3402_v14 }
 0x769   : > { %v2518_v4 = vadd.f32 1.0, %v3404_v63  ;;  %v3406_v29 = vpop.eup %3405 }
 0x76a   : > { %v2526_v32 = vmul.f32 %v2517_v7, %v2454_v46  ;;  %v2552_v43 = vmul.f32 0.5, %v3406_v29  ;;  %v3454_v46 = vld [vmem:[%s4570_s3 + $0x8] sm:$0xff] }
 0x76b   : > { %v3408_v5 = vpop.eup %3407  ;;  %v2527_v49 = vmul.f32 %v2518_v4, %v2455_v15 }
 0x76c   : > { %v3410_v1 = vpop.eup %3409  ;;  %v2541_v28 = vadd.f32 %v2526_v32, %v4044_v20  ;;  %v2520_v23 = vadd.f32 1.0, %v3408_v5  ;;  %v2555_v26 = vadd.f32 0.5, %v2552_v43  ;;  %v3455_v43 = vld [vmem:[%s4570_s3 + $0x10] sm:$0xff] }
 0x76d   : > { %v3412_v38 = vpop.eup %3411  ;;  %v2521_v47 = vadd.f32 1.0, %v3410_v1  ;;  %v2542_v2 = vadd.f32 %v2527_v49, %v4046_v42 }
 0x76e   : > { %v2529_v12 = vmul.f32 %v2520_v23, %v2457_v57  ;;  %v2567_v18 = vmul.f32 0.5, %v3412_v38  ;;  %v2544_v53 = vmul.f32 0.5, %v2541_v28  ;;  %v2573_v60 = vmul.f32 %v2555_v26, %v4390_v35 }
 0x76f   : > { %v2530_v36 = vmul.f32 %v2521_v47, %v2458_v34  ;;  %v2545_v24 = vmul.f32 0.5, %v2542_v2  ;;  %v3414_v42 = vpop.eup %3413 }
 0x770   : > { %v2556_v58 = vadd.f32 %v2529_v12, %v3664_v21  ;;  %v2570_v20 = vadd.f32 0.5, %v2567_v18  ;;  %3417 = vtanh.f32 %v2544_v53  ;;  %v3416_v19 = vpop.eup %3415  ;;  %v2523_v30 = vadd.f32 1.0, %v3414_v42  ;;  %v3453_v21 = vld [vmem:[%s4570_s3] sm:$0xff] }
 0x771   : > { %3419 = vtanh.f32 %v2545_v24  ;;  %v2557_v62 = vadd.f32 %v2530_v36, %v3669_v37  ;;  %v2524_v17 = vadd.f32 1.0, %v3416_v19 }
 0x772   : > { %v2576_v25 = vmul.f32 %v2570_v20, %v2540_v22  ;;  %v2559_v0 = vmul.f32 0.5, %v2556_v58  ;;  %v2460_v22 = vmul.f32 0.5, %v4469_v3  ;;  %v2535_v3 = vadd.f32 %v4433_v55, %v3686_v56 }
 0x773   : > { %v2560_v50 = vmul.f32 0.5, %v2557_v62  ;;  %v2533_v51 = vmul.f32 %v2524_v17, %v2461_v6 }
 0x774   : > { %v2579_v8 = vadd.f32 %v2576_v25, %v2573_v60  ;;  %3421 = vtanh.f32 %v2559_v0  ;;  %v2532_v63 = vmul.f32 %v2523_v30, %v2460_v22 }
 0x775   : > { %3423 = vtanh.f32 %v2560_v50  ;;  %v2539_v1 = vsub.f32 %v2536_v59, %v2533_v51 }
 0x776   : > { %v2582_v44 = vmax.f32 %v2579_v8, 0.0  ;;  %v2538_v5 = vsub.f32 %v2535_v3, %v2532_v63 }
 0x778   : > { %3159 = vmatpush3.msra.mxu0 %v2582_v44 }
 0x779   : > { %3161 = vmatmul.mubr.msk.f32.vlgmr.msra.gmra.mrb[46].mxu0 %vm797_vm3, %v3453_v21 }
 0x77a   : > { %v3418_v37 = vpop.eup %3417  ;;  %3163 = vmatprep.mubr.msk.f32.mxu0 %vm3482_vm2, %v4402_v31 }
 0x77b   : > { %v3420_v35 = vpop.eup %3419  ;;  %v2550_v33 = vmul.f32 0.5, %v3418_v37 }
 0x77c   : > { %v2551_v14 = vmul.f32 0.5, %v3420_v35 }
 0x77d   : > { %3164 = vmatmul.mubr.msk.f32.gmra.mrb[48].mxu0 %vm797_vm3, %v3454_v46  ;;  %v2553_v4 = vadd.f32 0.5, %v2550_v33 }
 0x77e   : > { %v3422_v7 = vpop.eup %3421  ;;  %3166 = vmatprep.mubr.msk.f32.mxu0 %vm3482_vm2, %v4402_v31  ;;  %v2554_v29 = vadd.f32 0.5, %v2551_v14 }
 0x77f   : > { %v3424_v15 = vpop.eup %3423  ;;  %v2565_v61 = vmul.f32 0.5, %v3422_v7  ;;  %v2571_v57 = vmul.f32 %v2553_v4, %v4425_v27 }
 0x780   : > { %v2566_v32 = vmul.f32 0.5, %v3424_v15  ;;  %v2572_v23 = vmul.f32 %v2554_v29, %v4427_v52 }
 0x781   : > { %v2568_v49 = vadd.f32 0.5, %v2565_v61  ;;  %3167 = vmatmul.mubr.msk.f32.gmra.mrb[50].mxu0 %vm797_vm3, %v3455_v43 }
 0x782   : > { %v2569_v28 = vadd.f32 0.5, %v2566_v32 }
 0x783   : > { %v2574_v56 = vmul.f32 %v2568_v49, %v2538_v5 }
 0x784   : > { %v2575_v38 = vmul.f32 %v2569_v28, %v2539_v1 }
 0x785   : > { %v4529_v34 = vadd.f32 %v2574_v56, %v2571_v57 }
 0x786   : > { %v4531_v48 = vadd.f32 %v2575_v38, %v2572_v23 }
 0x787   : > { %v2580_v2 = vmax.f32 %v4529_v34, 0.0 }
 0x788   : > { %v2581_v47 = vmax.f32 %v4531_v48, 0.0 }
 0x78a   : > { %2583 = vmatprep.subr.mxu1 %v2581_v47 }
 0x78b   : > { %2584 = vmatpush1.msra.mxu1 %v2580_v2 }
 0x78c   : > { %3038 = vmatmul.mubr.msk.f32.vlgmr.msra.gmra.mrb[44].mxu1 %vm797_vm3, %v3453_v21 }
 0x78d   : > { %2653 = vmatprep.mubr.f32.mxu1 %v4402_v31 }
 0x790   : > { %3039 = vmatmul.mubr.msk.f32.gmra.mrb[46].mxu1 %vm797_vm3, %v3454_v46 }
 0x791   : > { %2659 = vmatprep.mubr.f32.mxu1 %v4402_v31 }
 0x794   : > { %3040 = vmatmul.mubr.msk.f32.gmra.mrb[48].mxu1 %vm797_vm3, %v3455_v43 }
 0x84c   : > { %v2732_v27 = vpop.f32.mrb[46].mxu0 }
 0x84d   : > { %v3162_v52 = vpop.f32.mrb[47].mxu0 }
 0x850   : > { %v2737_v12 = vpop.f32.mrb[48].mxu0 }
 0x851   : > { %v3165_v26 = vpop.f32.mrb[49].mxu0 }
 0x854   : > { %v2742_v18 = vpop.f32.mrb[50].mxu0 }
 0x855   : > { %v3168_v53 = vpop.f32.mrb[51].mxu0 }
 0x85f   : > { %v2649_v36 = vpop.f32.mrb[44].mxu1 }
 0x860   : > { %v2650_v24 = vadd.f32 %v2649_v36, %v3754_v40  ;;  %v2651_v58 = vpop.f32.mrb[45].mxu1 }
 0x861   : > { %v2652_v20 = vadd.f32 %v2651_v58, %v3754_v40 }
 0x862   : > { %v2755_v62 = vmul.f32 0.044715, %v2650_v24  ;;  %v2746_v23 = vmul.f32 0.5, %v2650_v24 }
 0x863   : > { %v2756_v60 = vmul.f32 0.044715, %v2652_v20  ;;  %v2655_v25 = vpop.f32.mrb[46].mxu1  ;;  %v2747_v47 = vmul.f32 0.5, %v2652_v20 }
 0x864   : > { %v2764_v0 = vmul.f32 %v2755_v62, %v2650_v24  ;;  %v2656_v31 = vadd.f32 %v2655_v25, %v3733_v16  ;;  %v2657_v50 = vpop.f32.mrb[47].mxu1 }
 0x865   : > { %v2765_v8 = vmul.f32 %v2756_v60, %v2652_v20  ;;  %v2658_v42 = vadd.f32 %v2657_v50, %v3733_v16 }
 0x866   : > { %v2773_v44 = vmul.f32 %v2764_v0, %v2650_v24  ;;  %v2758_v19 = vmul.f32 0.044715, %v2656_v31  ;;  %v2749_v53 = vmul.f32 0.5, %v2656_v31 }
 0x867   : > { %v2774_v30 = vmul.f32 %v2765_v8, %v2652_v20  ;;  %v2759_v21 = vmul.f32 0.044715, %v2658_v42  ;;  %v2661_v37 = vpop.f32.mrb[48].mxu1  ;;  %v2750_v62 = vmul.f32 0.5, %v2658_v42 }
 0x868   : > { %v2782_v17 = vadd.f32 %v2773_v44, %v2650_v24  ;;  %v2767_v35 = vmul.f32 %v2758_v19, %v2656_v31  ;;  %v2662_v22 = vadd.f32 %v2661_v37, %v3786_v10  ;;  %v2663_v40 = vpop.f32.mrb[49].mxu1 }
 0x869   : > { %v2783_v33 = vadd.f32 %v2774_v30, %v2652_v20  ;;  %v2768_v6 = vmul.f32 %v2759_v21, %v2658_v42  ;;  %v2664_v14 = vadd.f32 %v2663_v40, %v3786_v10 }
 0x86a   : > { %v2791_v63 = vmul.f32 0.7978846, %v2782_v17  ;;  %v2776_v46 = vmul.f32 %v2767_v35, %v2656_v31  ;;  %v2761_v7 = vmul.f32 0.044715, %v2662_v22 }
 0x86b   : > { %v2792_v51 = vmul.f32 0.7978846, %v2783_v33  ;;  %v2777_v15 = vmul.f32 %v2768_v6, %v2658_v42  ;;  %v2762_v16 = vmul.f32 0.044715, %v2664_v14  ;;  %v2753_v21 = vmul.f32 0.5, %v2664_v14 }
 0x86c   : > { %3425 = vtanh.f32 %v2791_v63  ;;  %v2785_v3 = vadd.f32 %v2776_v46, %v2656_v31  ;;  %v2770_v4 = vmul.f32 %v2761_v7, %v2662_v22 }
 0x86d   : > { %3427 = vtanh.f32 %v2792_v51  ;;  %v2786_v61 = vadd.f32 %v2777_v15, %v2658_v42  ;;  %v2771_v59 = vmul.f32 %v2762_v16, %v2664_v14  ;;  %v2752_v42 = vmul.f32 0.5, %v2662_v22 }
 0x86e   : > { %v2794_v29 = vmul.f32 0.7978846, %v2785_v3  ;;  %v2779_v32 = vmul.f32 %v2770_v4, %v2662_v22 }
 0x86f   : > { %v2795_v5 = vmul.f32 0.7978846, %v2786_v61  ;;  %v2780_v49 = vmul.f32 %v2771_v59, %v2664_v14 }
 0x870   : > { %3429 = vtanh.f32 %v2794_v29  ;;  %v2788_v43 = vadd.f32 %v2779_v32, %v2662_v22 }
 0x871   : > { %3431 = vtanh.f32 %v2795_v5  ;;  %v2789_v10 = vadd.f32 %v2780_v49, %v2664_v14 }
 0x872   : > { %v2797_v1 = vmul.f32 0.7978846, %v2788_v43 }
 0x873   : > { %v2798_v28 = vmul.f32 0.7978846, %v2789_v10 }
 0x874   : > { %3433 = vtanh.f32 %v2797_v1 }
 0x875   : > { %3435 = vtanh.f32 %v2798_v28 }
 0x876   : > { %v3426_v57 = vpop.eup %3425 }
 0x877   : > { %v3428_v56 = vpop.eup %3427  ;;  %v2809_v38 = vadd.f32 1.0, %v3426_v57 }
 0x878   : > { %v2810_v2 = vadd.f32 1.0, %v3428_v56 }
 0x879   : > { %v2818_v27 = vmul.f32 %v2809_v38, %v2746_v23 }
 0x87a   : > { %v3430_v52 = vpop.eup %3429  ;;  %v2819_v12 = vmul.f32 %v2810_v2, %v2747_v47 }
 0x87b   : > { %v3432_v26 = vpop.eup %3431  ;;  %v2833_v18 = vadd.f32 %v2818_v27, %v3879_v39  ;;  %v2812_v36 = vadd.f32 1.0, %v3430_v52 }
 0x87c   : > { %v2834_v58 = vadd.f32 %v2819_v12, %v3881_v9  ;;  %v2813_v60 = vadd.f32 1.0, %v3432_v26 }
 0x87d   : > { %v2836_v25 = vmul.f32 0.5, %v2833_v18  ;;  %v2821_v0 = vmul.f32 %v2812_v36, %v2749_v53 }
 0x87e   : > { %v2837_v24 = vmul.f32 0.5, %v2834_v58  ;;  %v2822_v50 = vmul.f32 %v2813_v60, %v2750_v62  ;;  %v3434_v44 = vpop.eup %3433 }
 0x87f   : > { %3437 = vtanh.f32 %v2836_v25  ;;  %v2848_v20 = vadd.f32 %v2821_v0, %v3887_v45  ;;  %v3436_v30 = vpop.eup %3435  ;;  %v2815_v31 = vadd.f32 1.0, %v3434_v44 }
 0x880   : > { %3439 = vtanh.f32 %v2837_v24  ;;  %v2849_v8 = vadd.f32 %v2822_v50, %v3889_v41  ;;  %v2816_v9 = vadd.f32 1.0, %v3436_v30 }
 0x881   : > { %v2851_v19 = vmul.f32 0.5, %v2848_v20  ;;  %v2824_v37 = vmul.f32 %v2815_v31, %v2752_v42 }
 0x882   : > { %v2852_v39 = vmul.f32 0.5, %v2849_v8  ;;  %v2825_v35 = vmul.f32 %v2816_v9, %v2753_v21 }
 0x883   : > { %3441 = vtanh.f32 %v2851_v19  ;;  %v2827_v45 = vsub.f32 %v4433_v55, %v2824_v37 }
 0x884   : > { %3443 = vtanh.f32 %v2852_v39  ;;  %v2828_v41 = vsub.f32 %v4430_v13, %v2825_v35 }
 0x885   : > { %v2830_v14 = vadd.f32 %v2827_v45, %v3922_v54 }
 0x886   : > { %v2831_v4 = vadd.f32 %v2828_v41, %v3924_v11 }
 0x889   : > { %v3438_v17 = vpop.eup %3437 }
 0x88a   : > { %v3440_v40 = vpop.eup %3439  ;;  %v2842_v33 = vmul.f32 0.5, %v3438_v17 }
 0x88b   : > { %v2843_v6 = vmul.f32 0.5, %v3440_v40 }
 0x88c   : > { %v2845_v7 = vadd.f32 0.5, %v2842_v33 }
 0x88d   : > { %v3442_v63 = vpop.eup %3441  ;;  %v2846_v15 = vadd.f32 0.5, %v2843_v6 }
 0x88e   : > { %v3444_v46 = vpop.eup %3443  ;;  %v2857_v51 = vmul.f32 0.5, %v3442_v63  ;;  %v2863_v61 = vmul.f32 %v2845_v7, %v4529_v34 }
 0x88f   : > { %v2858_v16 = vmul.f32 0.5, %v3444_v46  ;;  %v2864_v55 = vmul.f32 %v2846_v15, %v4531_v48 }
 0x890   : > { %v2860_v22 = vadd.f32 0.5, %v2857_v51 }
 0x891   : > { %v2861_v3 = vadd.f32 0.5, %v2858_v16 }
 0x892   : > { %v2866_v59 = vmul.f32 %v2860_v22, %v2830_v14 }
 0x893   : > { %v2867_v29 = vmul.f32 %v2861_v3, %v2831_v4 }
 0x894   : > { %v2869_v13 = vadd.f32 %v2866_v59, %v2863_v61 }
 0x895   : > { %v2870_v32 = vadd.f32 %v2867_v29, %v2864_v55 }
 0x896   : > { %v2872_v5 = vmax.f32 %v2869_v13, 0.0 }
 0x897   : > { %v2873_v49 = vmax.f32 %v2870_v32, 0.0 }
 0x898   : > { %2890 = vst [vmem:[%s3561_s20] sm:$0xff] %v2872_v5 }
 0x899   : > { %2891 = vst [vmem:[%s3561_s20 + $0x8] sm:$0xff] %v2873_v49 }
 0x89a PF: > { %s17_s26 = sadd.s32 1, %s3478_s26   ;;  %s4579_s24 = smov %s3474_s25 }
 0x89b   : > { %p14_p5 = scmp.ge.s32.totalorder %s17_s26, 4   ;;  %s4580_s25 = smov %s4582_s27 }
 0x89d   :  { %16 = sbr.rel (!%p14_p5) target bundleno = 2 (0x2), region = 78 }

</bundles_post_ra>
